<compile_context>
chip_gen: v5e
topology: v5e:2x2
jax: 0.10.0
libtpu: 0.0.40
codegen_flags: <defaults>
</compile_context>

<pallas_src>
import functools
from math import sqrt

import jax
import jax.numpy as jnp
from jax import lax
from jax.experimental import pallas as pl
from jax.experimental.pallas import tpu as pltpu

# The PyTorch module is f32; force full-precision f32 matmuls for the reference / wrapper ops
# (TPU default is bf16-pass matmuls -- the source of the previous tolerance failure).
jax.config.update("jax_default_matmul_precision", "highest")

_HIGHEST = lax.Precision.HIGHEST


def _round_up(v, m):
    return ((v + m - 1) // m) * m


def _pick_tile(n, preferred):
    """Largest tile that exactly divides n: n itself if small, else a multiple-of-8 divisor."""
    if n <= preferred:
        return n
    for t in range(preferred, 7, -1):
        if n % t == 0 and t % 8 == 0:
            return t
    return n  # no nice divisor -> single full block (still correct)


# --------------------------- Kernel A: pooled-token projections ---------------------------
def _proj_kernel(x_ref, y_ref,
                 w1x_ref, b1x_ref, w2x_ref, b2x_ref,
                 w1y_ref, b1y_ref, w2y_ref, b2y_ref,
                 wq_ref, wk_ref, wv_ref,
                 q_ref, k_ref, v_ref, xe_ref, *, scale):
    """proj_x / proj_y MLPs + q,k,v projections for one (TM, Dc) tile of pooled tokens.

    Outputs are (TM, De); q already carries the 1/sqrt(E) attention scale.
    """
    f32 = jnp.float32
    cdt = w1x_ref.dtype  # MXU operand dtype (f32 or bf16); accumulation is always f32

    def mm(a, w_ref_):
        return jnp.dot(a.astype(cdt), w_ref_[...],
                       preferred_element_type=f32, precision=_HIGHEST)

    # proj_x : Mlp(C -> C -> E)   (dropout = identity in eval mode)
    hx = jnp.maximum(mm(x_ref[...], w1x_ref) + b1x_ref[...], 0.0)
    x_e = mm(hx, w2x_ref) + b2x_ref[...]
    # proj_y : Mlp(C -> C -> E)
    hy = jnp.maximum(mm(y_ref[...], w1y_ref) + b1y_ref[...], 0.0)
    y_e = mm(hy, w2y_ref) + b2y_ref[...]

    q_ref[...] = (mm(x_e, wq_ref) * scale).astype(q_ref.dtype)
    k_ref[...] = mm(y_e, wk_ref).astype(k_ref.dtype)
    v_ref[...] = mm(y_e, wv_ref).astype(v_ref.dtype)
    xe_ref[...] = x_e.astype(xe_ref.dtype)


# ------------------ Kernel B: flash attention + residual + expand MLP ------------------
def _attn_expand_kernel(q_ref, k_ref, v_ref, xe_ref,
                        w1e_ref, b1e_ref, w2e_ref, b2e_ref,
                        out_ref, m_scr, l_scr, acc_scr):
    """Online-softmax attention over the kv grid axis, then residual + expand on the last step.

    Grid: (batch, q_tile, kv_tile); kv_tile is the innermost ("arbitrary") axis.
    q_ref/xe_ref: (tq, De)   k_ref/v_ref: (tk, De)   out_ref: (tq, C)
    """
    f32 = jnp.float32
    cdt = w1e_ref.dtype
    ki = pl.program_id(2)

    @pl.when(ki == 0)
    def _():
        m_scr[...] = jnp.full_like(m_scr, -jnp.inf)
        l_scr[...] = jnp.zeros_like(l_scr)
        acc_scr[...] = jnp.zeros_like(acc_scr)

    # Scores for this (q_tile, kv_tile): contract last dims directly (no transpose / XLU work).
    s = lax.dot_general(q_ref[...], k_ref[...], (((1,), (1,)), ((), ())),
                        preferred_element_type=f32, precision=_HIGHEST)       # (tq, tk)

    m_prev = m_scr[...]
    m_new = jnp.maximum(m_prev, jnp.max(s, axis=-1, keepdims=True))
    alpha = jnp.exp(m_prev - m_new)
    # TODO(synk): on v6e/v7x the exp could run in bf16 (keeping max/sum/normalize in f32) to halve
    # EUP time once the MXU path is bf16; kept f32 here for exact agreement with the f32 module.
    p = jnp.exp(s - m_new)
    l_scr[...] = alpha * l_scr[...] + jnp.sum(p, axis=-1, keepdims=True)
    acc_scr[...] = alpha * acc_scr[...] + jnp.dot(
        p.astype(cdt), v_ref[...], preferred_element_type=f32, precision=_HIGHEST)
    m_scr[...] = m_new

    @pl.when(ki == pl.num_programs(2) - 1)
    def _():
        # Exact divide (pl.reciprocal(approx=True) was flagged as a correctness risk).
        y_info = acc_scr[...] / l_scr[...]
        x_g = xe_ref[...].astype(f32) + y_info                     # CrossAttention residual
        # expand : Mlp(E -> E -> C); output stored at the TRUE C (no padded writeback).
        h = jnp.maximum(
            jnp.dot(x_g.astype(cdt), w1e_ref[...],
                    preferred_element_type=f32, precision=_HIGHEST) + b1e_ref[...], 0.0)
        out = jnp.dot(h.astype(cdt), w2e_ref[...],
                      preferred_element_type=f32, precision=_HIGHEST) + b2e_ref[...]
        out_ref[...] = out.astype(out_ref.dtype)


def global_guidance(x, y, params, patch_size, compute_dtype=jnp.float32):
    """Pallas forward of GlobalGuidance.  compute_dtype=jnp.bfloat16 casts the MXU operands to
    bf16 (f32 accumulation, f32 softmax state) for ~3x MXU throughput; f32 is bit-faithful."""
    B, C, H, W = x.shape
    p = patch_size
    Hp, Wp = H // p, W // p
    N = Hp * Wp
    M = B * N
    E = params["wq"].shape[0]
    scale = 1.0 / sqrt(E)                       # CrossAttention._norm_fact (dim_k == embed_dim)

    dt = compute_dtype
    dsz = jnp.dtype(dt).itemsize
    Dc = _round_up(C, 128)                      # padded in_chans  (lane-dense)
    De = _round_up(E, 128)                      # padded embed_dim (padded independently of C)

    def padw(w, r, c):
        return jnp.pad(w, ((0, r - w.shape[0]), (0, c - w.shape[1])))

    # Matmul operands in compute_dtype; biases stay f32 (added post-accumulation).
    w1x = padw(params["w1x"], Dc, Dc).astype(dt); b1x = padw(params["b1x"], 1, Dc)
    w2x = padw(params["w2x"], Dc, De).astype(dt); b2x = padw(params["b2x"], 1, De)
    w1y = padw(params["w1y"], Dc, Dc).astype(dt); b1y = padw(params["b1y"], 1, Dc)
    w2y = padw(params["w2y"], Dc, De).astype(dt); b2y = padw(params["b2y"], 1, De)
    wq = padw(params["wq"], De, De).astype(dt)
    wk = padw(params["wk"], De, De).astype(dt)
    wv = padw(params["wv"], De, De).astype(dt)
    w1e = padw(params["w1e"], De, De).astype(dt); b1e = padw(params["b1e"], 1, De)
    w2e = padw(params["w2e"], De, C).astype(dt)                    # cols kept at TRUE C
    b2e = params["b2e"]                                            # (1, C)

    # Max-pool patch embedding in the XLA wrapper (pure data movement); kernels only see
    # pooled (M, Dc) tokens -> input DMA drops by ~P2*Dc/C vs the padded-window layout.
    def pool_tokens(t):
        tok = t.reshape(B, C, Hp, p, Wp, p).max(axis=(3, 5))       # MaxPool2d(p, p)
        tok = tok.reshape(B, C, N).transpose(0, 2, 1)              # (B, N, C) tokens
        tok = jnp.pad(tok, ((0, 0), (0, 0), (0, Dc - C)))          # zero-pad channels
        return tok.reshape(M, Dc).astype(dt)

    x_tok = pool_tokens(x)
    y_tok = pool_tokens(y)

    # ---------------- Kernel A: projections, token-parallel over M = B*N rows ----------------
    TM = _pick_tile(M, 512)
    tok_spec = pl.BlockSpec((TM, Dc), lambda i: (i, 0))
    emb_spec = pl.BlockSpec((TM, De), lambda i: (i, 0))

    def const_a(arr):   # constant-index weights: fetched once, single pipeline buffer
        return pl.BlockSpec(arr.shape, lambda i: (0, 0), pipeline_mode=pl.Buffered(1))

    weights_a = [w1x, b1x, w2x, b2x, w1y, b1y, w2y, b2y, wq, wk, wv]
    wbytes_a = sum(int(w.size) * w.dtype.itemsize for w in weights_a)
    vmem_a = (2 * 2 * TM * Dc * dsz            # x/y token blocks, double-buffered
              + 2 * 4 * TM * De * dsz          # q/k/v/x_e output blocks, double-buffered
              + wbytes_a + (8 << 20))          # single-buffered weights + headroom

    q, k, v, x_e = pl.pallas_call(
        functools.partial(_proj_kernel, scale=scale),
        out_shape=[jax.ShapeDtypeStruct((M, De), dt)] * 4,
        grid_spec=pltpu.PrefetchScalarGridSpec(
            num_scalar_prefetch=0,
            grid=(M // TM,),
            in_specs=[tok_spec, tok_spec] + [const_a(w) for w in weights_a],
            out_specs=[emb_spec] * 4,
        ),
        compiler_params=pltpu.CompilerParams(
            dimension_semantics=("parallel",),
            vmem_limit_bytes=int(min(vmem_a, 56 << 20)),
        ),
    )(x_tok, y_tok, *weights_a)

    q = q.reshape(B, N, De)
    k = k.reshape(B, N, De)
    v = v.reshape(B, N, De)
    x_e = x_e.reshape(B, N, De)

    # ---------------- Kernel B: flash attention + residual + expand MLP ----------------
    tq = _pick_tile(N, 256)
    tk = _pick_tile(N, 256)
    q_spec = pl.BlockSpec((None, tq, De), lambda b, qi, ki: (b, qi, 0))
    kv_spec = pl.BlockSpec((None, tk, De), lambda b, qi, ki: (b, ki, 0))

    def const_b(arr):
        return pl.BlockSpec(arr.shape, lambda b, qi, ki: (0, 0), pipeline_mode=pl.Buffered(1))

    weights_b = [w1e, b1e, w2e, b2e]
    wbytes_b = sum(int(w.size) * w.dtype.itemsize for w in weights_b)
    vmem_b = (2 * 2 * tq * De * dsz            # q / x_e blocks
              + 2 * 2 * tk * De * dsz          # k / v blocks
              + 2 * tq * C * 4                 # output block
              + tq * (De + 2) * 4              # m/l/acc scratch
              + wbytes_b + (8 << 20))

    out_tok = pl.pallas_call(
        _attn_expand_kernel,
        out_shape=jax.ShapeDtypeStruct((B, N, C), jnp.float32),
        grid_spec=pltpu.PrefetchScalarGridSpec(
            num_scalar_prefetch=0,
            grid=(B, N // tq, N // tk),
            in_specs=[q_spec, kv_spec, kv_spec, q_spec] + [const_b(w) for w in weights_b],
            out_specs=pl.BlockSpec((None, tq, C), lambda b, qi, ki: (b, qi, 0)),
            scratch_shapes=[pltpu.VMEM((tq, 1), jnp.float32),
                            pltpu.VMEM((tq, 1), jnp.float32),
                            pltpu.VMEM((tq, De), jnp.float32)],
        ),
        compiler_params=pltpu.CompilerParams(
            # Megacore shards the parallel (batch, q-tile) axes -> both TCs busy even for B=1.
            dimension_semantics=("parallel", "parallel", "arbitrary"),
            vmem_limit_bytes=int(min(vmem_b, 56 << 20)),
        ),
    )(q, k, v, x_e, *weights_b)

    # Back to NCHW + nearest-neighbor upsample by patch_size (broadcast + reshape).
    out = out_tok.transpose(0, 2, 1).reshape(B, C, Hp, Wp)
    out = jnp.broadcast_to(out[:, :, :, None, :, None], (B, C, Hp, p, Wp, p))
    return out.reshape(B, C, H, W)


def reference(x, y, params, p):
    """Pure-JAX reference mirroring the PyTorch forward (eval mode)."""
    B, C, H, W = x.shape
    Hp, Wp = H // p, W // p

    def pool(t):
        t = t.reshape(B, C, Hp, p, Wp, p).max(axis=(3, 5))
        return t.reshape(B, C, Hp * Wp).transpose(0, 2, 1)

    def mlp(t, w1, b1, w2, b2):
        return jnp.maximum(t @ w1 + b1, 0.0) @ w2 + b2

    xe = mlp(pool(x), params["w1x"], params["b1x"], params["w2x"], params["b2x"])
    ye = mlp(pool(y), params["w1y"], params["b1y"], params["w2y"], params["b2y"])
    q, k, v = xe @ params["wq"], ye @ params["wk"], ye @ params["wv"]
    E = q.shape[-1]
    s = jnp.einsum("bnd,bmd->bnm", q, k) / sqrt(E)
    a = jax.nn.softmax(s, axis=-1)
    xg = xe + jnp.einsum("bnm,bmd->bnd", a, v)
    out = mlp(xg, params["w1e"], params["b1e"], params["w2e"], params["b2e"])
    out = out.transpose(0, 2, 1).reshape(B, C, Hp, Wp)
    return jnp.repeat(jnp.repeat(out, p, axis=2), p, axis=3)


def init_params(key, in_chans, embed_dim):
    """Deterministic synthetic weights. Linears stored as (in, out); biases as (1, out)."""
    C, E = in_chans, embed_dim
    keys = jax.random.split(key, 16)

    def w(k, shape, fan_in):
        return jax.random.normal(k, shape, jnp.float32) / sqrt(fan_in)

    return {
        # proj_x: Mlp(C -> C -> E)
        "w1x": w(keys[0], (C, C), C), "b1x": w(keys[1], (1, C), C),
        "w2x": w(keys[2], (C, E), C), "b2x": w(keys[3], (1, E), C),
        # proj_y
        "w1y": w(keys[4], (C, C), C), "b1y": w(keys[5], (1, C), C),
        "w2y": w(keys[6], (C, E), C), "b2y": w(keys[7], (1, E), C),
        # cross attention (no bias)
        "wq": w(keys[8], (E, E), E), "wk": w(keys[9], (E, E), E), "wv": w(keys[10], (E, E), E),
        # expand: Mlp(E -> E -> C)
        "w1e": w(keys[11], (E, E), E), "b1e": w(keys[12], (1, E), E),
        "w2e": w(keys[13], (E, C), E), "b2e": w(keys[14], (1, C), E),
    }


if __name__ == "__main__":
    B, C, H, W = 2, 4, 16, 16
    patch_size, embed_dim = 4, 32

    key = jax.random.PRNGKey(0)
    kx, ky, kp = jax.random.split(key, 3)
    x = jax.random.normal(kx, (B, C, H, W), jnp.float32)
    y = jax.random.normal(ky, (B, C, H, W), jnp.float32)
    params = init_params(kp, C, embed_dim)

    out = jax.block_until_ready(global_guidance(x, y, params, patch_size))
    ref = jax.block_until_ready(reference(x, y, params, patch_size))

    assert out.shape == (B, C, H, W)
    assert bool(jnp.allclose(out, ref, atol=1e-4, rtol=1e-4)), (
        "Pallas kernel mismatch vs JAX reference: max abs err "
        f"{float(jnp.max(jnp.abs(out - ref)))}")

    # bf16 MXU-operand fast path (f32 accumulation / f32 softmax state) -- smoke test only:
    # agreement with the f32 module is inherently bf16-level, so it is not tolerance-asserted.
    out_bf16 = jax.block_until_ready(
        global_guidance(x, y, params, patch_size, compute_dtype=jnp.bfloat16))
    assert out_bf16.shape == (B, C, H, W)
    assert bool(jnp.all(jnp.isfinite(out_bf16)))

    print("KERNEL_OK")
</pallas_src>

<mosaic_0001>
module attributes {stable_mosaic.version = 11 : i64} {
  func.func @_proj_kernel(%arg0: i32, %arg1: memref<32x128xf32, #tpu.memory_space<vmem>>, %arg2: memref<32x128xf32, #tpu.memory_space<vmem>>, %arg3: memref<128x128xf32, #tpu.memory_space<vmem>>, %arg4: memref<1x128xf32, #tpu.memory_space<vmem>>, %arg5: memref<128x128xf32, #tpu.memory_space<vmem>>, %arg6: memref<1x128xf32, #tpu.memory_space<vmem>>, %arg7: memref<128x128xf32, #tpu.memory_space<vmem>>, %arg8: memref<1x128xf32, #tpu.memory_space<vmem>>, %arg9: memref<128x128xf32, #tpu.memory_space<vmem>>, %arg10: memref<1x128xf32, #tpu.memory_space<vmem>>, %arg11: memref<128x128xf32, #tpu.memory_space<vmem>>, %arg12: memref<128x128xf32, #tpu.memory_space<vmem>>, %arg13: memref<128x128xf32, #tpu.memory_space<vmem>>, %arg14: memref<32x128xf32, #tpu.memory_space<vmem>>, %arg15: memref<32x128xf32, #tpu.memory_space<vmem>>, %arg16: memref<32x128xf32, #tpu.memory_space<vmem>>, %arg17: memref<32x128xf32, #tpu.memory_space<vmem>>) attributes {dimension_semantics = [#tpu.dimension_semantics<parallel>], iteration_bounds = array<i64: 1>, scalar_prefetch = 0 : i64, scratch_operands = 0 : i64, tpu.core_type = #tpu.core_type<tc>, window_params = [{transform_indices = @transform_0, window_bounds = array<i64: 32, 128>}, {transform_indices = @transform_1, window_bounds = array<i64: 32, 128>}, {pipeline_mode = #tpu.pipeline_mode<synchronous>, transform_indices = @transform_2, window_bounds = array<i64: 128, 128>}, {pipeline_mode = #tpu.pipeline_mode<synchronous>, transform_indices = @transform_3, window_bounds = array<i64: 1, 128>}, {pipeline_mode = #tpu.pipeline_mode<synchronous>, transform_indices = @transform_4, window_bounds = array<i64: 128, 128>}, {pipeline_mode = #tpu.pipeline_mode<synchronous>, transform_indices = @transform_5, window_bounds = array<i64: 1, 128>}, {pipeline_mode = #tpu.pipeline_mode<synchronous>, transform_indices = @transform_6, window_bounds = array<i64: 128, 128>}, {pipeline_mode = #tpu.pipeline_mode<synchronous>, transform_indices = @transform_7, window_bounds = array<i64: 1, 128>}, {pipeline_mode = #tpu.pipeline_mode<synchronous>, transform_indices = @transform_8, window_bounds = array<i64: 128, 128>}, {pipeline_mode = #tpu.pipeline_mode<synchronous>, transform_indices = @transform_9, window_bounds = array<i64: 1, 128>}, {pipeline_mode = #tpu.pipeline_mode<synchronous>, transform_indices = @transform_10, window_bounds = array<i64: 128, 128>}, {pipeline_mode = #tpu.pipeline_mode<synchronous>, transform_indices = @transform_11, window_bounds = array<i64: 128, 128>}, {pipeline_mode = #tpu.pipeline_mode<synchronous>, transform_indices = @transform_12, window_bounds = array<i64: 128, 128>}, {transform_indices = @transform_13, window_bounds = array<i64: 32, 128>}, {transform_indices = @transform_14, window_bounds = array<i64: 32, 128>}, {transform_indices = @transform_15, window_bounds = array<i64: 32, 128>}, {transform_indices = @transform_16, window_bounds = array<i64: 32, 128>}]} {
    %c0 = arith.constant 0 : index
    %c0_0 = arith.constant 0 : index
    %0 = vector.load %arg1[%c0, %c0_0] : memref<32x128xf32, #tpu.memory_space<vmem>>, vector<32x128xf32>
    %c0_1 = arith.constant 0 : index
    %c0_2 = arith.constant 0 : index
    %1 = vector.load %arg3[%c0_1, %c0_2] : memref<128x128xf32, #tpu.memory_space<vmem>>, vector<128x128xf32>
    %cst = arith.constant dense<0.000000e+00> : vector<32x128xf32>
    %2 = tpu.matmul %0, %1, %cst {dimension_numbers = #tpu.dot_dimension_numbers<[1], [0], [0], [1], [0, 0, 1, 1], [], []>, precision = #tpu.contract_precision<fp32>} : vector<32x128xf32>, vector<128x128xf32>, vector<32x128xf32> -> vector<32x128xf32>
    %c0_3 = arith.constant 0 : index
    %c0_4 = arith.constant 0 : index
    %3 = vector.load %arg4[%c0_3, %c0_4] : memref<1x128xf32, #tpu.memory_space<vmem>>, vector<1x128xf32>
    %4 = vector.broadcast %3 : vector<1x128xf32> to vector<32x128xf32>
    %5 = arith.addf %2, %4 : vector<32x128xf32>
    %cst_5 = arith.constant 0.000000e+00 : f32
    %6 = vector.broadcast %cst_5 : f32 to vector<32x128xf32>
    %7 = arith.maximumf %5, %6 : vector<32x128xf32>
    %c0_6 = arith.constant 0 : index
    %c0_7 = arith.constant 0 : index
    %8 = vector.load %arg5[%c0_6, %c0_7] : memref<128x128xf32, #tpu.memory_space<vmem>>, vector<128x128xf32>
    %cst_8 = arith.constant dense<0.000000e+00> : vector<32x128xf32>
    %9 = tpu.matmul %7, %8, %cst_8 {dimension_numbers = #tpu.dot_dimension_numbers<[1], [0], [0], [1], [0, 0, 1, 1], [], []>, precision = #tpu.contract_precision<fp32>} : vector<32x128xf32>, vector<128x128xf32>, vector<32x128xf32> -> vector<32x128xf32>
    %c0_9 = arith.constant 0 : index
    %c0_10 = arith.constant 0 : index
    %10 = vector.load %arg6[%c0_9, %c0_10] : memref<1x128xf32, #tpu.memory_space<vmem>>, vector<1x128xf32>
    %11 = vector.broadcast %10 : vector<1x128xf32> to vector<32x128xf32>
    %12 = arith.addf %9, %11 : vector<32x128xf32>
    %c0_11 = arith.constant 0 : index
    %c0_12 = arith.constant 0 : index
    %13 = vector.load %arg2[%c0_11, %c0_12] : memref<32x128xf32, #tpu.memory_space<vmem>>, vector<32x128xf32>
    %c0_13 = arith.constant 0 : index
    %c0_14 = arith.constant 0 : index
    %14 = vector.load %arg7[%c0_13, %c0_14] : memref<128x128xf32, #tpu.memory_space<vmem>>, vector<128x128xf32>
    %cst_15 = arith.constant dense<0.000000e+00> : vector<32x128xf32>
    %15 = tpu.matmul %13, %14, %cst_15 {dimension_numbers = #tpu.dot_dimension_numbers<[1], [0], [0], [1], [0, 0, 1, 1], [], []>, precision = #tpu.contract_precision<fp32>} : vector<32x128xf32>, vector<128x128xf32>, vector<32x128xf32> -> vector<32x128xf32>
    %c0_16 = arith.constant 0 : index
    %c0_17 = arith.constant 0 : index
    %16 = vector.load %arg8[%c0_16, %c0_17] : memref<1x128xf32, #tpu.memory_space<vmem>>, vector<1x128xf32>
    %17 = vector.broadcast %16 : vector<1x128xf32> to vector<32x128xf32>
    %18 = arith.addf %15, %17 : vector<32x128xf32>
    %cst_18 = arith.constant 0.000000e+00 : f32
    %19 = vector.broadcast %cst_18 : f32 to vector<32x128xf32>
    %20 = arith.maximumf %18, %19 : vector<32x128xf32>
    %c0_19 = arith.constant 0 : index
    %c0_20 = arith.constant 0 : index
    %21 = vector.load %arg9[%c0_19, %c0_20] : memref<128x128xf32, #tpu.memory_space<vmem>>, vector<128x128xf32>
    %cst_21 = arith.constant dense<0.000000e+00> : vector<32x128xf32>
    %22 = tpu.matmul %20, %21, %cst_21 {dimension_numbers = #tpu.dot_dimension_numbers<[1], [0], [0], [1], [0, 0, 1, 1], [], []>, precision = #tpu.contract_precision<fp32>} : vector<32x128xf32>, vector<128x128xf32>, vector<32x128xf32> -> vector<32x128xf32>
    %c0_22 = arith.constant 0 : index
    %c0_23 = arith.constant 0 : index
    %23 = vector.load %arg10[%c0_22, %c0_23] : memref<1x128xf32, #tpu.memory_space<vmem>>, vector<1x128xf32>
    %24 = vector.broadcast %23 : vector<1x128xf32> to vector<32x128xf32>
    %25 = arith.addf %22, %24 : vector<32x128xf32>
    %c0_24 = arith.constant 0 : index
    %c0_25 = arith.constant 0 : index
    %26 = vector.load %arg11[%c0_24, %c0_25] : memref<128x128xf32, #tpu.memory_space<vmem>>, vector<128x128xf32>
    %cst_26 = arith.constant dense<0.000000e+00> : vector<32x128xf32>
    %27 = tpu.matmul %12, %26, %cst_26 {dimension_numbers = #tpu.dot_dimension_numbers<[1], [0], [0], [1], [0, 0, 1, 1], [], []>, precision = #tpu.contract_precision<fp32>} : vector<32x128xf32>, vector<128x128xf32>, vector<32x128xf32> -> vector<32x128xf32>
    %cst_27 = arith.constant 0.176776692 : f32
    %28 = vector.broadcast %cst_27 : f32 to vector<32x128xf32>
    %29 = arith.mulf %27, %28 : vector<32x128xf32>
    %c0_28 = arith.constant 0 : index
    %c0_29 = arith.constant 0 : index
    %30 = vector.load %arg14[%c0_28, %c0_29] : memref<32x128xf32, #tpu.memory_space<vmem>>, vector<32x128xf32>
    tpu.vector_store %arg14[%c0_28, %c0_29], %29 {strides = array<i32>} : memref<32x128xf32, #tpu.memory_space<vmem>>, vector<32x128xf32>,
    %c0_30 = arith.constant 0 : index
    %c0_31 = arith.constant 0 : index
    %31 = vector.load %arg12[%c0_30, %c0_31] : memref<128x128xf32, #tpu.memory_space<vmem>>, vector<128x128xf32>
    %cst_32 = arith.constant dense<0.000000e+00> : vector<32x128xf32>
    %32 = tpu.matmul %25, %31, %cst_32 {dimension_numbers = #tpu.dot_dimension_numbers<[1], [0], [0], [1], [0, 0, 1, 1], [], []>, precision = #tpu.contract_precision<fp32>} : vector<32x128xf32>, vector<128x128xf32>, vector<32x128xf32> -> vector<32x128xf32>
    %c0_33 = arith.constant 0 : index
    %c0_34 = arith.constant 0 : index
    %33 = vector.load %arg15[%c0_33, %c0_34] : memref<32x128xf32, #tpu.memory_space<vmem>>, vector<32x128xf32>
    tpu.vector_store %arg15[%c0_33, %c0_34], %32 {strides = array<i32>} : memref<32x128xf32, #tpu.memory_space<vmem>>, vector<32x128xf32>,
    %c0_35 = arith.constant 0 : index
    %c0_36 = arith.constant 0 : index
    %34 = vector.load %arg13[%c0_35, %c0_36] : memref<128x128xf32, #tpu.memory_space<vmem>>, vector<128x128xf32>
    %cst_37 = arith.constant dense<0.000000e+00> : vector<32x128xf32>
    %35 = tpu.matmul %25, %34, %cst_37 {dimension_numbers = #tpu.dot_dimension_numbers<[1], [0], [0], [1], [0, 0, 1, 1], [], []>, precision = #tpu.contract_precision<fp32>} : vector<32x128xf32>, vector<128x128xf32>, vector<32x128xf32> -> vector<32x128xf32>
    %c0_38 = arith.constant 0 : index
    %c0_39 = arith.constant 0 : index
    %36 = vector.load %arg16[%c0_38, %c0_39] : memref<32x128xf32, #tpu.memory_space<vmem>>, vector<32x128xf32>
    tpu.vector_store %arg16[%c0_38, %c0_39], %35 {strides = array<i32>} : memref<32x128xf32, #tpu.memory_space<vmem>>, vector<32x128xf32>,
    %c0_40 = arith.constant 0 : index
    %c0_41 = arith.constant 0 : index
    %37 = vector.load %arg17[%c0_40, %c0_41] : memref<32x128xf32, #tpu.memory_space<vmem>>, vector<32x128xf32>
    tpu.vector_store %arg17[%c0_40, %c0_41], %12 {strides = array<i32>} : memref<32x128xf32, #tpu.memory_space<vmem>>, vector<32x128xf32>,
    return
  }
  func.func @transform_0(%arg0: i32) -> (i32, i32) {
    %c0_i32 = arith.constant 0 : i32
    %c0_i32_0 = arith.constant 0 : i32
    return %arg0, %c0_i32 : i32, i32
  }
  func.func @transform_1(%arg0: i32) -> (i32, i32) {
    %c0_i32 = arith.constant 0 : i32
    %c0_i32_0 = arith.constant 0 : i32
    return %arg0, %c0_i32 : i32, i32
  }
  func.func @transform_2(%arg0: i32) -> (i32, i32) {
    %c0_i32 = arith.constant 0 : i32
    %c0_i32_0 = arith.constant 0 : i32
    %c0_i32_1 = arith.constant 0 : i32
    return %c0_i32, %c0_i32_0 : i32, i32
  }
  func.func @transform_3(%arg0: i32) -> (i32, i32) {
    %c0_i32 = arith.constant 0 : i32
    %c0_i32_0 = arith.constant 0 : i32
    %c0_i32_1 = arith.constant 0 : i32
    return %c0_i32, %c0_i32_0 : i32, i32
  }
  func.func @transform_4(%arg0: i32) -> (i32, i32) {
    %c0_i32 = arith.constant 0 : i32
    %c0_i32_0 = arith.constant 0 : i32
    %c0_i32_1 = arith.constant 0 : i32
    return %c0_i32, %c0_i32_0 : i32, i32
  }
  func.func @transform_5(%arg0: i32) -> (i32, i32) {
    %c0_i32 = arith.constant 0 : i32
    %c0_i32_0 = arith.constant 0 : i32
    %c0_i32_1 = arith.constant 0 : i32
    return %c0_i32, %c0_i32_0 : i32, i32
  }
  func.func @transform_6(%arg0: i32) -> (i32, i32) {
    %c0_i32 = arith.constant 0 : i32
    %c0_i32_0 = arith.constant 0 : i32
    %c0_i32_1 = arith.constant 0 : i32
    return %c0_i32, %c0_i32_0 : i32, i32
  }
  func.func @transform_7(%arg0: i32) -> (i32, i32) {
    %c0_i32 = arith.constant 0 : i32
    %c0_i32_0 = arith.constant 0 : i32
    %c0_i32_1 = arith.constant 0 : i32
    return %c0_i32, %c0_i32_0 : i32, i32
  }
  func.func @transform_8(%arg0: i32) -> (i32, i32) {
    %c0_i32 = arith.constant 0 : i32
    %c0_i32_0 = arith.constant 0 : i32
    %c0_i32_1 = arith.constant 0 : i32
    return %c0_i32, %c0_i32_0 : i32, i32
  }
  func.func @transform_9(%arg0: i32) -> (i32, i32) {
    %c0_i32 = arith.constant 0 : i32
    %c0_i32_0 = arith.constant 0 : i32
    %c0_i32_1 = arith.constant 0 : i32
    return %c0_i32, %c0_i32_0 : i32, i32
  }
  func.func @transform_10(%arg0: i32) -> (i32, i32) {
    %c0_i32 = arith.constant 0 : i32
    %c0_i32_0 = arith.constant 0 : i32
    %c0_i32_1 = arith.constant 0 : i32
    return %c0_i32, %c0_i32_0 : i32, i32
  }
  func.func @transform_11(%arg0: i32) -> (i32, i32) {
    %c0_i32 = arith.constant 0 : i32
    %c0_i32_0 = arith.constant 0 : i32
    %c0_i32_1 = arith.constant 0 : i32
    return %c0_i32, %c0_i32_0 : i32, i32
  }
  func.func @transform_12(%arg0: i32) -> (i32, i32) {
    %c0_i32 = arith.constant 0 : i32
    %c0_i32_0 = arith.constant 0 : i32
    %c0_i32_1 = arith.constant 0 : i32
    return %c0_i32, %c0_i32_0 : i32, i32
  }
  func.func @transform_13(%arg0: i32) -> (i32, i32) {
    %c0_i32 = arith.constant 0 : i32
    %c0_i32_0 = arith.constant 0 : i32
    return %arg0, %c0_i32 : i32, i32
  }
  func.func @transform_14(%arg0: i32) -> (i32, i32) {
    %c0_i32 = arith.constant 0 : i32
    %c0_i32_0 = arith.constant 0 : i32
    return %arg0, %c0_i32 : i32, i32
  }
  func.func @transform_15(%arg0: i32) -> (i32, i32) {
    %c0_i32 = arith.constant 0 : i32
    %c0_i32_0 = arith.constant 0 : i32
    return %arg0, %c0_i32 : i32, i32
  }
  func.func @transform_16(%arg0: i32) -> (i32, i32) {
    %c0_i32 = arith.constant 0 : i32
    %c0_i32_0 = arith.constant 0 : i32
    return %arg0, %c0_i32 : i32, i32
  }
}

</mosaic_0001>

<bundles_post_ra>
// kernel: tpu_custom_call.1
= control target key start
LH: loop header
LB: loop body
LE: loop exit
PB: predicated region body
PF: predicated region fallthrough
CT: control target
= control target key end

     0   :  { %s6193_s0 = inlined_call_operand.hbm [shape: f32[32,128], index: 0, kind: input, shape index: {}]   ;;  %s6194_s1 = inlined_call_operand.hbm [shape: f32[32,128], index: 1, kind: input, shape index: {}]   ;;  %s6195_s2 = inlined_call_operand.hbm [shape: f32[128,128], index: 2, kind: input, shape index: {}]   ;;  %s6196_s3 = inlined_call_operand.vmem [shape: f32[1,128], index: 3, kind: input, shape index: {}]   ;;  %s6197_s4 = inlined_call_operand.hbm [shape: f32[128,128], index: 4, kind: input, shape index: {}]   ;;  %s6198_s5 = inlined_call_operand.vmem [shape: f32[1,128], index: 5, kind: input, shape index: {}]   ;;  %s6199_s6 = inlined_call_operand.hbm [shape: f32[128,128], index: 6, kind: input, shape index: {}]   ;;  %s6200_s7 = inlined_call_operand.vmem [shape: f32[1,128], index: 7, kind: input, shape index: {}]   ;;  %s6201_s8 = inlined_call_operand.hbm [shape: f32[128,128], index: 8, kind: input, shape index: {}]   ;;  %s6202_s9 = inlined_call_operand.vmem [shape: f32[1,128], index: 9, kind: input, shape index: {}]   ;;  %s6203_s10 = inlined_call_operand.hbm [shape: f32[128,128], index: 10, kind: input, shape index: {}]   ;;  %s6204_s11 = inlined_call_operand.hbm [shape: f32[128,128], index: 11, kind: input, shape index: {}]   ;;  %s6205_s12 = inlined_call_operand.hbm [shape: f32[128,128], index: 12, kind: input, shape index: {}]   ;;  %s6206_s13 = inlined_call_operand.hbm [shape: f32[32,128], index: 13, kind: output, shape index: {0}]   ;;  %s6207_s14 = inlined_call_operand.hbm [shape: f32[32,128], index: 14, kind: output, shape index: {1}]   ;;  %s6208_s15 = inlined_call_operand.hbm [shape: f32[32,128], index: 15, kind: output, shape index: {2}]   ;;  %s6209_s16 = inlined_call_operand.hbm [shape: f32[32,128], index: 16, kind: output, shape index: {3}]  }
   0x1   :  { %6276 = sst [smem:[#allocation49_spill]] %s6193_s0 }
   0x2   :  { %22 = vsyncpa [#allocation3], 0 }
   0x3   :  { %23 = vsyncpa [#allocation6], 0 }
   0x4   :  { %24 = vsyncpa [#allocation9], 0 }
   0x5   :  { %25 = vsyncpa [#allocation12], 0 }
   0x6   :  { %26 = vsyncpa [#allocation15], 0 }
   0x7   :  { %27 = vsyncpa [#allocation4], 0 }
   0x8   :  { %28 = vsyncpa [#allocation19], 0 }
   0x9   :  { %29 = vsyncpa [#allocation22], 0  ;;  %s47_s23 = sshll.u32 %s6194_s1, 4  ;;  %s3848_s24 = smov [#allocation5]   ;;  %s48_s23 = int_to_ptr.hbm [resolvable:$true] %s47_s23 }
   0xa   :  { %s49_s25 = sshll.u32 %s3848_s24, 4  ;;  %s75_s28 = sshll.u32 %s6197_s4, 4  ;;  %s50_s25 = int_to_ptr.vmem [resolvable:$true] %s49_s25  ;;  %s76_s28 = int_to_ptr.hbm [resolvable:$true] %s75_s28 }
   0xb   :  { %s3849_s29 = smov 128   ;;  %s3850_s30 = smov 8  }
   0xc   :  { %55 = dma.hbm_to_vmem [thread:$0]  %s48_s23, 512, %s50_s25, [#allocation6], %s3849_s29, %s3849_s29, %s3850_s30  }
   0xd   :  { %s3851_s0 = smov [#allocation8]   ;;  %s105_s1 = sshll.u32 %s6201_s8, 4  ;;  %s106_s1 = int_to_ptr.hbm [resolvable:$true] %s105_s1 }
   0xe   :  { %s77_s17 = sshll.u32 %s3851_s0, 4  ;;  %s133_s21 = sshll.u32 %s6204_s11, 4  ;;  %s78_s17 = int_to_ptr.vmem [resolvable:$true] %s77_s17  ;;  %s134_s21 = int_to_ptr.hbm [resolvable:$true] %s133_s21 }
   0xf   :  { %83 = dma.hbm_to_vmem [thread:$0]  %s76_s28, 2048, %s78_s17, [#allocation9], %s3849_s29, %s3849_s29, %s3850_s30  }
  0x10   :  { %s3852_s22 = smov [#allocation11]   ;;  %s3853_s23 = smov [#allocation14]  }
  0x11   :  { %s107_s24 = sshll.u32 %s3852_s22, 4  ;;  %s135_s8 = sshll.u32 %s3853_s23, 4  ;;  %s108_s24 = int_to_ptr.vmem [resolvable:$true] %s107_s24  ;;  %s136_s8 = int_to_ptr.vmem [resolvable:$true] %s135_s8 }
  0x12   :  { %113 = dma.hbm_to_vmem [thread:$0]  %s106_s1, 2048, %s108_s24, [#allocation12], %s3849_s29, %s3849_s29, %s3850_s30  }
  0x13   :  { %s6277_s27 = sld [smem:[#allocation49_spill]]  ;;  %s60_s17 = sshll.u32 %s6195_s2, 4  ;;  %s61_s17 = int_to_ptr.hbm [resolvable:$true] %s60_s17 }
  0x14   :  { %141 = dma.hbm_to_vmem [thread:$0]  %s134_s21, 2048, %s136_s8, [#allocation15], %s3849_s29, %s3849_s29, %s3850_s30  }
  0x15   :  { %s3854_s18 = smov [#allocation2]   ;;  %s3855_s1 = smov [#allocation7]  }
  0x16   :  { %s36_s19 = sshll.u32 %s3854_s18, 4  ;;  %s62_s4 = sshll.u32 %s3855_s1, 4  ;;  %s37_s19 = int_to_ptr.vmem [resolvable:$true] %s36_s19  ;;  %s63_s4 = int_to_ptr.vmem [resolvable:$true] %s62_s4 }
  0x17   :  { %s90_s24 = sshll.u32 %s6199_s6, 4  ;;  %s120_s23 = sshll.u32 %s6203_s10, 4  ;;  %s91_s24 = int_to_ptr.hbm [resolvable:$true] %s90_s24  ;;  %s121_s23 = int_to_ptr.hbm [resolvable:$true] %s120_s23 }
  0x18   :  { %68 = dma.hbm_to_vmem [thread:$0]  %s61_s17, 2048, %s63_s4, [#allocation6], %s3849_s29, %s3849_s29, %s3850_s30  }
  0x19   :  { %s34_s0 = sshll.u32 %s6277_s27, 4  ;;  %s3856_s8 = smov [#allocation10]   ;;  %s35_s0 = int_to_ptr.hbm [resolvable:$true] %s34_s0 }
  0x1a   :  { %42 = dma.hbm_to_vmem [thread:$0]  %s35_s0, 512, %s37_s19, [#allocation3], %s3849_s29, %s3849_s29, %s3850_s30  }
  0x1b   :  { %s92_s25 = sshll.u32 %s3856_s8, 4  ;;  %s3857_s26 = smov [#allocation13]   ;;  %s93_s25 = int_to_ptr.vmem [resolvable:$true] %s92_s25 }
  0x1c   :  { %98 = dma.hbm_to_vmem [thread:$0]  %s91_s24, 2048, %s93_s25, [#allocation9], %s3849_s29, %s3849_s29, %s3850_s30  }
  0x1d   :  { %s122_s6 = sshll.u32 %s3857_s26, 4  ;;  %s146_s11 = sshll.u32 %s6205_s12, 4  ;;  %s123_s6 = int_to_ptr.vmem [resolvable:$true] %s122_s6  ;;  %s147_s11 = int_to_ptr.hbm [resolvable:$true] %s146_s11 }
  0x1e   :  { %128 = dma.hbm_to_vmem [thread:$0]  %s121_s23, 2048, %s123_s6, [#allocation12], %s3849_s29, %s3849_s29, %s3850_s30  }
  0x1f   :  { %s3858_s10 = smov [#allocation16]  }
  0x20   :  { %s148_s28 = sshll.u32 %s3858_s10, 4  ;;  %s149_s28 = int_to_ptr.vmem [resolvable:$true] %s148_s28 }
  0x21   :  { %154 = dma.hbm_to_vmem [thread:$0]  %s147_s11, 2048, %s149_s28, [#allocation15], %s3849_s29, %s3849_s29, %s3850_s30  }
  0x22   :  { %3832 = dma.done.wait [#allocation3], 512  }
  0x23   :  { %3833 = vsyncadd [#allocation3], 4294966784 }
  0x24   :  { %3834 = dma.done.wait [#allocation6], 2560  }
  0x25   :  { %3835 = vsyncadd [#allocation6], 4294964736 }
  0x26   :  { %3836 = dma.done.wait [#allocation9], 4096  }
  0x27   :  { %3837 = vsyncadd [#allocation9], 4294963200 }
  0x28   :  { %3838 = dma.done.wait [#allocation12], 4096  }
  0x29   :  { %3839 = vsyncadd [#allocation12], 4294963200 }
  0x2a   :  { %3840 = dma.done.wait [#allocation15], 4096  }
  0x2b   :  { %3841 = vsyncadd [#allocation15], 4294963200  ;;  %v210_v0 = vld [vmem:[#allocation7 + $0x78] sm:$0xff]  ;;  %v209_v1 = vld [vmem:[#allocation7 + $0x70] sm:$0xff]  ;;  %s3399_s20 = sshll.u32 %s6206_s13, 4  ;;  %s3859_s22 = smov [#allocation17]   ;;  %s3400_s20 = int_to_ptr.hbm [resolvable:$true] %s3399_s20 }
  0x2c   :  { %v208_v2 = vld [vmem:[#allocation7 + $0x68] sm:$0xff]  ;;  %v4002_v3 = vand.u32 4294901760, %v210_v0  ;;  %v4004_v4 = vand.u32 4294901760, %v209_v1  ;;  %v207_v6 = vld [vmem:[#allocation7 + $0x60] sm:$0xff]  ;;  %v206_v7 = vld [vmem:[#allocation7 + $0x58] sm:$0xff]  ;;  %s3397_s24 = sshll.u32 %s3859_s22, 4  ;;  %s3398_s24 = int_to_ptr.vmem [resolvable:$true] %s3397_s24 }
  0x2d   :  { %v4006_v5 = vand.u32 4294901760, %v208_v2  ;;  %v205_v8 = vld [vmem:[#allocation7 + $0x50] sm:$0xff]  ;;  %v4008_v9 = vand.u32 4294901760, %v207_v6  ;;  %v4010_v10 = vand.u32 4294901760, %v206_v7  ;;  %v204_v12 = vld [vmem:[#allocation7 + $0x48] sm:$0xff]  ;;  %v203_v13 = vld [vmem:[#allocation7 + $0x40] sm:$0xff] }
  0x2e   :  { %v4012_v11 = vand.u32 4294901760, %v205_v8  ;;  %216 = vmatpush.msra.mxu0 %v4002_v3  ;;  %v4016_v14 = vsub.f32 %v210_v0, %v4002_v3  ;;  %v4019_v15 = vsub.f32 %v209_v1, %v4004_v4  ;;  %463 = vmatpush.msra.mxu3 %v4002_v3  ;;  %v4025_v17 = vand.u32 4294901760, %v204_v12  ;;  %v202_v18 = vld [vmem:[#allocation7 + $0x38] sm:$0xff]  ;;  %v201_v29 = vld [vmem:[#allocation7 + $0x30] sm:$0xff]  ;;  %v200_v36 = vld [vmem:[#allocation7 + $0x28] sm:$0xff]  ;;  %s3438_s23 = sshll.u32 %s6209_s16, 4  ;;  %s3439_s23 = int_to_ptr.hbm [resolvable:$true] %s3438_s23 }
  0x2f   :  { %v4023_v16 = vsub.f32 %v208_v2, %v4006_v5  ;;  %v4028_v19 = vsub.f32 %v207_v6, %v4008_v9  ;;  %v4031_v20 = vsub.f32 %v206_v7, %v4010_v10  ;;  %v4033_v21 = vand.u32 4294901760, %v203_v13  ;;  %v199_v43 = vld [vmem:[#allocation7 + $0x20] sm:$0xff]  ;;  %v198_v49 = vld [vmem:[#allocation7 + $0x18] sm:$0xff]  ;;  %v197_v55 = vld [vmem:[#allocation7 + $0x10] sm:$0xff]  ;;  %s3860_s8 = smov [#allocation21]   ;;  %s3861_s13 = smov [#allocation18]  }
  0x30   :  { %v4036_v22 = vsub.f32 %v205_v8, %v4012_v11  ;;  %218 = vmatpush.msra.mxu0 %v4004_v4  ;;  %395 = vmatpush.msra.mxu2 %v4016_v14  ;;  %v282_v23 = vand.u32 4294901760, %v4016_v14  ;;  %v288_v24 = vand.u32 4294901760, %v4019_v15  ;;  %v4045_v27 = vand.u32 4294901760, %v202_v18  ;;  %v191_v56 = vld [vmem:[#allocation2] sm:$0xff]  ;;  %v196_v62 = vld [vmem:[#allocation7 + $0x8] sm:$0xff]  ;;  %s3436_s25 = sshll.u32 %s3860_s8, 4  ;;  %s3437_s25 = int_to_ptr.vmem [resolvable:$true] %s3436_s25 }
  0x31   :  { %v294_v25 = vand.u32 4294901760, %v4023_v16  ;;  %465 = vmatpush.msra.mxu3 %v4004_v4  ;;  %v300_v26 = vand.u32 4294901760, %v4028_v19  ;;  %v4048_v28 = vsub.f32 %v204_v12, %v4025_v17  ;;  %v306_v33 = vand.u32 4294901760, %v4031_v20  ;;  %v195_v8 = vld [vmem:[#allocation7] sm:$0xff]  ;;  %s3410_s16 = sshll.u32 %s3861_s13, 4  ;;  %s3412_s27 = sshll.u32 %s6207_s14, 4  ;;  %s3411_s16 = int_to_ptr.vmem [resolvable:$true] %s3410_s16  ;;  %s3413_s27 = int_to_ptr.hbm [resolvable:$true] %s3412_s27 }
  0x32   :  { %220 = vmatpush.msra.mxu0 %v4006_v5  ;;  %398 = vmatpush.msra.mxu2 %v4019_v15  ;;  %v283_v30 = vsub.f32 %v4016_v14, %v282_v23  ;;  %v289_v31 = vsub.f32 %v4019_v15, %v288_v24  ;;  %v312_v34 = vand.u32 4294901760, %v4036_v22  ;;  %v4065_v35 = vsub.f32 %v203_v13, %v4033_v21  ;;  %s3862_s14 = smov [#allocation20]   ;;  %s3425_s28 = sshll.u32 %s6208_s15, 4  ;;  %s3426_s28 = int_to_ptr.hbm [resolvable:$true] %s3425_s28 }
  0x33   :  { %v295_v32 = vsub.f32 %v4023_v16, %v294_v25  ;;  %467 = vmatpush.msra.mxu3 %v4006_v5  ;;  %v301_v39 = vsub.f32 %v4028_v19, %v300_v26  ;;  %v4072_v40 = vand.u32 4294901760, %v201_v29  ;;  %v318_v41 = vand.u32 4294901760, %v4048_v28  ;;  %s3423_s0 = sshll.u32 %s3862_s14, 4  ;;  %s3424_s0 = int_to_ptr.vmem [resolvable:$true] %s3423_s0 }
  0x34   :  { %222 = vmatpush.msra.mxu0 %v4008_v9  ;;  %v284_v37 = vand.u32 4294901760, %v283_v30  ;;  %401 = vmatpush.msra.mxu2 %v4023_v16  ;;  %v290_v38 = vand.u32 4294901760, %v289_v31  ;;  %v4077_v42 = vsub.f32 %v202_v18, %v4045_v27  ;;  %v307_v45 = vsub.f32 %v4031_v20, %v306_v33  ;;  %v192_v30 = vld [vmem:[#allocation2 + $0x8] sm:$0xff] }
  0x35   :  { %469 = vmatpush.msra.mxu3 %v4008_v9  ;;  %v296_v44 = vand.u32 4294901760, %v295_v32  ;;  %v4083_v46 = vand.u32 4294901760, %v200_v36  ;;  %v313_v47 = vsub.f32 %v4036_v22, %v312_v34  ;;  %v324_v48 = vand.u32 4294901760, %v4065_v35 }
  0x36   :  { %224 = vmatpush.msra.mxu0 %v4010_v10  ;;  %285 = vmatpush.msra.mxu1 %v284_v37  ;;  %v302_v50 = vand.u32 4294901760, %v301_v39  ;;  %v4092_v51 = vand.u32 4294901760, %v199_v43  ;;  %v4095_v52 = vsub.f32 %v201_v29, %v4072_v40  ;;  %v319_v53 = vsub.f32 %v4048_v28, %v318_v41 }
  0x37   :  { %404 = vmatpush.msra.mxu2 %v4028_v19  ;;  %471 = vmatpush.msra.mxu3 %v4010_v10  ;;  %v330_v54 = vand.u32 4294901760, %v4077_v42  ;;  %v308_v57 = vand.u32 4294901760, %v307_v45  ;;  %v4104_v58 = vand.u32 4294901760, %v198_v49  ;;  %v4107_v59 = vsub.f32 %v200_v36, %v4083_v46 }
  0x38   :  { %226 = vmatpush.msra.mxu0 %v4012_v11  ;;  %291 = vmatpush.msra.mxu1 %v290_v38  ;;  %v314_v60 = vand.u32 4294901760, %v313_v47  ;;  %v325_v61 = vsub.f32 %v4065_v35, %v324_v48  ;;  %v4115_v63 = vand.u32 4294901760, %v197_v55  ;;  %v336_v0 = vand.u32 4294901760, %v4095_v52 }
  0x39   :  { %407 = vmatpush.msra.mxu2 %v4031_v20  ;;  %473 = vmatpush.msra.mxu3 %v4012_v11  ;;  %v4119_v1 = vsub.f32 %v199_v43, %v4092_v51  ;;  %v4121_v2 = vand.u32 4294901760, %v191_v56  ;;  %v320_v6 = vand.u32 4294901760, %v319_v53  ;;  %v331_v7 = vsub.f32 %v4077_v42, %v330_v54  ;;  %v667_v20 = vld [vmem:[#allocation8 + $0x70] sm:$0xff] }
  0x3a   :  { %228 = vmatpush.msra.mxu0 %v4025_v17  ;;  %297 = vmatpush.msra.mxu1 %v296_v44  ;;  %v4129_v12 = vand.u32 4294901760, %v196_v62  ;;  %v342_v13 = vand.u32 4294901760, %v4107_v59  ;;  %v4133_v18 = vsub.f32 %v198_v49, %v4104_v58  ;;  %v326_v31 = vand.u32 4294901760, %v325_v61 }
  0x3b   :  { %410 = vmatpush.msra.mxu2 %v4036_v22  ;;  %475 = vmatpush.msra.mxu3 %v4025_v17  ;;  %v4136_v29 = vsub.f32 %v191_v56, %v4121_v2  ;;  %v337_v32 = vsub.f32 %v4095_v52, %v336_v0  ;;  %v4144_v36 = vand.u32 4294901760, %v195_v8  ;;  %v348_v37 = vand.u32 4294901760, %v4119_v1 }
  0x3c   :  { %230 = vmatpush.msra.mxu0 %v4033_v21  ;;  %303 = vmatpush.msra.mxu1 %v302_v50  ;;  %v4148_v38 = vsub.f32 %v197_v55, %v4115_v63  ;;  %v4153_v43 = vand.u32 4294901760, %v192_v30  ;;  %v332_v44 = vand.u32 4294901760, %v331_v7  ;;  %v343_v45 = vsub.f32 %v4107_v59, %v342_v13  ;;  %v193_v7 = vld [vmem:[#allocation2 + $0x10] sm:$0xff] }
  0x3d   :  { %413 = vmatpush.msra.mxu2 %v4048_v28  ;;  %477 = vmatpush.msra.mxu3 %v4033_v21  ;;  %v249_v39 = vand.u32 4294901760, %v4136_v29  ;;  %v6210_v47 = vand.u32 4294901760, %v4133_v18  ;;  %v4161_v49 = vsub.f32 %v196_v62, %v4129_v12  ;;  %v338_v50 = vand.u32 4294901760, %v337_v32 }
  0x3e   :  { %232 = vmatpush.msra.mxu0 %v4045_v27  ;;  %309 = vmatpush.msra.mxu1 %v308_v57  ;;  %v349_v53 = vsub.f32 %v4119_v1, %v348_v37  ;;  %v6212_v55 = vand.u32 4294901760, %v4148_v38  ;;  %v4171_v56 = vsub.f32 %v195_v8, %v4144_v36  ;;  %v344_v61 = vand.u32 4294901760, %v343_v45 }
  0x3f   :  { %416 = vmatpush.msra.mxu2 %v4065_v35  ;;  %479 = vmatpush.msra.mxu3 %v4045_v27  ;;  %v250_v57 = vsub.f32 %v4136_v29, %v249_v39  ;;  %v355_v62 = vsub.f32 %v4133_v18, %v6210_v47  ;;  %v4191_v45 = vand.u32 4294901760, %v193_v7  ;;  %v4270_v22 = vand.u32 4294901760, %v667_v20 }
  0x40   :  { %234 = vmatpush.msra.mxu0 %v4072_v40  ;;  %315 = vmatpush.msra.mxu1 %v314_v60  ;;  %v256_v60 = vsub.f32 %v192_v30, %v4153_v43  ;;  %v350_v8 = vand.u32 4294901760, %v349_v53  ;;  %v361_v30 = vsub.f32 %v4148_v38, %v6212_v55  ;;  %v194_v55 = vld [vmem:[#allocation2 + $0x18] sm:$0xff] }
  0x41   :  { %419 = vmatpush.msra.mxu2 %v4077_v42  ;;  %481 = vmatpush.msra.mxu3 %v4072_v40  ;;  %v251_v32 = vand.u32 4294901760, %v250_v57  ;;  %v356_v47 = vand.u32 4294901760, %v355_v62  ;;  %v264_v62 = vsub.f32 %v193_v7, %v4191_v45 }
  0x42   :  { %236 = vmatpush.msra.mxu0 %v4083_v46  ;;  %321 = vmatpush.msra.mxu1 %v320_v6  ;;  %v6211_v6 = vand.u32 4294901760, %v4161_v49  ;;  %v362_v53 = vand.u32 4294901760, %v361_v30 }
  0x43   :  { %422 = vmatpush.msra.mxu2 %v4095_v52  ;;  %483 = vmatpush.msra.mxu3 %v4083_v46  ;;  %v265_v7 = vand.u32 4294901760, %v264_v62  ;;  %v663_v52 = vld [vmem:[#allocation8 + $0x50] sm:$0xff] }
  0x44   :  { %238 = vmatpush.msra.mxu0 %v4092_v51  ;;  %327 = vmatpush.msra.mxu1 %v326_v31  ;;  %v372_v31 = vand.u32 4294901760, %v4171_v56 }
  0x45   :  { %425 = vmatpush.msra.mxu2 %v4107_v59  ;;  %485 = vmatpush.msra.mxu3 %v4092_v51  ;;  %v266_v14 = vsub.f32 %v264_v62, %v265_v7 }
  0x46   :  { %240 = vmatpush.msra.mxu0 %v4104_v58  ;;  %333 = vmatpush.msra.mxu1 %v332_v44  ;;  %v257_v44 = vand.u32 4294901760, %v256_v60  ;;  %v373_v57 = vsub.f32 %v4171_v56, %v372_v31 }
  0x47   :  { %428 = vmatpush.msra.mxu2 %v4119_v1  ;;  %487 = vmatpush.msra.mxu3 %v4104_v58  ;;  %v267_v16 = vand.u32 4294901760, %v266_v14  ;;  %v662_v1 = vld [vmem:[#allocation8 + $0x48] sm:$0xff] }
  0x48   :  { %242 = vmatpush.msra.mxu0 %v4115_v63  ;;  %339 = vmatpush.msra.mxu1 %v338_v50  ;;  %v367_v50 = vsub.f32 %v4161_v49, %v6211_v6 }
  0x49   :  { %431 = vmatpush.msra.mxu2 %v4133_v18  ;;  %489 = vmatpush.msra.mxu3 %v4115_v63 }
  0x4a   :  { %244 = vmatpush.msra.mxu0 %v4129_v12  ;;  %345 = vmatpush.msra.mxu1 %v344_v61  ;;  %v258_v61 = vsub.f32 %v256_v60, %v257_v44  ;;  %v368_v6 = vand.u32 4294901760, %v367_v50 }
  0x4b   :  { %434 = vmatpush.msra.mxu2 %v4148_v38  ;;  %491 = vmatpush.msra.mxu3 %v4129_v12 }
  0x4c   :  { %246 = vmatpush.msra.mxu0 %v4144_v36  ;;  %351 = vmatpush.msra.mxu1 %v350_v8  ;;  %v374_v8 = vand.u32 4294901760, %v373_v57  ;;  %v259_v30 = vand.u32 4294901760, %v258_v61 }
  0x4d   :  { %252 = vmatmul.f32.vlgmr.msra.gmra.mxu0 %v251_v32  ;;  %437 = vmatpush.msra.mxu2 %v4161_v49 }
  0x4e   :  { %357 = vmatpush.msra.mxu1 %v356_v47  ;;  %522 = vmatpush.msrb.mxu0 %v282_v23  ;;  %v271_v47 = vand.u32 4294901760, %v194_v55  ;;  %v666_v23 = vld [vmem:[#allocation8 + $0x68] sm:$0xff] }
  0x4f   :  { %440 = vmatpush.msra.mxu2 %v4171_v56  ;;  %493 = vmatpush.msra.mxu3 %v4144_v36 }
  0x50   :  { %363 = vmatpush.msra.mxu1 %v362_v53  ;;  %526 = vmatpush.msrb.mxu0 %v288_v24  ;;  %v272_v15 = vsub.f32 %v194_v55, %v271_v47  ;;  %v660_v55 = vld [vmem:[#allocation8 + $0x38] sm:$0xff] }
  0x51   :  { %443 = vmatmul.f32.vlgmr.msra.gmra.mxu2 %v4136_v29  ;;  %497 = vmatmul.f32.vlgmr.msra.gmra.mxu3 %v249_v39 }
  0x52   :  { %369 = vmatpush.msra.mxu1 %v368_v6  ;;  %530 = vmatpush.msrb.mxu0 %v294_v25  ;;  %v273_v19 = vand.u32 4294901760, %v272_v15  ;;  %v4276_v25 = vsub.f32 %v667_v20, %v4270_v22 }
  0x54   :  { %375 = vmatpush.msra.mxu1 %v374_v8  ;;  %534 = vmatpush.msrb.mxu0 %v300_v26  ;;  %v4279_v26 = vand.u32 4294901760, %v666_v23 }
  0x55   :  { %260 = vmatmul.f32.gmra.mxu0 %v259_v30  ;;  %377 = vmatmul.f32.vlgmr.msra.gmra.mxu1 %v4121_v2 }
  0x56   :  { %601 = vmatpush.msrb.mxu1 %v4002_v3  ;;  %538 = vmatpush.msrb.mxu0 %v306_v33  ;;  %v274_v3 = vsub.f32 %v272_v15, %v273_v19  ;;  %v746_v33 = vand.u32 4294901760, %v4276_v25 }
  0x58   :  { %603 = vmatpush.msrb.mxu1 %v4004_v4  ;;  %542 = vmatpush.msrb.mxu0 %v312_v34  ;;  %v275_v4 = vand.u32 4294901760, %v274_v3  ;;  %v4288_v34 = vsub.f32 %v666_v23, %v4279_v26  ;;  %v747_v42 = vsub.f32 %v4276_v25, %v746_v33 }
  0x59   :  { %448 = vmatmul.f32.gmra.mxu2 %v256_v60  ;;  %503 = vmatmul.f32.gmra.mxu3 %v257_v44  ;;  %v659_v44 = vld [vmem:[#allocation8 + $0x30] sm:$0xff] }
  0x5a   :  { %605 = vmatpush.msrb.mxu1 %v4006_v5  ;;  %546 = vmatpush.msrb.mxu0 %v318_v41  ;;  %v6278_v5 = vand.u32 4294901760, %v4133_v18  ;;  %v4325_v18 = vand.u32 4294901760, %v662_v1  ;;  %v4363_v61 = vand.u32 4294901760, %v659_v44 }
  0x5c   :  { %607 = vmatpush.msrb.mxu1 %v4008_v9  ;;  %550 = vmatpush.msrb.mxu0 %v324_v48  ;;  %v6279_v9 = vand.u32 4294901760, %v4148_v38  ;;  %v4332_v39 = vsub.f32 %v662_v1, %v4325_v18  ;;  %v4374_v14 = vsub.f32 %v659_v44, %v4363_v61  ;;  %v654_v1 = vld [vmem:[#allocation8 + $0x8] sm:$0xff] }
  0x5d   :  { %268 = vmatmul.f32.gmra.mxu0 %v267_v16  ;;  %381 = vmatmul.f32.gmra.mxu1 %v4153_v43 }
  0x5e   :  { %609 = vmatpush.msrb.mxu1 %v4010_v10  ;;  %554 = vmatpush.msrb.mxu0 %v330_v54  ;;  %v6280_v10 = vand.u32 4294901760, %v4161_v49  ;;  %v748_v54 = vand.u32 4294901760, %v747_v42  ;;  %v776_v60 = vand.u32 4294901760, %v4332_v39 }
  0x60   :  { %611 = vmatpush.msrb.mxu1 %v4012_v11  ;;  %558 = vmatpush.msrb.mxu0 %v336_v0  ;;  %v668_v11 = vld [vmem:[#allocation8 + $0x78] sm:$0xff]  ;;  %v777_v50 = vsub.f32 %v4332_v39, %v776_v60 }
  0x61   :  { %453 = vmatmul.f32.gmra.mxu2 %v264_v62  ;;  %509 = vmatmul.f32.gmra.mxu3 %v265_v7  ;;  %v658_v62 = vld [vmem:[#allocation8 + $0x28] sm:$0xff] }
  0x62   :  { %613 = vmatpush.msrb.mxu1 %v4025_v17  ;;  %562 = vmatpush.msrb.mxu0 %v342_v13  ;;  %v4265_v17 = vand.u32 4294901760, %v668_v11  ;;  %v778_v8 = vand.u32 4294901760, %v777_v50 }
  0x64   :  { %615 = vmatpush.msrb.mxu1 %v4033_v21  ;;  %566 = vmatpush.msrb.mxu0 %v348_v37  ;;  %v4268_v21 = vsub.f32 %v668_v11, %v4265_v17 }
  0x65   :  { %276 = vmatmul.f32.gmra.mxu0 %v275_v4  ;;  %385 = vmatmul.f32.gmra.mxu1 %v4191_v45 }
  0x66   :  { %617 = vmatpush.msrb.mxu1 %v4045_v27  ;;  %570 = vmatpush.msrb.mxu0 %v6278_v5  ;;  %v740_v24 = vand.u32 4294901760, %v4268_v21  ;;  %v665_v27 = vld [vmem:[#allocation8 + $0x60] sm:$0xff]  ;;  %v794_v5 = vand.u32 4294901760, %v4374_v14 }
  0x67   :  { %674 = vmatpush.msrb.mxu2 %v4265_v17  ;;  %v4291_v35 = vand.u32 4294901760, %v665_v27 }
  0x68   :  { %619 = vmatpush.msrb.mxu1 %v4072_v40  ;;  %574 = vmatpush.msrb.mxu0 %v6279_v9  ;;  %v741_v28 = vsub.f32 %v4268_v21, %v740_v24  ;;  %v664_v40 = vld [vmem:[#allocation8 + $0x58] sm:$0xff] }
  0x69   :  { %458 = vmatmul.f32.gmra.mxu2 %v272_v15  ;;  %515 = vmatmul.f32.gmra.mxu3 %v273_v19  ;;  %v4300_v48 = vsub.f32 %v665_v27, %v4291_v35  ;;  %v657_v15 = vld [vmem:[#allocation8 + $0x20] sm:$0xff]  ;;  %v656_v9 = vld [vmem:[#allocation8 + $0x18] sm:$0xff]  ;;  %v795_v27 = vsub.f32 %v4374_v14, %v794_v5 }
  0x6a   :  { %621 = vmatpush.msrb.mxu1 %v4083_v46  ;;  %578 = vmatpush.msrb.mxu0 %v6280_v10  ;;  %v742_v41 = vand.u32 4294901760, %v741_v28  ;;  %v752_v46 = vand.u32 4294901760, %v4288_v34  ;;  %v4383_v4 = vand.u32 4294901760, %v657_v15  ;;  %v4393_v23 = vand.u32 4294901760, %v656_v9  ;;  %v655_v28 = vld [vmem:[#allocation8 + $0x10] sm:$0xff] }
  0x6b   :  { %676 = vmatpush.msrb.mxu2 %v4270_v22  ;;  %v758_v59 = vand.u32 4294901760, %v4300_v48 }
  0x6c   :  { %623 = vmatpush.msrb.mxu1 %v4092_v51  ;;  %582 = vmatpush.msrb.mxu0 %v372_v31  ;;  %v4304_v51 = vand.u32 4294901760, %v664_v40  ;;  %v4349_v31 = vand.u32 4294901760, %v660_v55  ;;  %v4391_v20 = vsub.f32 %v657_v15, %v4383_v4 }
  0x6d   :  { %389 = vmatmul.f32.gmra.mxu1 %v271_v47  ;;  %584 = vmatmul.f32.vlgmr.msrb.gmra.mxu0 %v4121_v2 }
  0x6e   :  { %625 = vmatpush.msrb.mxu1 %v4104_v58  ;;  %853 = vmatpush.msra.mxu0 %v4268_v21  ;;  %v753_v58 = vsub.f32 %v4288_v34, %v752_v46  ;;  %v4315_v0 = vsub.f32 %v664_v40, %v4304_v51  ;;  %v4359_v57 = vsub.f32 %v660_v55, %v4349_v31  ;;  %v806_v42 = vand.u32 4294901760, %v4391_v20  ;;  %v653_v55 = vld [vmem:[#allocation8] sm:$0xff] }
  0x6f   :  { %678 = vmatpush.msrb.mxu2 %v4279_v26  ;;  %743 = vmatpush.msrb.mxu3 %v742_v41 }
  0x70   :  { %627 = vmatpush.msrb.mxu1 %v4115_v63  ;;  %856 = vmatpush.msra.mxu0 %v4276_v25  ;;  %v4312_v63 = vand.u32 4294901760, %v663_v52  ;;  %v764_v29 = vand.u32 4294901760, %v4315_v0  ;;  %v788_v7 = vand.u32 4294901760, %v4359_v57 }
  0x71   :  { %680 = vmatpush.msrb.mxu2 %v4291_v35  ;;  %749 = vmatpush.msrb.mxu3 %v748_v54  ;;  %v4410_v54 = vand.u32 4294901760, %v655_v28 }
  0x72   :  { %629 = vmatpush.msrb.mxu1 %v4129_v12  ;;  %859 = vmatpush.msra.mxu0 %v4288_v34  ;;  %v759_v12 = vsub.f32 %v4300_v48, %v758_v59  ;;  %v4323_v13 = vsub.f32 %v663_v52, %v4312_v63  ;;  %v765_v49 = vsub.f32 %v4315_v0, %v764_v29 }
  0x73   :  { %682 = vmatpush.msrb.mxu2 %v4304_v51  ;;  %v789_v19 = vsub.f32 %v4359_v57, %v788_v7  ;;  %v4408_v52 = vsub.f32 %v656_v9, %v4393_v23 }
  0x74   :  { %631 = vmatpush.msrb.mxu1 %v4144_v36  ;;  %862 = vmatpush.msra.mxu0 %v4300_v48  ;;  %v661_v36 = vld [vmem:[#allocation8 + $0x40] sm:$0xff]  ;;  %v760_v37 = vand.u32 4294901760, %v759_v12  ;;  %v770_v38 = vand.u32 4294901760, %v4323_v13  ;;  %v766_v32 = vand.u32 4294901760, %v765_v49  ;;  %v807_v12 = vsub.f32 %v4391_v20, %v806_v42 }
  0x75   :  { %588 = vmatmul.f32.gmra.mxu0 %v4153_v43  ;;  %633 = vmatmul.f32.vlgmr.msrb.gmra.mxu1 %v4121_v2  ;;  %v754_v2 = vand.u32 4294901760, %v753_v58  ;;  %v790_v10 = vand.u32 4294901760, %v789_v19  ;;  %v796_v58 = vand.u32 4294901760, %v795_v27  ;;  %v4425_v49 = vand.u32 4294901760, %v654_v1 }
  0x76   :  { %921 = vmatpush.msra.mxu1 %v4265_v17  ;;  %865 = vmatpush.msra.mxu0 %v4315_v0  ;;  %v771_v56 = vsub.f32 %v4323_v13, %v770_v38  ;;  %v1124_v0 = vld [vmem:[#allocation10 + $0x68] sm:$0xff] }
  0x77   :  { %755 = vmatpush.msrb.mxu3 %v754_v2  ;;  %684 = vmatpush.msrb.mxu2 %v4312_v63  ;;  %v4436_v50 = vsub.f32 %v654_v1, %v4425_v49 }
  0x78   :  { %923 = vmatpush.msra.mxu1 %v4270_v22  ;;  %868 = vmatpush.msra.mxu0 %v4323_v13  ;;  %v4510_v13 = vand.u32 4294901760, %v1124_v0 }
  0x79   :  { %761 = vmatpush.msrb.mxu3 %v760_v37  ;;  %686 = vmatpush.msrb.mxu2 %v4325_v18  ;;  %v4420_v37 = vsub.f32 %v655_v28, %v4410_v54  ;;  %v824_v15 = vand.u32 4294901760, %v4436_v50 }
  0x7a   :  { %925 = vmatpush.msra.mxu1 %v4279_v26  ;;  %871 = vmatpush.msra.mxu0 %v4332_v39 }
  0x7b   :  { %767 = vmatpush.msrb.mxu3 %v766_v32  ;;  %v818_v44 = vand.u32 4294901760, %v4420_v37  ;;  %v825_v27 = vsub.f32 %v4436_v50, %v824_v15 }
  0x7c   :  { %927 = vmatpush.msra.mxu1 %v4291_v35 }
  0x7d   :  { %592 = vmatmul.f32.gmra.mxu0 %v4191_v45  ;;  %637 = vmatmul.f32.gmra.mxu1 %v4153_v43  ;;  %v4334_v43 = vand.u32 4294901760, %v661_v36 }
  0x7e   :  { %929 = vmatpush.msra.mxu1 %v4304_v51 }
  0x7f   :  { %v4347_v6 = vsub.f32 %v661_v36, %v4334_v43  ;;  %688 = vmatpush.msrb.mxu2 %v4334_v43  ;;  %v812_v36 = vand.u32 4294901760, %v4408_v52 }
  0x80   :  { %931 = vmatpush.msra.mxu1 %v4312_v63 }
  0x81   :  { %v782_v53 = vand.u32 4294901760, %v4347_v6  ;;  %874 = vmatpush.msra.mxu0 %v4347_v6  ;;  %690 = vmatpush.msrb.mxu2 %v4349_v31  ;;  %v813_v32 = vsub.f32 %v4408_v52, %v812_v36 }
  0x82   :  { %933 = vmatpush.msra.mxu1 %v4325_v18 }
  0x83   :  { %v783_v30 = vsub.f32 %v4347_v6, %v782_v53  ;;  %877 = vmatpush.msra.mxu0 %v4359_v57  ;;  %692 = vmatpush.msrb.mxu2 %v4363_v61  ;;  %v4529_v57 = vsub.f32 %v1124_v0, %v4510_v13 }
  0x84   :  { %935 = vmatpush.msra.mxu1 %v4334_v43 }
  0x85   :  { %596 = vmatmul.f32.gmra.mxu0 %v271_v47  ;;  %641 = vmatmul.f32.gmra.mxu1 %v4191_v45  ;;  %v772_v45 = vand.u32 4294901760, %v771_v56  ;;  %v784_v16 = vand.u32 4294901760, %v783_v30  ;;  %v808_v56 = vand.u32 4294901760, %v807_v12 }
  0x86   :  { %937 = vmatpush.msra.mxu1 %v4349_v31  ;;  %880 = vmatpush.msra.mxu0 %v4374_v14  ;;  %v1122_v14 = vld [vmem:[#allocation10 + $0x58] sm:$0xff] }
  0x87   :  { %773 = vmatpush.msrb.mxu3 %v772_v45  ;;  %v4431_v45 = vand.u32 4294901760, %v653_v55 }
  0x88   :  { %939 = vmatpush.msra.mxu1 %v4363_v61 }
  0x89   :  { %779 = vmatpush.msrb.mxu3 %v778_v8  ;;  %v819_v8 = vsub.f32 %v4420_v37, %v818_v44  ;;  %v4443_v30 = vsub.f32 %v653_v55, %v4431_v45  ;;  %v1121_v55 = vld [vmem:[#allocation10 + $0x50] sm:$0xff] }
  0x8b   :  { %785 = vmatpush.msrb.mxu3 %v784_v16  ;;  %v820_v9 = vand.u32 4294901760, %v819_v8 }
  0x8d   :  { %645 = vmatmul.f32.gmra.mxu1 %v271_v47  ;;  %v4369_v47 = vand.u32 4294901760, %v658_v62  ;;  %791 = vmatpush.msrb.mxu3 %v790_v10  ;;  %v830_v10 = vand.u32 4294901760, %v4443_v30 }
  0x8f   :  { %v4381_v3 = vsub.f32 %v658_v62, %v4369_v47  ;;  %941 = vmatpush.msra.mxu1 %v4369_v47  ;;  %694 = vmatpush.msrb.mxu2 %v4369_v47  ;;  %v814_v62 = vand.u32 4294901760, %v813_v32  ;;  %v831_v28 = vsub.f32 %v4443_v30, %v830_v10 }
  0x90   :  { %797 = vmatpush.msrb.mxu3 %v796_v58 }
  0x91   :  { %v800_v11 = vand.u32 4294901760, %v4381_v3  ;;  %883 = vmatpush.msra.mxu0 %v4381_v3  ;;  %943 = vmatpush.msra.mxu1 %v4383_v4  ;;  %v832_v58 = vand.u32 4294901760, %v831_v28 }
  0x92   :  { %696 = vmatpush.msrb.mxu2 %v4383_v4 }
  0x93   :  { %v801_v41 = vsub.f32 %v4381_v3, %v800_v11  ;;  %886 = vmatpush.msra.mxu0 %v4391_v20  ;;  %945 = vmatpush.msra.mxu1 %v4393_v23 }
  0x94   :  { %698 = vmatpush.msrb.mxu2 %v4393_v23 }
  0x95   :  { %v802_v2 = vand.u32 4294901760, %v801_v41  ;;  %889 = vmatpush.msra.mxu0 %v4408_v52  ;;  %947 = vmatpush.msra.mxu1 %v4410_v54  ;;  %v826_v41 = vand.u32 4294901760, %v825_v27 }
  0x96   :  { %700 = vmatpush.msrb.mxu2 %v4410_v54 }
  0x97   :  { %803 = vmatpush.msrb.mxu3 %v802_v2  ;;  %892 = vmatpush.msra.mxu0 %v4420_v37  ;;  %v1119_v37 = vld [vmem:[#allocation10 + $0x40] sm:$0xff] }
  0x98   :  { %949 = vmatpush.msra.mxu1 %v4425_v49  ;;  %702 = vmatpush.msrb.mxu2 %v4425_v49 }
  0x99   :  { %809 = vmatpush.msrb.mxu3 %v808_v56  ;;  %895 = vmatpush.msra.mxu0 %v4436_v50 }
  0x9a   :  { %951 = vmatpush.msra.mxu1 %v4431_v45  ;;  %704 = vmatpush.msrb.mxu2 %v4431_v45 }
  0x9b   :  { %815 = vmatpush.msrb.mxu3 %v814_v62  ;;  %898 = vmatpush.msra.mxu0 %v4443_v30  ;;  %v1117_v30 = vld [vmem:[#allocation10 + $0x30] sm:$0xff] }
  0x9c   :  { %980 = vmatpush.msra.mxu2 %v740_v24  ;;  %v4479_v24 = vld [vmem:[%s6196_s3] ss:$0 sm:$0xff] }
  0x9d   :  { %821 = vmatpush.msrb.mxu3 %v820_v9 }
  0x9e   :  { %984 = vmatpush.msra.mxu2 %v746_v33 }
  0x9f   :  { %827 = vmatpush.msrb.mxu3 %v826_v41 }
  0xa0   :  { %988 = vmatpush.msra.mxu2 %v752_v46 }
  0xa1   :  { %833 = vmatpush.msrb.mxu3 %v832_v58 }
  0xa2   :  { %992 = vmatpush.msra.mxu2 %v758_v59 }
  0xa3   :  { %1059 = vmatpush.msra.mxu3 %v4265_v17 }
  0xa4   :  { %996 = vmatpush.msra.mxu2 %v764_v29 }
  0xa5   :  { %1061 = vmatpush.msra.mxu3 %v4270_v22 }
  0xa6   :  { %1000 = vmatpush.msra.mxu2 %v770_v38  ;;  %v1123_v38 = vld [vmem:[#allocation10 + $0x60] sm:$0xff] }
  0xa7   :  { %1063 = vmatpush.msra.mxu3 %v4279_v26  ;;  %v1126_v26 = vld [vmem:[#allocation10 + $0x78] sm:$0xff] }
  0xa8   :  { %1004 = vmatpush.msra.mxu2 %v776_v60  ;;  %v4494_v33 = vand.u32 4294901760, %v1126_v26 }
  0xa9   :  { %1065 = vmatpush.msra.mxu3 %v4291_v35  ;;  %v1125_v35 = vld [vmem:[#allocation10 + $0x70] sm:$0xff] }
  0xaa   :  { %1008 = vmatpush.msra.mxu2 %v782_v53  ;;  %1132 = vmatpush.msrb.mxu0 %v4494_v33  ;;  %v4501_v46 = vsub.f32 %v1126_v26, %v4494_v33  ;;  %v4503_v48 = vand.u32 4294901760, %v1125_v35  ;;  %v4526_v53 = vand.u32 4294901760, %v1123_v38 }
  0xab   :  { %1067 = vmatpush.msra.mxu3 %v4304_v51 }
  0xac   :  { %1012 = vmatpush.msra.mxu2 %v788_v7  ;;  %1134 = vmatpush.msrb.mxu0 %v4503_v48  ;;  %v4542_v12 = vsub.f32 %v1123_v38, %v4526_v53  ;;  %v4603_v38 = vand.u32 4294901760, %v1117_v30 }
  0xad   :  { %1069 = vmatpush.msra.mxu3 %v4312_v63  ;;  %v1198_v63 = vand.u32 4294901760, %v4501_v46 }
  0xae   :  { %1016 = vmatpush.msra.mxu2 %v794_v5  ;;  %1136 = vmatpush.msrb.mxu0 %v4510_v13  ;;  %v1210_v5 = vand.u32 4294901760, %v4529_v57  ;;  %v1216_v52 = vand.u32 4294901760, %v4542_v12 }
  0xaf   :  { %1071 = vmatpush.msra.mxu3 %v4325_v18  ;;  %v4513_v18 = vsub.f32 %v1125_v35, %v4503_v48 }
  0xb0   :  { %1020 = vmatpush.msra.mxu2 %v800_v11  ;;  %1138 = vmatpush.msrb.mxu0 %v4526_v53  ;;  %v4539_v11 = vand.u32 4294901760, %v1122_v14  ;;  %v1211_v20 = vsub.f32 %v4529_v57, %v1210_v5  ;;  %v1217_v58 = vsub.f32 %v4542_v12, %v1216_v52 }
  0xb1   :  { %1073 = vmatpush.msra.mxu3 %v4334_v43  ;;  %v1199_v43 = vsub.f32 %v4501_v46, %v1198_v63  ;;  %v1204_v6 = vand.u32 4294901760, %v4513_v18 }
  0xb2   :  { %1024 = vmatpush.msra.mxu2 %v806_v42  ;;  %v4550_v42 = vand.u32 4294901760, %v1121_v55  ;;  %v4553_v56 = vsub.f32 %v1122_v14, %v4539_v11  ;;  %1140 = vmatpush.msrb.mxu0 %v4539_v11 }
  0xb3   :  { %1075 = vmatpush.msra.mxu3 %v4349_v31  ;;  %v1200_v31 = vand.u32 4294901760, %v1199_v43  ;;  %v1205_v3 = vsub.f32 %v4513_v18, %v1204_v6 }
  0xb4   :  { %1028 = vmatpush.msra.mxu2 %v812_v36  ;;  %v1212_v36 = vand.u32 4294901760, %v1211_v20  ;;  %v4566_v9 = vsub.f32 %v1121_v55, %v4550_v42  ;;  %1142 = vmatpush.msrb.mxu0 %v4550_v42 }
  0xb5   :  { %1077 = vmatpush.msra.mxu3 %v4363_v61  ;;  %1201 = vmatpush.msrb.mxu1 %v1200_v31  ;;  %v1206_v61 = vand.u32 4294901760, %v1205_v3  ;;  %v1116_v31 = vld [vmem:[#allocation10 + $0x28] sm:$0xff] }
  0xb6   :  { %1032 = vmatpush.msra.mxu2 %v818_v44  ;;  %v4616_v55 = vand.u32 4294901760, %v1116_v31 }
  0xb7   :  { %1079 = vmatpush.msra.mxu3 %v4369_v47  ;;  %v1120_v47 = vld [vmem:[#allocation10 + $0x48] sm:$0xff]  ;;  %1207 = vmatpush.msrb.mxu1 %v1206_v61  ;;  %v4619_v61 = vsub.f32 %v1117_v30, %v4603_v38 }
  0xb8   :  { %1036 = vmatpush.msra.mxu2 %v824_v15  ;;  %v1218_v15 = vand.u32 4294901760, %v1217_v58 }
  0xb9   :  { %1081 = vmatpush.msra.mxu3 %v4383_v4  ;;  %1213 = vmatpush.msrb.mxu1 %v1212_v36 }
  0xba   :  { %1040 = vmatpush.msra.mxu2 %v830_v10 }
  0xbb   :  { %1083 = vmatpush.msra.mxu3 %v4393_v23  ;;  %1219 = vmatpush.msrb.mxu1 %v1218_v15 }
  0xbd   :  { %1085 = vmatpush.msra.mxu3 %v4410_v54 }
  0xbf   :  { %1087 = vmatpush.msra.mxu3 %v4425_v49 }
  0xc1   :  { %1089 = vmatpush.msra.mxu3 %v4431_v45  ;;  %v1115_v45 = vld [vmem:[#allocation10 + $0x20] sm:$0xff] }
  0xc2   :  { %v4631_v36 = vand.u32 4294901760, %v1115_v45 }
  0xca   :  { %v4401_v40 = vpop.f32.mrf.mxu0 }
  0xcb   :  { %v254_v25 = vadd.f32 %v4479_v24, %v4401_v40 }
  0xd2   :  { %v261_v16 = vpop.f32.mrf.mxu0  ;;  %v378_v19 = vpop.f32.mrf.mxu1 }
  0xd3   :  { %v379_v51 = vadd.f32 %v378_v19, %v254_v25  ;;  %v262_v29 = vadd.f32 %v4479_v24, %v261_v16  ;;  %v1222_v16 = vand.u32 4294901760, %v4553_v56  ;;  %v4563_v19 = vand.u32 4294901760, %v1120_v47 }
  0xd4   :  { %v444_v21 = vpop.f32.mrf.mxu2  ;;  %v498_v34 = vpop.f32.mrf.mxu3 }
  0xd5   :  { %v445_v7 = vadd.f32 %v444_v21, %v379_v51  ;;  %v4579_v21 = vand.u32 4294901760, %v1119_v37  ;;  %v4582_v25 = vsub.f32 %v1120_v47, %v4563_v19  ;;  %1144 = vmatpush.msrb.mxu0 %v4563_v19  ;;  %v1252_v47 = vand.u32 4294901760, %v4619_v61 }
  0xd7   :  { %v499_v32 = vadd.f32 %v498_v34, %v445_v7  ;;  %v1118_v34 = vld [vmem:[#allocation10 + $0x38] sm:$0xff]  ;;  %v1234_v51 = vand.u32 4294901760, %v4582_v25  ;;  %1146 = vmatpush.msrb.mxu0 %v4579_v21 }
  0xd9   :  { %v1235_v10 = vsub.f32 %v4582_v25, %v1234_v51 }
  0xda   :  { %v4465_v1 = vpop.f32.mrf.mxu0  ;;  %v382_v2 = vpop.f32.mrf.mxu1 }
  0xdb   :  { %v383_v40 = vadd.f32 %v382_v2, %v262_v29  ;;  %v270_v62 = vadd.f32 %v4479_v24, %v4465_v1  ;;  %v1223_v1 = vsub.f32 %v4553_v56, %v1222_v16  ;;  %v1228_v2 = vand.u32 4294901760, %v4566_v9 }
  0xdc   :  { %v449_v59 = vpop.f32.mrf.mxu2  ;;  %v504_v8 = vpop.f32.mrf.mxu3  ;;  %v4597_v29 = vsub.f32 %v1119_v37, %v4579_v21  ;;  %v1236_v3 = vand.u32 4294901760, %v1235_v10 }
  0xdd   :  { %v450_v27 = vadd.f32 %v449_v59, %v383_v40  ;;  %v1224_v23 = vand.u32 4294901760, %v1223_v1  ;;  %v1229_v35 = vsub.f32 %v4566_v9, %v1228_v2  ;;  %v4593_v59 = vand.u32 4294901760, %v1118_v34 }
  0xde   :  { %v1240_v49 = vand.u32 4294901760, %v4597_v29 }
  0xdf   :  { %v1230_v54 = vand.u32 4294901760, %v1229_v35  ;;  %1225 = vmatpush.msrb.mxu1 %v1224_v23  ;;  %1148 = vmatpush.msrb.mxu0 %v4593_v59 }
  0xe1   :  { %1231 = vmatpush.msrb.mxu1 %v1230_v54  ;;  %1150 = vmatpush.msrb.mxu0 %v4603_v38 }
  0xe2   :  { %v4484_v17 = vpop.f32.mrf.mxu0  ;;  %v4486_v22 = vpop.f32.mrf.mxu1 }
  0xe3   :  { %v387_v26 = vadd.f32 %v4486_v22, %v270_v62  ;;  %v505_v22 = vadd.f32 %v504_v8, %v450_v27  ;;  %v278_v43 = vadd.f32 %v4479_v24, %v4484_v17  ;;  %v4634_v27 = vsub.f32 %v1116_v31, %v4616_v55  ;;  %1237 = vmatpush.msrb.mxu1 %v1236_v3 }
  0xe4   :  { %v454_v28 = vpop.f32.mrf.mxu2  ;;  %v510_v24 = vpop.f32.mrf.mxu3  ;;  %1152 = vmatpush.msrb.mxu0 %v4616_v55 }
  0xe5   :  { %v455_v7 = vadd.f32 %v454_v28, %v387_v26  ;;  %v1258_v15 = vand.u32 4294901760, %v4634_v27 }
  0xe6   :  { %1154 = vmatpush.msrb.mxu0 %v4631_v36 }
  0xe7   :  { %v1259_v54 = vsub.f32 %v4634_v27, %v1258_v15 }
  0xea   :  { %v4518_v39 = vpop.f32.mrf.mxu1  ;;  %v585_v60 = vpop.f32.mrf.mxu0 }
  0xeb   :  { %v586_v41 = vadd.f32 %v585_v60, %v499_v32  ;;  %v4606_v60 = vsub.f32 %v1118_v34, %v4593_v59  ;;  %v1241_v32 = vsub.f32 %v4597_v29, %v1240_v49  ;;  %v391_v28 = vadd.f32 %v4518_v39, %v278_v43 }
  0xec   :  { %v511_v39 = vadd.f32 %v510_v24, %v455_v7 }
  0xed   :  { %v1246_v40 = vand.u32 4294901760, %v4606_v60  ;;  %v1242_v37 = vand.u32 4294901760, %v1241_v32 }
  0xef   :  { %v1247_v8 = vsub.f32 %v4606_v60, %v1246_v40  ;;  %1243 = vmatpush.msrb.mxu1 %v1242_v37 }
  0xf1   :  { %v1248_v26 = vand.u32 4294901760, %v1247_v8 }
  0xf2   :  { %v589_v4 = vpop.f32.mrf.mxu0  ;;  %v634_v44 = vpop.f32.mrf.mxu1 }
  0xf3   :  { %v635_v50 = vadd.f32 %v634_v44, %v586_v41  ;;  %v590_v17 = vadd.f32 %v589_v4, %v505_v22  ;;  %v1114_v4 = vld [vmem:[#allocation10 + $0x18] sm:$0xff]  ;;  %v459_v44 = vpop.f32.mrf.mxu2  ;;  %v4647_v22 = vsub.f32 %v1115_v45, %v4631_v36  ;;  %1249 = vmatpush.msrb.mxu1 %v1248_v26 }
  0xf4   :  { %v4643_v34 = vand.u32 4294901760, %v1114_v4  ;;  %v460_v7 = vadd.f32 %v459_v44, %v391_v28 }
  0xf5   :  { %v649_v0 = vmax.f32 %v635_v50, 0.0  ;;  %v1253_v50 = vsub.f32 %v4619_v61, %v1252_v47  ;;  %v1264_v24 = vand.u32 4294901760, %v4647_v22 }
  0xf6   :  { %v4656_v43 = vsub.f32 %v1114_v4, %v4643_v34  ;;  %1156 = vmatpush.msrb.mxu0 %v4643_v34 }
  0xf7   :  { %v4610_v14 = vand.u32 4294901760, %v649_v0  ;;  %v1254_v30 = vand.u32 4294901760, %v1253_v50  ;;  %v516_v50 = vpop.f32.mrf.mxu3 }
  0xf8   :  { %v6213_v32 = vand.u32 4294901760, %v4656_v43 }
  0xf9   :  { %v706_v20 = vsub.f32 %v649_v0, %v4610_v14  ;;  %835 = vmatmul.f32.vlgmr.msrb.gmra.mxu3 %v4610_v14  ;;  %v1113_v0 = vld [vmem:[#allocation10 + $0x10] sm:$0xff]  ;;  %1255 = vmatpush.msrb.mxu1 %v1254_v30 }
  0xfa   :  { %v638_v62 = vpop.f32.mrf.mxu1  ;;  %1379 = vmatpush.msrb.mxu3 %v4494_v33  ;;  %v593_v1 = vpop.f32.mrf.mxu0  ;;  %v4653_v10 = vand.u32 4294901760, %v1113_v0  ;;  %v1271_v4 = vsub.f32 %v4656_v43, %v6213_v32 }
  0xfb   :  { %v639_v41 = vadd.f32 %v638_v62, %v590_v17  ;;  %901 = vmatmul.f32.vlgmr.msra.gmra.mxu0 %v706_v20  ;;  %v707_v58 = vand.u32 4294901760, %v706_v20  ;;  %v1112_v17 = vld [vmem:[#allocation10 + $0x8] sm:$0xff]  ;;  %v594_v8 = vadd.f32 %v593_v1, %v511_v39 }
  0xfc   :  { %1381 = vmatpush.msrb.mxu3 %v4503_v48  ;;  %v4664_v45 = vand.u32 4294901760, %v1112_v17  ;;  %v4667_v62 = vsub.f32 %v1113_v0, %v4653_v10  ;;  %v1272_v0 = vand.u32 4294901760, %v1271_v4  ;;  %1158 = vmatpush.msrb.mxu0 %v4653_v10 }
  0xfd   :  { %v650_v23 = vmax.f32 %v639_v41, 0.0  ;;  %955 = vmatmul.f32.vlgmr.msra.gmra.mxu1 %v707_v58  ;;  %v708_v35 = vsub.f32 %v706_v20, %v707_v58  ;;  %v1260_v20 = vand.u32 4294901760, %v1259_v54  ;;  %v1265_v41 = vsub.f32 %v4647_v22, %v1264_v24  ;;  %v1111_v58 = vld [vmem:[#allocation10] sm:$0xff] }
  0xfe   :  { %1383 = vmatpush.msrb.mxu3 %v4510_v13  ;;  %v6214_v44 = vand.u32 4294901760, %v4667_v62  ;;  %v4679_v1 = vand.u32 4294901760, %v1111_v58  ;;  %v4682_v26 = vsub.f32 %v1112_v17, %v4664_v45  ;;  %1160 = vmatpush.msrb.mxu0 %v4664_v45 }
  0xff   :  { %v4658_v31 = vand.u32 4294901760, %v650_v23  ;;  %v709_v3 = vand.u32 4294901760, %v708_v35  ;;  %v1266_v35 = vand.u32 4294901760, %v1265_v41  ;;  %1261 = vmatpush.msrb.mxu1 %v1260_v20  ;;  %v517_v41 = vadd.f32 %v516_v50, %v460_v7 }
 0x100   :  { %1385 = vmatpush.msrb.mxu3 %v4526_v53  ;;  %v1277_v30 = vsub.f32 %v4667_v62, %v6214_v44  ;;  %v1282_v54 = vand.u32 4294901760, %v4682_v26  ;;  %1162 = vmatpush.msrb.mxu0 %v4679_v1 }
 0x101   :  { %710 = vmatmul.f32.vlgmr.msrb.gmra.mxu2 %v709_v3  ;;  %839 = vmatmul.f32.gmra.mxu3 %v4658_v31  ;;  %v714_v28 = vsub.f32 %v650_v23, %v4658_v31  ;;  %v1107_v3 = vld [vmem:[#allocation5] sm:$0xff] }
 0x102   :  { %v642_v37 = vpop.f32.mrf.mxu1  ;;  %1311 = vmatpush.msrb.mxu2 %v4501_v46  ;;  %v597_v20 = vpop.f32.mrf.mxu0  ;;  %1267 = vmatpush.msrb.mxu1 %v1266_v35  ;;  %v1283_v4 = vsub.f32 %v4682_v26, %v1282_v54 }
 0x103   :  { %v643_v39 = vadd.f32 %v642_v37, %v594_v8  ;;  %906 = vmatmul.f32.gmra.mxu0 %v714_v28  ;;  %v715_v23 = vand.u32 4294901760, %v714_v28  ;;  %v4692_v8 = vsub.f32 %v1111_v58, %v4679_v1  ;;  %v1278_v37 = vand.u32 4294901760, %v1277_v30  ;;  %1387 = vmatpush.msrb.mxu3 %v4539_v11 }
 0x104   :  { %1314 = vmatpush.msrb.mxu2 %v4513_v18  ;;  %1273 = vmatpush.msrb.mxu1 %v1272_v0  ;;  %v1284_v7 = vand.u32 4294901760, %v1283_v4  ;;  %v598_v50 = vadd.f32 %v597_v20, %v517_v41 }
 0x105   :  { %v651_v17 = vmax.f32 %v643_v39, 0.0  ;;  %961 = vmatmul.f32.gmra.mxu1 %v715_v23  ;;  %v716_v32 = vsub.f32 %v714_v28, %v715_v23  ;;  %v4701_v28 = vand.u32 4294901760, %v1107_v3  ;;  %v1288_v58 = vand.u32 4294901760, %v4692_v8  ;;  %1438 = vmatpush.msra.mxu0 %v1198_v63 }
 0x106   :  { %1317 = vmatpush.msrb.mxu2 %v4529_v57  ;;  %1279 = vmatpush.msrb.mxu1 %v1278_v37 }
 0x107   :  { %v4698_v44 = vand.u32 4294901760, %v651_v17  ;;  %v717_v39 = vand.u32 4294901760, %v716_v32  ;;  %v1289_v32 = vsub.f32 %v4692_v8, %v1288_v58  ;;  %v4714_v41 = vsub.f32 %v1107_v3, %v4701_v28  ;;  %1389 = vmatpush.msrb.mxu3 %v4550_v42  ;;  %1442 = vmatpush.msra.mxu0 %v1204_v6  ;;  %v1109_v6 = vld [vmem:[#allocation5 + $0x10] sm:$0xff] }
 0x108   :  { %1320 = vmatpush.msrb.mxu2 %v4542_v12  ;;  %1285 = vmatpush.msrb.mxu1 %v1284_v7 }
 0x109   :  { %718 = vmatmul.f32.gmra.mxu2 %v717_v39  ;;  %843 = vmatmul.f32.gmra.mxu3 %v4698_v44  ;;  %v722_v23 = vsub.f32 %v651_v17, %v4698_v44  ;;  %v1290_v20 = vand.u32 4294901760, %v1289_v32  ;;  %v1108_v17 = vld [vmem:[#allocation5 + $0x8] sm:$0xff]  ;;  %v1165_v3 = vand.u32 4294901760, %v4714_v41  ;;  %v4752_v32 = vand.u32 4294901760, %v1109_v6 }
 0x10a   :  { %v646_v35 = vpop.f32.mrf.mxu1  ;;  %1323 = vmatpush.msrb.mxu2 %v4553_v56  ;;  %v4726_v46 = vand.u32 4294901760, %v1108_v17  ;;  %1391 = vmatpush.msrb.mxu3 %v4563_v19 }
 0x10b   :  { %v647_v30 = vadd.f32 %v646_v35, %v598_v50  ;;  %911 = vmatmul.f32.gmra.mxu0 %v722_v23  ;;  %v723_v0 = vand.u32 4294901760, %v722_v23  ;;  %1291 = vmatpush.msrb.mxu1 %v1290_v20  ;;  %v1166_v18 = vsub.f32 %v4714_v41, %v1165_v3  ;;  %v4765_v12 = vsub.f32 %v1109_v6, %v4752_v32  ;;  %v1579_v20 = vld [vmem:[#allocation11 + $0x50] sm:$0xff] }
 0x10c   :  { %1326 = vmatpush.msrb.mxu2 %v4566_v9  ;;  %1446 = vmatpush.msra.mxu0 %v1210_v5 }
 0x10d   :  { %v652_v4 = vmax.f32 %v647_v30, 0.0  ;;  %967 = vmatmul.f32.gmra.mxu1 %v723_v0  ;;  %v724_v39 = vsub.f32 %v722_v23, %v723_v0  ;;  %1393 = vmatpush.msrb.mxu3 %v4579_v21  ;;  %v1167_v5 = vand.u32 4294901760, %v1166_v18 }
 0x10e   :  { %1329 = vmatpush.msrb.mxu2 %v4582_v25  ;;  %1517 = vmatpush.msra.mxu1 %v4494_v33  ;;  %v4740_v33 = vsub.f32 %v1108_v17, %v4726_v46  ;;  %v6282_v25 = vand.u32 4294901760, %v4667_v62 }
 0x10f   :  { %v4720_v37 = vand.u32 4294901760, %v652_v4  ;;  %v725_v50 = vand.u32 4294901760, %v724_v39  ;;  %1450 = vmatpush.msra.mxu0 %v1216_v52  ;;  %1395 = vmatpush.msrb.mxu3 %v4593_v59 }
 0x110   :  { %1332 = vmatpush.msrb.mxu2 %v4597_v29  ;;  %1519 = vmatpush.msra.mxu1 %v4503_v48  ;;  %v1173_v48 = vand.u32 4294901760, %v4740_v33 }
 0x111   :  { %726 = vmatmul.f32.gmra.mxu2 %v725_v50  ;;  %847 = vmatmul.f32.gmra.mxu3 %v4720_v37  ;;  %v730_v63 = vsub.f32 %v652_v4, %v4720_v37  ;;  %v4907_v50 = vand.u32 4294901760, %v1579_v20 }
 0x112   :  { %1335 = vmatpush.msrb.mxu2 %v4606_v60  ;;  %1521 = vmatpush.msra.mxu1 %v4510_v13  ;;  %v1174_v13 = vsub.f32 %v4740_v33, %v1173_v48 }
 0x113   :  { %916 = vmatmul.f32.gmra.mxu0 %v730_v63  ;;  %v731_v7 = vand.u32 4294901760, %v730_v63  ;;  %1397 = vmatpush.msrb.mxu3 %v4603_v38 }
 0x114   :  { %1338 = vmatpush.msrb.mxu2 %v4619_v61  ;;  %1454 = vmatpush.msra.mxu0 %v1222_v16  ;;  %v1175_v56 = vand.u32 4294901760, %v1174_v13 }
 0x115   :  { %973 = vmatmul.f32.gmra.mxu1 %v731_v7  ;;  %v732_v23 = vsub.f32 %v730_v63, %v731_v7  ;;  %1399 = vmatpush.msrb.mxu3 %v4616_v55  ;;  %v1578_v63 = vld [vmem:[#allocation11 + $0x48] sm:$0xff] }
 0x116   :  { %1523 = vmatpush.msra.mxu1 %v4526_v53  ;;  %1341 = vmatpush.msrb.mxu2 %v4634_v27  ;;  %v1110_v53 = vld [vmem:[#allocation5 + $0x18] sm:$0xff] }
 0x117   :  { %v733_v57 = vand.u32 4294901760, %v732_v23  ;;  %1458 = vmatpush.msra.mxu0 %v1228_v2  ;;  %1401 = vmatpush.msrb.mxu3 %v4631_v36  ;;  %v1187_v52 = vand.u32 4294901760, %v1110_v53  ;;  %v4927_v23 = vsub.f32 %v1579_v20, %v4907_v50 }
 0x118   :  { %1525 = vmatpush.msra.mxu1 %v4539_v11  ;;  %1344 = vmatpush.msrb.mxu2 %v4647_v22  ;;  %v1181_v11 = vand.u32 4294901760, %v4765_v12  ;;  %v1582_v22 = vld [vmem:[#allocation11 + $0x68] sm:$0xff] }
 0x119   :  { %734 = vmatmul.f32.gmra.mxu2 %v733_v57  ;;  %1091 = vmatmul.f32.vlgmr.msra.gmra.mxu3 %v4610_v14  ;;  %v1188_v16 = vsub.f32 %v1110_v53, %v1187_v52  ;;  %v4929_v57 = vand.u32 4294901760, %v1578_v63  ;;  %v6220_v13 = vand.u32 4294901760, %v4927_v23 }
 0x11a   :  { %1462 = vmatpush.msra.mxu0 %v1234_v51  ;;  %1527 = vmatpush.msra.mxu1 %v4550_v42  ;;  %v1182_v42 = vsub.f32 %v4765_v12, %v1181_v11 }
 0x11b   :  { %1168 = vmatmul.f32.vlgmr.msrb.gmra.mxu0 %v1167_v5  ;;  %1347 = vmatpush.msrb.mxu2 %v4656_v43  ;;  %v1189_v9 = vand.u32 4294901760, %v1188_v16 }
 0x11c   :  { %1466 = vmatpush.msra.mxu0 %v1240_v49  ;;  %1529 = vmatpush.msra.mxu1 %v4563_v19  ;;  %v1183_v19 = vand.u32 4294901760, %v1182_v42 }
 0x11d   :  { %1293 = vmatmul.f32.vlgmr.msrb.gmra.mxu1 %v4701_v28  ;;  %1350 = vmatpush.msrb.mxu2 %v4667_v62  ;;  %v1190_v2 = vsub.f32 %v1188_v16, %v1189_v9  ;;  %v1581_v62 = vld [vmem:[#allocation11 + $0x60] sm:$0xff] }
 0x11e   :  { %1403 = vmatpush.msrb.mxu3 %v4643_v34  ;;  %1470 = vmatpush.msra.mxu0 %v1246_v40 }
 0x11f   :  { %1531 = vmatpush.msra.mxu1 %v4579_v21  ;;  %1353 = vmatpush.msrb.mxu2 %v4682_v26  ;;  %v6281_v21 = vand.u32 4294901760, %v4656_v43  ;;  %v1191_v51 = vand.u32 4294901760, %v1190_v2 }
 0x120   :  { %1405 = vmatpush.msrb.mxu3 %v4653_v10  ;;  %1474 = vmatpush.msra.mxu0 %v1252_v47 }
 0x121   :  { %1042 = vmatmul.f32.vlgmr.msra.gmra.mxu2 %v4610_v14  ;;  %1095 = vmatmul.f32.gmra.mxu3 %v4658_v31 }
 0x122   :  { %1533 = vmatpush.msra.mxu1 %v4593_v59  ;;  %1356 = vmatpush.msrb.mxu2 %v4692_v8  ;;  %v1580_v8 = vld [vmem:[#allocation11 + $0x58] sm:$0xff] }
 0x123   :  { %1176 = vmatmul.f32.gmra.mxu0 %v1175_v56  ;;  %1407 = vmatpush.msrb.mxu3 %v4664_v45 }
 0x124   :  { %1478 = vmatpush.msra.mxu0 %v1258_v15  ;;  %1535 = vmatpush.msra.mxu1 %v4603_v38 }
 0x125   :  { %1297 = vmatmul.f32.gmra.mxu1 %v4726_v46  ;;  %1409 = vmatpush.msrb.mxu3 %v4679_v1 }
 0x126   :  { %1482 = vmatpush.msra.mxu0 %v1264_v24  ;;  %1537 = vmatpush.msra.mxu1 %v4616_v55  ;;  %v1584_v55 = vld [vmem:[#allocation11 + $0x78] sm:$0xff] }
 0x127   :  { %v4850_v47 = vand.u32 4294901760, %v1584_v55 }
 0x128   :  { %1486 = vmatpush.msra.mxu0 %v6281_v21  ;;  %1539 = vmatpush.msra.mxu1 %v4631_v36  ;;  %v1583_v36 = vld [vmem:[#allocation11 + $0x70] sm:$0xff] }
 0x129   :  { %1046 = vmatmul.f32.gmra.mxu2 %v4658_v31  ;;  %1099 = vmatmul.f32.gmra.mxu3 %v4698_v44  ;;  %v4855_v15 = vsub.f32 %v1584_v55, %v4850_v47 }
 0x12a   :  { %1490 = vmatpush.msra.mxu0 %v6282_v25  ;;  %1541 = vmatpush.msra.mxu1 %v4643_v34  ;;  %v4857_v34 = vand.u32 4294901760, %v1583_v36  ;;  %v1575_v25 = vld [vmem:[#allocation11 + $0x30] sm:$0xff] }
 0x12b   :  { %1184 = vmatmul.f32.gmra.mxu0 %v1183_v19  ;;  %1590 = vmatpush.msra.mxu2 %v4850_v47  ;;  %v1656_v31 = vand.u32 4294901760, %v4855_v15 }
 0x12c   :  { %1494 = vmatpush.msra.mxu0 %v1282_v54  ;;  %1543 = vmatpush.msra.mxu1 %v4653_v10  ;;  %v4867_v24 = vsub.f32 %v1583_v36, %v4857_v34  ;;  %v4882_v54 = vand.u32 4294901760, %v1581_v62 }
 0x12d   :  { %1301 = vmatmul.f32.gmra.mxu1 %v4752_v32  ;;  %1592 = vmatpush.msra.mxu2 %v4857_v34 }
 0x12e   :  { %1498 = vmatpush.msra.mxu0 %v1288_v58  ;;  %1545 = vmatpush.msra.mxu1 %v4664_v45  ;;  %v4870_v45 = vand.u32 4294901760, %v1582_v22  ;;  %v4893_v0 = vsub.f32 %v1581_v62, %v4882_v54 }
 0x130   :  { %1547 = vmatpush.msra.mxu1 %v4679_v1  ;;  %1769 = vmatpush.msrb.mxu0 %v4855_v15  ;;  %v6228_v1 = vand.u32 4294901760, %v4867_v24  ;;  %v4879_v26 = vsub.f32 %v1582_v22, %v4870_v45 }
 0x131   :  { %1050 = vmatmul.f32.gmra.mxu2 %v4698_v44  ;;  %1103 = vmatmul.f32.gmra.mxu3 %v4720_v37  ;;  %v1657_v44 = vsub.f32 %v4855_v15, %v1656_v31 }
 0x132   :  { %1837 = vmatpush.msrb.mxu1 %v4850_v47  ;;  %1772 = vmatpush.msrb.mxu0 %v4867_v24  ;;  %v1663_v35 = vsub.f32 %v4867_v24, %v6228_v1  ;;  %v6226_v30 = vand.u32 4294901760, %v4879_v26 }
 0x133   :  { %1192 = vmatmul.f32.gmra.mxu0 %v1191_v51  ;;  %1594 = vmatpush.msra.mxu2 %v4870_v45  ;;  %v1658_v58 = vand.u32 4294901760, %v1657_v44  ;;  %v4974_v44 = vand.u32 4294901760, %v1575_v25 }
 0x134   :  { %1839 = vmatpush.msrb.mxu1 %v4857_v34  ;;  %1775 = vmatpush.msrb.mxu0 %v4879_v26  ;;  %v1664_v4 = vand.u32 4294901760, %v1663_v35  ;;  %v1669_v39 = vsub.f32 %v4879_v26, %v6226_v30 }
 0x135   :  { %1305 = vmatmul.f32.gmra.mxu1 %v1187_v52  ;;  %1596 = vmatpush.msra.mxu2 %v4882_v54 }
 0x136   :  { %1841 = vmatpush.msrb.mxu1 %v4870_v45  ;;  %1659 = vmatpush.msra.mxu3 %v1658_v58 }
 0x137   :  { %1778 = vmatpush.msrb.mxu0 %v4893_v0 }
 0x138   :  { %1843 = vmatpush.msrb.mxu1 %v4882_v54  ;;  %1665 = vmatpush.msra.mxu3 %v1664_v4 }
 0x139   :  { %1054 = vmatmul.f32.gmra.mxu2 %v4720_v37  ;;  %1413 = vmatmul.f32.vlgmr.msrb.gmra.mxu3 %v1165_v3  ;;  %v6223_v37 = vand.u32 4294901760, %v4893_v0  ;;  %v4912_v3 = vld [vmem:[%s6198_s5] ss:$0 sm:$0xff] }
 0x13b   :  { %1500 = vmatmul.f32.vlgmr.msra.gmra.mxu0 %v4701_v28  ;;  %v1675_v6 = vsub.f32 %v4893_v0, %v6223_v37 }
 0x13d   :  { %1549 = vmatmul.f32.vlgmr.msra.gmra.mxu1 %v4701_v28 }
 0x141   :  { %1359 = vmatmul.f32.vlgmr.msrb.gmra.mxu2 %v4714_v41  ;;  %1419 = vmatmul.f32.gmra.mxu3 %v1173_v48  ;;  %v4897_v41 = vand.u32 4294901760, %v1580_v8  ;;  %v1577_v48 = vld [vmem:[#allocation11 + $0x40] sm:$0xff] }
 0x142   :  { %v4938_v53 = vand.u32 4294901760, %v1577_v48 }
 0x143   :  { %1504 = vmatmul.f32.gmra.mxu0 %v4726_v46  ;;  %1845 = vmatpush.msrb.mxu1 %v4897_v41 }
 0x144   :  { %1598 = vmatpush.msra.mxu2 %v4897_v41 }
 0x145   :  { %1553 = vmatmul.f32.gmra.mxu1 %v4726_v46  ;;  %v4915_v46 = vsub.f32 %v1580_v8, %v4897_v41  ;;  %v1574_v8 = vld [vmem:[#allocation11 + $0x28] sm:$0xff] }
 0x146   :  { %1847 = vmatpush.msrb.mxu1 %v4907_v50  ;;  %1600 = vmatpush.msra.mxu2 %v4907_v50 }
 0x147   :  { %v6221_v5 = vand.u32 4294901760, %v4915_v46  ;;  %1781 = vmatpush.msrb.mxu0 %v4915_v46 }
 0x148   :  { %1849 = vmatpush.msrb.mxu1 %v4929_v57  ;;  %1602 = vmatpush.msra.mxu2 %v4929_v57 }
 0x149   :  { %1364 = vmatmul.f32.gmra.mxu2 %v4740_v33  ;;  %1425 = vmatmul.f32.gmra.mxu3 %v1181_v11  ;;  %v1670_v33 = vand.u32 4294901760, %v1669_v39  ;;  %v1681_v11 = vsub.f32 %v4915_v46, %v6221_v5 }
 0x14a   :  { %1784 = vmatpush.msrb.mxu0 %v4927_v23  ;;  %1851 = vmatpush.msrb.mxu1 %v4938_v53 }
 0x14b   :  { %1508 = vmatmul.f32.gmra.mxu0 %v4752_v32  ;;  %1671 = vmatpush.msra.mxu3 %v1670_v33  ;;  %v1682_v21 = vand.u32 4294901760, %v1681_v11  ;;  %v4991_v33 = vsub.f32 %v1575_v25, %v4974_v44 }
 0x14c   :  { %1604 = vmatpush.msra.mxu2 %v4938_v53 }
 0x14d   :  { %1557 = vmatmul.f32.gmra.mxu1 %v4752_v32  ;;  %v1676_v32 = vand.u32 4294901760, %v1675_v6  ;;  %v1573_v6 = vld [vmem:[#allocation11 + $0x20] sm:$0xff] }
 0x14e   :  { %v5000_v11 = vand.u32 4294901760, %v1573_v6 }
 0x14f   :  { %1677 = vmatpush.msra.mxu3 %v1676_v32 }
 0x151   :  { %1369 = vmatmul.f32.gmra.mxu2 %v4765_v12  ;;  %1431 = vmatmul.f32.gmra.mxu3 %v1189_v9  ;;  %v4936_v12 = vsub.f32 %v1578_v63, %v4929_v57  ;;  %v4955_v9 = vsub.f32 %v1577_v48, %v4938_v53  ;;  %v4984_v63 = vand.u32 4294901760, %v1574_v8 }
 0x152   :  { %1683 = vmatpush.msra.mxu3 %v1682_v21 }
 0x153   :  { %1512 = vmatmul.f32.gmra.mxu0 %v1187_v52  ;;  %v6219_v19 = vand.u32 4294901760, %v4936_v12  ;;  %v6218_v36 = vand.u32 4294901760, %v4955_v9 }
 0x154   :  { %1787 = vmatpush.msrb.mxu0 %v4936_v12 }
 0x155   :  { %1561 = vmatmul.f32.gmra.mxu1 %v1187_v52  ;;  %v1576_v52 = vld [vmem:[#allocation11 + $0x38] sm:$0xff]  ;;  %v1693_v55 = vsub.f32 %v4936_v12, %v6219_v19  ;;  %v1699_v4 = vsub.f32 %v4955_v9, %v6218_v36 }
 0x156   :  { %v4957_v2 = vand.u32 4294901760, %v1576_v52  ;;  %1790 = vmatpush.msrb.mxu0 %v4955_v9 }
 0x157   :  { %v1694_v20 = vand.u32 4294901760, %v1693_v55  ;;  %v1700_v48 = vand.u32 4294901760, %v1699_v4 }
 0x158   :  { %v4969_v22 = vsub.f32 %v1576_v52, %v4957_v2  ;;  %1853 = vmatpush.msrb.mxu1 %v4957_v2  ;;  %1606 = vmatpush.msra.mxu2 %v4957_v2  ;;  %v6215_v52 = vand.u32 4294901760, %v4991_v33 }
 0x159   :  { %1374 = vmatmul.f32.gmra.mxu2 %v1188_v16  ;;  %v1687_v16 = vsub.f32 %v4927_v23, %v6220_v13 }
 0x15a   :  { %v6217_v39 = vand.u32 4294901760, %v4969_v22  ;;  %1793 = vmatpush.msrb.mxu0 %v4969_v22  ;;  %1855 = vmatpush.msrb.mxu1 %v4974_v44 }
 0x15b   :  { %1608 = vmatpush.msra.mxu2 %v4974_v44 }
 0x15c   :  { %v1705_v32 = vsub.f32 %v4969_v22, %v6217_v39  ;;  %1796 = vmatpush.msrb.mxu0 %v4991_v33  ;;  %1857 = vmatpush.msrb.mxu1 %v4984_v63 }
 0x15d   :  { %1610 = vmatpush.msra.mxu2 %v4984_v63 }
 0x15e   :  { %v1706_v21 = vand.u32 4294901760, %v1705_v32  ;;  %1859 = vmatpush.msrb.mxu1 %v5000_v11 }
 0x15f   :  { %1612 = vmatpush.msra.mxu2 %v5000_v11 }
 0x178   :  { %v4834_v59 = vpop.f32.mrf.mxu0 }
 0x17a   :  { %v4836_v29 = vpop.f32.mrf.mxu1 }
 0x17c   :  { %v4838_v38 = vpop.f32.mrf.mxu3 }
 0x180   :  { %v4840_v60 = vpop.f32.mrf.mxu0 }
 0x182   :  { %v4842_v14 = vpop.f32.mrf.mxu1 }
 0x184   :  { %v4844_v49 = vpop.f32.mrf.mxu2  ;;  %v4846_v40 = vpop.f32.mrf.mxu3 }
 0x185   :  { %v712_v56 = vadd.f32 %v4912_v3, %v4844_v49  ;;  %v1688_v49 = vand.u32 4294901760, %v1687_v16  ;;  %v1572_v16 = vld [vmem:[#allocation11 + $0x18] sm:$0xff] }
 0x186   :  { %v5011_v55 = vand.u32 4294901760, %v1572_v16 }
 0x187   :  { %v837_v62 = vadd.f32 %v4838_v38, %v712_v56  ;;  %1689 = vmatpush.msra.mxu3 %v1688_v49  ;;  %v4998_v56 = vsub.f32 %v1574_v8, %v4984_v63  ;;  %v5009_v49 = vsub.f32 %v1573_v6, %v5000_v11  ;;  %v1711_v8 = vsub.f32 %v4991_v33, %v6215_v52 }
 0x188   :  { %v4848_v61 = vpop.f32.mrf.mxu0  ;;  %v5027_v32 = vsub.f32 %v1572_v16, %v5011_v55  ;;  %1861 = vmatpush.msrb.mxu1 %v5011_v55  ;;  %1614 = vmatpush.msra.mxu2 %v5011_v55 }
 0x189   :  { %1695 = vmatpush.msra.mxu3 %v1694_v20  ;;  %v6216_v25 = vand.u32 4294901760, %v4998_v56  ;;  %1799 = vmatpush.msrb.mxu0 %v4998_v56  ;;  %v1571_v20 = vld [vmem:[#allocation11 + $0x10] sm:$0xff]  ;;  %v6222_v6 = vand.u32 4294901760, %v5009_v49  ;;  %v1712_v52 = vand.u32 4294901760, %v1711_v8  ;;  %v1569_v8 = vld [vmem:[#allocation11] sm:$0xff] }
 0x18a   :  { %v4852_v27 = vpop.f32.mrf.mxu1  ;;  %v6225_v13 = vand.u32 4294901760, %v5027_v32  ;;  %v5054_v37 = vand.u32 4294901760, %v1569_v8 }
 0x18b   :  { %1701 = vmatpush.msra.mxu3 %v1700_v48  ;;  %v1717_v4 = vsub.f32 %v4998_v56, %v6216_v25  ;;  %1802 = vmatpush.msrb.mxu0 %v5009_v49  ;;  %v1570_v25 = vld [vmem:[#allocation11 + $0x8] sm:$0xff]  ;;  %v1723_v16 = vsub.f32 %v5009_v49, %v6222_v6 }
 0x18c   :  { %v4861_v10 = vpop.f32.mrf.mxu2  ;;  %v4863_v43 = vpop.f32.mrf.mxu3  ;;  %v1729_v6 = vsub.f32 %v5027_v32, %v6225_v13 }
 0x18d   :  { %v720_v38 = vadd.f32 %v4912_v3, %v4861_v10  ;;  %v903_v10 = vadd.f32 %v4834_v59, %v837_v62  ;;  %1707 = vmatpush.msra.mxu3 %v1706_v21  ;;  %v1718_v19 = vand.u32 4294901760, %v1717_v4  ;;  %1805 = vmatpush.msrb.mxu0 %v5027_v32  ;;  %v5048_v21 = vand.u32 4294901760, %v1570_v25 }
 0x18e   :  { %v1724_v4 = vand.u32 4294901760, %v1723_v16  ;;  %v5071_v16 = vsub.f32 %v1569_v8, %v5054_v37 }
 0x18f   :  { %v841_v59 = vadd.f32 %v4846_v40, %v720_v38  ;;  %v5029_v40 = vand.u32 4294901760, %v1571_v20  ;;  %v957_v38 = vadd.f32 %v4836_v29, %v903_v10  ;;  %1713 = vmatpush.msra.mxu3 %v1712_v52  ;;  %v5064_v52 = vsub.f32 %v1570_v25, %v5048_v21 }
 0x190   :  { %v4886_v28 = vpop.f32.mrf.mxu0 }
 0x191   :  { %v5042_v5 = vsub.f32 %v1571_v20, %v5029_v40  ;;  %v908_v10 = vadd.f32 %v4840_v60, %v841_v59  ;;  %1863 = vmatpush.msrb.mxu1 %v5029_v40  ;;  %1616 = vmatpush.msra.mxu2 %v5029_v40  ;;  %v1730_v59 = vand.u32 4294901760, %v1729_v6 }
 0x192   :  { %v4900_v17 = vpop.f32.mrf.mxu1  ;;  %1719 = vmatpush.msra.mxu3 %v1718_v19 }
 0x193   :  { %v6224_v20 = vand.u32 4294901760, %v5042_v5  ;;  %1808 = vmatpush.msrb.mxu0 %v5042_v5  ;;  %1865 = vmatpush.msrb.mxu1 %v5048_v21  ;;  %v963_v6 = vadd.f32 %v4842_v14, %v908_v10  ;;  %v2037_v10 = vld [vmem:[#allocation13 + $0x70] sm:$0xff] }
 0x194   :  { %v4919_v7 = vpop.f32.mrf.mxu2  ;;  %v4921_v18 = vpop.f32.mrf.mxu3  ;;  %1618 = vmatpush.msra.mxu2 %v5048_v21  ;;  %1725 = vmatpush.msra.mxu3 %v1724_v4  ;;  %v2038_v4 = vld [vmem:[#allocation13 + $0x78] sm:$0xff]  ;;  %v5102_v1 = vand.u32 4294901760, %v2037_v10 }
 0x195   :  { %v728_v60 = vadd.f32 %v4912_v3, %v4919_v7  ;;  %v6227_v7 = vand.u32 4294901760, %v5064_v52  ;;  %1811 = vmatpush.msrb.mxu0 %v5064_v52  ;;  %1867 = vmatpush.msrb.mxu1 %v5054_v37  ;;  %v5092_v30 = vand.u32 4294901760, %v2038_v4 }
 0x196   :  { %1620 = vmatpush.msra.mxu2 %v5054_v37  ;;  %1731 = vmatpush.msra.mxu3 %v1730_v59 }
 0x197   :  { %v845_v25 = vadd.f32 %v4863_v43, %v728_v60  ;;  %v1741_v8 = vsub.f32 %v5064_v52, %v6227_v7  ;;  %1814 = vmatpush.msrb.mxu0 %v5071_v16  ;;  %v5100_v7 = vsub.f32 %v2038_v4, %v5092_v30  ;;  %v5116_v4 = vsub.f32 %v2037_v10, %v5102_v1 }
 0x198   :  { %v4948_v42 = vpop.f32.mrf.mxu0  ;;  %1896 = vmatpush.msrb.mxu2 %v1656_v31 }
 0x199   :  { %v1742_v43 = vand.u32 4294901760, %v1741_v8  ;;  %2040 = vmatpush.msra.mxu0 %v5092_v30 }
 0x19a   :  { %v4962_v51 = vpop.f32.mrf.mxu1 }
 0x19b   :  { %2042 = vmatpush.msra.mxu0 %v5102_v1 }
 0x19c   :  { %v4976_v58 = vpop.f32.mrf.mxu2  ;;  %v4978_v35 = vpop.f32.mrf.mxu3 }
 0x19d   :  { %v736_v15 = vadd.f32 %v4912_v3, %v4976_v58  ;;  %v2035_v3 = vld [vmem:[#allocation13 + $0x60] sm:$0xff] }
 0x19e   :  { %v5127_v58 = vand.u32 4294901760, %v2035_v3 }
 0x1a0   :  { %v5016_v62 = vpop.f32.mrf.mxu0 }
 0x1a2   :  { %v5034_v48 = vpop.f32.mrf.mxu1 }
 0x1a4   :  { %v1043_v39 = vpop.f32.mrf.mxu2  ;;  %v1096_v36 = vpop.f32.mrf.mxu3 }
 0x1a5   :  { %v1044_v29 = vadd.f32 %v1043_v39, %v957_v38  ;;  %v1735_v38 = vsub.f32 %v5042_v5, %v6224_v20 }
 0x1a7   :  { %v5061_v39 = vadd.f32 %v4978_v35, %v1044_v29  ;;  %v1736_v19 = vand.u32 4294901760, %v1735_v38  ;;  %v6229_v35 = vand.u32 4294901760, %v5071_v16 }
 0x1a8   :  { %v5083_v29 = vpop.f32.mrf.mxu0 }
 0x1a9   :  { %3389 = vst [vmem:[#allocation21] sm:$0xff] %v5061_v39  ;;  %v1747_v13 = vsub.f32 %v5071_v16, %v6229_v35  ;;  %1737 = vmatpush.msra.mxu3 %v1736_v19  ;;  %v6283_v35 = vand.u32 4294901760, %v4867_v24  ;;  %v913_v19 = vadd.f32 %v4848_v61, %v845_v25  ;;  %v6284_v24 = vand.u32 4294901760, %v4879_v26 }
 0x1aa   :  { %v5096_v60 = vpop.f32.mrf.mxu1  ;;  %v849_v26 = vadd.f32 %v4921_v18, %v736_v15  ;;  %v6286_v15 = vand.u32 4294901760, %v4915_v46 }
 0x1ab   :  { %v1748_v59 = vand.u32 4294901760, %v1747_v13  ;;  %1900 = vmatpush.msrb.mxu2 %v6283_v35  ;;  %1743 = vmatpush.msra.mxu3 %v1742_v43  ;;  %v6236_v13 = vand.u32 4294901760, %v5100_v7  ;;  %v969_v25 = vadd.f32 %v4852_v27, %v913_v19  ;;  %v5145_v27 = vsub.f32 %v2035_v3, %v5127_v58 }
 0x1ac   :  { %v1047_v38 = vpop.f32.mrf.mxu2  ;;  %v1100_v20 = vpop.f32.mrf.mxu3  ;;  %v918_v46 = vadd.f32 %v4886_v28, %v849_v26  ;;  %v2031_v26 = vld [vmem:[#allocation13 + $0x40] sm:$0xff] }
 0x1ad   :  { %v1048_v14 = vadd.f32 %v1047_v38, %v963_v6  ;;  %v2036_v6 = vld [vmem:[#allocation13 + $0x68] sm:$0xff]  ;;  %1904 = vmatpush.msrb.mxu2 %v6284_v24  ;;  %1749 = vmatpush.msra.mxu3 %v1748_v59  ;;  %v2107_v61 = vsub.f32 %v5100_v7, %v6236_v13  ;;  %v2034_v38 = vld [vmem:[#allocation13 + $0x58] sm:$0xff] }
 0x1ae   :  { %v5113_v8 = vand.u32 4294901760, %v2036_v6 }
 0x1af   :  { %v5108_v31 = vadd.f32 %v1096_v36, %v1048_v14  ;;  %1975 = vmatpush.msrb.mxu3 %v4850_v47  ;;  %v6233_v36 = vand.u32 4294901760, %v5116_v4  ;;  %v6285_v47 = vand.u32 4294901760, %v4893_v0  ;;  %v2108_v43 = vand.u32 4294901760, %v2107_v61  ;;  %v2033_v0 = vld [vmem:[#allocation13 + $0x50] sm:$0xff] }
 0x1b0   :  { %2044 = vmatpush.msra.mxu0 %v5113_v8  ;;  %v5130_v35 = vsub.f32 %v2036_v6, %v5113_v8  ;;  %v5142_v6 = vand.u32 4294901760, %v2034_v38  ;;  %v5149_v19 = vpop.f32.mrf.mxu0 }
 0x1b1   :  { %3390 = vst [vmem:[#allocation21 + $0x8] sm:$0xff] %v5108_v31  ;;  %1908 = vmatpush.msrb.mxu2 %v6285_v47  ;;  %1977 = vmatpush.msrb.mxu3 %v4857_v34  ;;  %v2113_v10 = vsub.f32 %v5116_v4, %v6233_v36  ;;  %v5155_v47 = vand.u32 4294901760, %v2033_v0 }
 0x1b2   :  { %2046 = vmatpush.msra.mxu0 %v5127_v58  ;;  %v6232_v59 = vand.u32 4294901760, %v5130_v35  ;;  %2109 = vmatpush.msra.mxu1 %v2108_v43  ;;  %v5158_v3 = vsub.f32 %v2034_v38, %v5142_v6  ;;  %v6288_v43 = vand.u32 4294901760, %v4927_v23 }
 0x1b3   :  { %1912 = vmatpush.msrb.mxu2 %v6286_v15  ;;  %1979 = vmatpush.msrb.mxu3 %v4870_v45  ;;  %v2114_v24 = vand.u32 4294901760, %v2113_v10  ;;  %v2032_v45 = vld [vmem:[#allocation13 + $0x48] sm:$0xff]  ;;  %v5167_v10 = vpop.f32.mrf.mxu1  ;;  %v5174_v28 = vsub.f32 %v2033_v0, %v5155_v47 }
 0x1b4   :  { %v1051_v14 = vpop.f32.mrf.mxu2  ;;  %v1104_v34 = vpop.f32.mrf.mxu3  ;;  %v2119_v61 = vsub.f32 %v5130_v35, %v6232_v59  ;;  %2048 = vmatpush.msra.mxu0 %v5142_v6  ;;  %v6230_v38 = vand.u32 4294901760, %v5158_v3 }
 0x1b5   :  { %v1052_v18 = vadd.f32 %v1051_v14, %v969_v25  ;;  %v6231_v14 = vand.u32 4294901760, %v5145_v27  ;;  %1916 = vmatpush.msrb.mxu2 %v6288_v43  ;;  %1981 = vmatpush.msrb.mxu3 %v4882_v54  ;;  %v6289_v54 = vand.u32 4294901760, %v4936_v12  ;;  %v6234_v0 = vand.u32 4294901760, %v5174_v28  ;;  %v5196_v43 = vld [vmem:[%s6200_s7] ss:$0 sm:$0xff] }
 0x1b6   :  { %2115 = vmatpush.msra.mxu1 %v2114_v24  ;;  %v2120_v15 = vand.u32 4294901760, %v2119_v61  ;;  %2050 = vmatpush.msra.mxu0 %v5155_v47  ;;  %v5188_v24 = vand.u32 4294901760, %v2031_v26  ;;  %v975_v12 = vadd.f32 %v4900_v17, %v918_v46 }
 0x1b7   :  { %v5160_v25 = vadd.f32 %v1100_v20, %v1052_v18  ;;  %v5171_v20 = vand.u32 4294901760, %v2032_v45  ;;  %v2125_v23 = vsub.f32 %v5145_v27, %v6231_v14  ;;  %1920 = vmatpush.msrb.mxu2 %v6289_v54  ;;  %1983 = vmatpush.msrb.mxu3 %v4897_v41  ;;  %v2131_v18 = vsub.f32 %v5158_v3, %v6230_v38 }
 0x1b8   :  { %2121 = vmatpush.msra.mxu1 %v2120_v15  ;;  %v2030_v15 = vld [vmem:[#allocation13 + $0x38] sm:$0xff]  ;;  %v6290_v54 = vand.u32 4294901760, %v4955_v9  ;;  %v5211_v46 = vsub.f32 %v2031_v26, %v5188_v24  ;;  %v2029_v9 = vld [vmem:[#allocation13 + $0x30] sm:$0xff]  ;;  %v1170_v26 = vadd.f32 %v5196_v43, %v4948_v42  ;;  %v6293_v42 = vand.u32 4294901760, %v4991_v33 }
 0x1b9   :  { %6287 = vst [vmem:[#allocation31_spill] sm:$0xff] %v5160_v25  ;;  %v5191_v61 = vsub.f32 %v2032_v45, %v5171_v20  ;;  %v2126_v41 = vand.u32 4294901760, %v2125_v23  ;;  %2052 = vmatpush.msra.mxu0 %v5171_v20  ;;  %1985 = vmatpush.msrb.mxu3 %v4907_v50  ;;  %v2132_v14 = vand.u32 4294901760, %v2131_v18  ;;  %v2137_v45 = vsub.f32 %v5174_v28, %v6234_v0 }
 0x1ba   :  { %3391 = vst [vmem:[#allocation21 + $0x10] sm:$0xff] %v5160_v25  ;;  %1924 = vmatpush.msrb.mxu2 %v6290_v54  ;;  %v5207_v36 = vand.u32 4294901760, %v2030_v15  ;;  %v5217_v54 = vand.u32 4294901760, %v2029_v9 }
 0x1bb   :  { %v6235_v59 = vand.u32 4294901760, %v5191_v61  ;;  %2127 = vmatpush.msra.mxu1 %v2126_v41  ;;  %2054 = vmatpush.msra.mxu0 %v5188_v24  ;;  %v2138_v50 = vand.u32 4294901760, %v2137_v45  ;;  %v2028_v41 = vld [vmem:[#allocation13 + $0x28] sm:$0xff]  ;;  %v1501_v45 = vpop.f32.mrf.mxu0 }
 0x1bc   :  { %v1055_v38 = vpop.f32.mrf.mxu2  ;;  %v1414_v23 = vpop.f32.mrf.mxu3  ;;  %1987 = vmatpush.msrb.mxu3 %v4929_v57  ;;  %v5220_v0 = vsub.f32 %v2030_v15, %v5207_v36  ;;  %v6237_v57 = vand.u32 4294901760, %v5211_v46  ;;  %v5232_v13 = vand.u32 4294901760, %v2028_v41 }
 0x1bd   :  { %v1056_v17 = vadd.f32 %v1055_v38, %v975_v12  ;;  %v2143_v18 = vsub.f32 %v5191_v61, %v6235_v59  ;;  %v6291_v38 = vand.u32 4294901760, %v4969_v22  ;;  %2133 = vmatpush.msra.mxu1 %v2132_v14  ;;  %2056 = vmatpush.msra.mxu0 %v5207_v36  ;;  %v5235_v22 = vsub.f32 %v2029_v9, %v5217_v54  ;;  %v1550_v14 = vpop.f32.mrf.mxu1 }
 0x1be   :  { %1989 = vmatpush.msrb.mxu3 %v4938_v53  ;;  %v6238_v15 = vand.u32 4294901760, %v5220_v0  ;;  %v2027_v53 = vld [vmem:[#allocation13 + $0x20] sm:$0xff] }
 0x1bf   :  { %1928 = vmatpush.msrb.mxu2 %v6291_v38  ;;  %v5226_v12 = vadd.f32 %v1104_v34, %v1056_v17  ;;  %v2144_v59 = vand.u32 4294901760, %v2143_v18  ;;  %2139 = vmatpush.msra.mxu1 %v2138_v50  ;;  %v2149_v34 = vsub.f32 %v5211_v46, %v6237_v57  ;;  %v2160_v33 = vand.u32 4294901760, %v5235_v22 }
 0x1c0   :  { %2058 = vmatpush.msra.mxu0 %v5217_v54  ;;  %1991 = vmatpush.msrb.mxu3 %v4957_v2  ;;  %v2155_v17 = vsub.f32 %v5220_v0, %v6238_v15  ;;  %v5249_v9 = vand.u32 4294901760, %v2027_v53  ;;  %v5252_v50 = vsub.f32 %v2028_v41, %v5232_v13  ;;  %v6294_v18 = vand.u32 4294901760, %v4998_v56  ;;  %v2026_v2 = vld [vmem:[#allocation13 + $0x18] sm:$0xff] }
 0x1c1   :  { %6292 = vst [vmem:[#allocation32_spill] sm:$0xff] %v5226_v12  ;;  %1932 = vmatpush.msrb.mxu2 %v6293_v42  ;;  %v1295_v38 = vadd.f32 %v4962_v51, %v1170_v26  ;;  %2145 = vmatpush.msra.mxu1 %v2144_v59  ;;  %v2150_v42 = vand.u32 4294901760, %v2149_v34  ;;  %v5263_v25 = vand.u32 4294901760, %v2026_v2  ;;  %v6295_v56 = vand.u32 4294901760, %v5009_v49 }
 0x1c2   :  { %3392 = vst [vmem:[#allocation21 + $0x18] sm:$0xff] %v5226_v12  ;;  %2060 = vmatpush.msra.mxu0 %v5232_v13  ;;  %1993 = vmatpush.msrb.mxu3 %v4974_v44  ;;  %v2156_v15 = vand.u32 4294901760, %v2155_v17  ;;  %v2161_v12 = vsub.f32 %v5235_v22, %v2160_v33  ;;  %v6245_v41 = vand.u32 4294901760, %v5252_v50  ;;  %v5269_v59 = vsub.f32 %v2027_v53, %v5249_v9  ;;  %v2025_v44 = vld [vmem:[#allocation13 + $0x10] sm:$0xff] }
 0x1c3   :  { %1936 = vmatpush.msrb.mxu2 %v6294_v18  ;;  %2151 = vmatpush.msra.mxu1 %v2150_v42  ;;  %v5275_v17 = vand.u32 4294901760, %v2025_v44  ;;  %v5278_v49 = vsub.f32 %v2026_v2, %v5263_v25  ;;  %v1178_v53 = vadd.f32 %v5196_v43, %v5016_v62  ;;  %v6297_v62 = vand.u32 4294901760, %v5042_v5  ;;  %3444 = dma.vmem_to_hbm [thread:$0]  %s3437_s25, 512, %s3439_s23, [#allocation22], %s3849_s29, %s3849_s29, %s3850_s30  }
 0x1c4   :  { %v1360_v57 = vpop.f32.mrf.mxu2  ;;  %2062 = vmatpush.msra.mxu0 %v5249_v9  ;;  %1995 = vmatpush.msrb.mxu3 %v4984_v63  ;;  %v2162_v26 = vand.u32 4294901760, %v2161_v12  ;;  %v2167_v34 = vsub.f32 %v5252_v50, %v6245_v41  ;;  %v6243_v63 = vand.u32 4294901760, %v5269_v59  ;;  %v2024_v12 = vld [vmem:[#allocation13 + $0x8] sm:$0xff] }
 0x1c5   :  { %1940 = vmatpush.msrb.mxu2 %v6295_v56  ;;  %v1361_v51 = vadd.f32 %v1360_v57, %v1295_v38  ;;  %v6296_v57 = vand.u32 4294901760, %v5027_v32  ;;  %2157 = vmatpush.msra.mxu1 %v2156_v15  ;;  %v1420_v38 = vpop.f32.mrf.mxu3  ;;  %v6244_v2 = vand.u32 4294901760, %v5278_v49  ;;  %v5288_v56 = vand.u32 4294901760, %v2024_v12 }
 0x1c6   :  { %2064 = vmatpush.msra.mxu0 %v5263_v25  ;;  %1997 = vmatpush.msrb.mxu3 %v5000_v11  ;;  %v2168_v42 = vand.u32 4294901760, %v2167_v34  ;;  %v5291_v32 = vsub.f32 %v2025_v44, %v5275_v17  ;;  %v2173_v15 = vsub.f32 %v5269_v59, %v6243_v63  ;;  %v2023_v11 = vld [vmem:[#allocation13] sm:$0xff]  ;;  %v1554_v63 = vpop.f32.mrf.mxu1 }
 0x1c7   :  { %1944 = vmatpush.msrb.mxu2 %v6296_v57  ;;  %v1415_v18 = vadd.f32 %v1414_v23, %v1361_v51  ;;  %2163 = vmatpush.msra.mxu1 %v2162_v26  ;;  %v1505_v51 = vpop.f32.mrf.mxu0  ;;  %v2179_v44 = vsub.f32 %v5278_v49, %v6244_v2  ;;  %v5304_v5 = vand.u32 4294901760, %v2023_v11  ;;  %v6298_v26 = vand.u32 4294901760, %v5064_v52 }
 0x1c8   :  { %2066 = vmatpush.msra.mxu0 %v5275_v17  ;;  %1999 = vmatpush.msrb.mxu3 %v5011_v55  ;;  %v2184_v34 = vand.u32 4294901760, %v5291_v32  ;;  %v1299_v57 = vadd.f32 %v5034_v48, %v1178_v53  ;;  %v6299_v48 = vand.u32 4294901760, %v5071_v16 }
 0x1c9   :  { %1948 = vmatpush.msrb.mxu2 %v6297_v62  ;;  %v1502_v23 = vadd.f32 %v1501_v45, %v1415_v18  ;;  %v5307_v45 = vsub.f32 %v2024_v12, %v5288_v56  ;;  %2169 = vmatpush.msra.mxu1 %v2168_v42  ;;  %v2174_v62 = vand.u32 4294901760, %v2173_v15  ;;  %v2180_v2 = vand.u32 4294901760, %v2179_v44 }
 0x1ca   :  { %2068 = vmatpush.msra.mxu0 %v5288_v56  ;;  %2001 = vmatpush.msrb.mxu3 %v5029_v40  ;;  %v2185_v12 = vsub.f32 %v5291_v32, %v2184_v34  ;;  %v5319_v52 = vsub.f32 %v2023_v11, %v5304_v5  ;;  %v1186_v15 = vadd.f32 %v5196_v43, %v5083_v29 }
 0x1cb   :  { %1952 = vmatpush.msrb.mxu2 %v6298_v26  ;;  %v1551_v18 = vadd.f32 %v1550_v14, %v1502_v23  ;;  %v2190_v41 = vand.u32 4294901760, %v5307_v45  ;;  %2175 = vmatpush.msra.mxu1 %v2174_v62 }
 0x1cc   :  { %v1365_v55 = vpop.f32.mrf.mxu2  ;;  %2070 = vmatpush.msra.mxu0 %v5304_v5  ;;  %2003 = vmatpush.msrb.mxu3 %v5048_v21  ;;  %v2186_v40 = vand.u32 4294901760, %v2185_v12  ;;  %v2196_v23 = vand.u32 4294901760, %v5319_v52  ;;  %v6300_v12 = vand.u32 4294901760, %v5100_v7 }
 0x1cd   :  { %1956 = vmatpush.msrb.mxu2 %v6299_v48  ;;  %v1565_v14 = vmax.f32 %v1551_v18, 0.0  ;;  %v1366_v53 = vadd.f32 %v1365_v55, %v1299_v57  ;;  %v2191_v42 = vsub.f32 %v5307_v45, %v2190_v41  ;;  %2181 = vmatpush.msra.mxu1 %v2180_v2  ;;  %v1426_v18 = vpop.f32.mrf.mxu3 }
 0x1ce   :  { %2005 = vmatpush.msrb.mxu3 %v5054_v37  ;;  %v2197_v21 = vsub.f32 %v5319_v52, %v2196_v23 }
 0x1cf   :  { %v5331_v11 = vand.u32 4294901760, %v1565_v14  ;;  %v1421_v16 = vadd.f32 %v1420_v38, %v1366_v53  ;;  %v2192_v44 = vand.u32 4294901760, %v2191_v42  ;;  %2187 = vmatpush.msra.mxu1 %v2186_v40  ;;  %v1303_v38 = vadd.f32 %v5096_v60, %v1186_v15  ;;  %v1509_v55 = vpop.f32.mrf.mxu0  ;;  %v1558_v53 = vpop.f32.mrf.mxu1 }
 0x1d0   :  { %v2198_v29 = vand.u32 4294901760, %v2197_v21  ;;  %v1194_v60 = vadd.f32 %v5196_v43, %v5149_v19  ;;  %v6301_v15 = vand.u32 4294901760, %v5116_v4  ;;  %v6302_v21 = vand.u32 4294901760, %v5130_v35 }
 0x1d1   :  { %v1622_v26 = vsub.f32 %v1565_v14, %v5331_v11  ;;  %v1506_v57 = vadd.f32 %v1505_v51, %v1421_v16  ;;  %1751 = vmatmul.f32.vlgmr.msra.gmra.mxu3 %v5331_v11  ;;  %2193 = vmatpush.msra.mxu1 %v2192_v44 }
 0x1d2   :  { %2287 = vmatpush.msra.mxu3 %v5092_v30  ;;  %v1307_v19 = vadd.f32 %v5167_v10, %v1194_v60 }
 0x1d3   :  { %v1555_v2 = vadd.f32 %v1554_v63, %v1506_v57  ;;  %1817 = vmatmul.f32.vlgmr.msrb.gmra.mxu0 %v1622_v26  ;;  %v1623_v37 = vand.u32 4294901760, %v1622_v26  ;;  %2199 = vmatpush.msra.mxu1 %v2198_v29 }
 0x1d4   :  { %v1370_v62 = vpop.f32.mrf.mxu2  ;;  %2289 = vmatpush.msra.mxu3 %v5102_v1  ;;  %2346 = vmatpush.msrb.mxu0 %v6300_v12 }
 0x1d5   :  { %v1566_v51 = vmax.f32 %v1555_v2, 0.0  ;;  %v1371_v48 = vadd.f32 %v1370_v62, %v1303_v38  ;;  %1871 = vmatmul.f32.vlgmr.msrb.gmra.mxu1 %v1623_v37  ;;  %v1624_v14 = vsub.f32 %v1622_v26, %v1623_v37  ;;  %v1432_v57 = vpop.f32.mrf.mxu3  ;;  %v6304_v62 = vand.u32 4294901760, %v5158_v3 }
 0x1d6   :  { %2291 = vmatpush.msra.mxu3 %v5113_v8  ;;  %2350 = vmatpush.msrb.mxu0 %v6301_v15 }
 0x1d7   :  { %v5347_v63 = vand.u32 4294901760, %v1566_v51  ;;  %v1427_v40 = vadd.f32 %v1426_v18, %v1371_v48  ;;  %v1625_v42 = vand.u32 4294901760, %v1624_v14  ;;  %2425 = vmatpush.msrb.mxu1 %v5092_v30  ;;  %v6303_v18 = vand.u32 4294901760, %v5145_v27 }
 0x1d8   :  { %2293 = vmatpush.msra.mxu3 %v5127_v58  ;;  %2354 = vmatpush.msrb.mxu0 %v6302_v21 }
 0x1d9   :  { %v1510_v16 = vadd.f32 %v1509_v55, %v1427_v40  ;;  %1626 = vmatmul.f32.vlgmr.msra.gmra.mxu2 %v1625_v42  ;;  %1755 = vmatmul.f32.gmra.mxu3 %v5347_v63  ;;  %v1630_v44 = vsub.f32 %v1566_v51, %v5347_v63  ;;  %v1562_v55 = vpop.f32.mrf.mxu1  ;;  %v6305_v51 = vand.u32 4294901760, %v5174_v28  ;;  %v6307_v40 = vand.u32 4294901760, %v5211_v46 }
 0x1da   :  { %2427 = vmatpush.msrb.mxu1 %v5102_v1  ;;  %2219 = vmatpush.msra.mxu2 %v5100_v7  ;;  %v1513_v1 = vpop.f32.mrf.mxu0  ;;  %v6308_v42 = vand.u32 4294901760, %v5220_v0 }
 0x1db   :  { %v1559_v43 = vadd.f32 %v1558_v53, %v1510_v16  ;;  %1822 = vmatmul.f32.gmra.mxu0 %v1630_v44  ;;  %v1631_v26 = vand.u32 4294901760, %v1630_v44  ;;  %2295 = vmatpush.msra.mxu3 %v5142_v6 }
 0x1dc   :  { %v1375_v30 = vpop.f32.mrf.mxu2  ;;  %2358 = vmatpush.msrb.mxu0 %v6303_v18  ;;  %2222 = vmatpush.msra.mxu2 %v5116_v4  ;;  %v5374_v4 = vand.u32 4294901760, %v5061_v39 }
 0x1dd   :  { %v1567_v29 = vmax.f32 %v1559_v43, 0.0  ;;  %v1376_v38 = vadd.f32 %v1375_v30, %v1307_v19  ;;  %1877 = vmatmul.f32.gmra.mxu1 %v1631_v26  ;;  %v1632_v2 = vsub.f32 %v1630_v44, %v1631_v26  ;;  %2297 = vmatpush.msra.mxu3 %v5155_v47  ;;  %v6311_v44 = vand.u32 4294901760, %v5269_v59  ;;  %v2493_v43 = vld [vmem:[#allocation14 + $0x60] sm:$0xff] }
 0x1de   :  { %2429 = vmatpush.msrb.mxu1 %v5113_v8  ;;  %2362 = vmatpush.msrb.mxu0 %v6304_v62  ;;  %v5387_v14 = vsub.f32 %v5061_v39, %v5374_v4  ;;  %v5503_v18 = vand.u32 4294901760, %v2493_v43 }
 0x1df   :  { %v5366_v10 = vand.u32 4294901760, %v1567_v29  ;;  %v1433_v7 = vadd.f32 %v1432_v57, %v1376_v38  ;;  %v1633_v37 = vand.u32 4294901760, %v1632_v2  ;;  %2225 = vmatpush.msra.mxu2 %v5130_v35  ;;  %2299 = vmatpush.msra.mxu3 %v5171_v20 }
 0x1e0   :  { %2431 = vmatpush.msrb.mxu1 %v5127_v58  ;;  %2366 = vmatpush.msrb.mxu0 %v6305_v51  ;;  %v6306_v58 = vand.u32 4294901760, %v5191_v61  ;;  %v2073_v39 = vand.u32 4294901760, %v5387_v14  ;;  %v2490_v51 = vld [vmem:[#allocation14 + $0x48] sm:$0xff] }
 0x1e1   :  { %v1638_v8 = vsub.f32 %v1567_v29, %v5366_v10  ;;  %v1514_v12 = vadd.f32 %v1513_v1, %v1433_v7  ;;  %1634 = vmatmul.f32.gmra.mxu2 %v1633_v37  ;;  %1759 = vmatmul.f32.gmra.mxu3 %v5366_v10  ;;  %v2492_v29 = vld [vmem:[#allocation14 + $0x58] sm:$0xff]  ;;  %v2491_v37 = vld [vmem:[#allocation14 + $0x50] sm:$0xff] }
 0x1e2   :  { %2433 = vmatpush.msrb.mxu1 %v5142_v6  ;;  %2228 = vmatpush.msra.mxu2 %v5145_v27  ;;  %v2074_v16 = vsub.f32 %v5387_v14, %v2073_v39  ;;  %v5516_v7 = vand.u32 4294901760, %v2492_v29 }
 0x1e3   :  { %v1563_v35 = vadd.f32 %v1562_v55, %v1514_v12  ;;  %1827 = vmatmul.f32.gmra.mxu0 %v1638_v8  ;;  %v1639_v48 = vand.u32 4294901760, %v1638_v8  ;;  %2301 = vmatpush.msra.mxu3 %v5188_v24 }
 0x1e4   :  { %2370 = vmatpush.msrb.mxu0 %v6306_v58  ;;  %2231 = vmatpush.msra.mxu2 %v5158_v3  ;;  %v5401_v3 = vand.u32 4294901760, %v5108_v31  ;;  %v5527_v12 = vsub.f32 %v2492_v29, %v5516_v7 }
 0x1e5   :  { %v1568_v53 = vmax.f32 %v1563_v35, 0.0  ;;  %1883 = vmatmul.f32.gmra.mxu1 %v1639_v48  ;;  %v1640_v60 = vsub.f32 %v1638_v8, %v1639_v48  ;;  %2303 = vmatpush.msra.mxu3 %v5207_v36  ;;  %v5524_v8 = vand.u32 4294901760, %v2491_v37 }
 0x1e6   :  { %2435 = vmatpush.msrb.mxu1 %v5155_v47  ;;  %2374 = vmatpush.msrb.mxu0 %v6307_v40 }
 0x1e7   :  { %v5392_v6 = vand.u32 4294901760, %v1568_v53  ;;  %v1641_v27 = vand.u32 4294901760, %v1640_v60  ;;  %2234 = vmatpush.msra.mxu2 %v5174_v28  ;;  %2305 = vmatpush.msra.mxu3 %v5217_v54  ;;  %v5535_v58 = vsub.f32 %v2491_v37, %v5524_v8  ;;  %v2489_v60 = vld [vmem:[#allocation14 + $0x40] sm:$0xff] }
 0x1e8   :  { %2437 = vmatpush.msrb.mxu1 %v5171_v20  ;;  %2378 = vmatpush.msrb.mxu0 %v6308_v42  ;;  %v5414_v20 = vsub.f32 %v5108_v31, %v5401_v3  ;;  %v6310_v31 = vld [vmem:[#allocation31_spill] sm:$0xff] }
 0x1e9   :  { %v1646_v47 = vsub.f32 %v1568_v53, %v5392_v6  ;;  %1642 = vmatmul.f32.gmra.mxu2 %v1641_v27  ;;  %1763 = vmatmul.f32.gmra.mxu3 %v5392_v6  ;;  %v2588_v53 = vand.u32 4294901760, %v5527_v12  ;;  %v2594_v27 = vand.u32 4294901760, %v5535_v58 }
 0x1ea   :  { %2439 = vmatpush.msrb.mxu1 %v5188_v24  ;;  %2237 = vmatpush.msra.mxu2 %v5191_v61  ;;  %v6309_v61 = vand.u32 4294901760, %v5252_v50 }
 0x1eb   :  { %1832 = vmatmul.f32.gmra.mxu0 %v1646_v47  ;;  %v1647_v28 = vand.u32 4294901760, %v1646_v47  ;;  %2307 = vmatpush.msra.mxu3 %v5232_v13  ;;  %v2595_v42 = vsub.f32 %v5535_v58, %v2594_v27 }
 0x1ec   :  { %2382 = vmatpush.msrb.mxu0 %v2160_v33  ;;  %2240 = vmatpush.msra.mxu2 %v5211_v46  ;;  %v2087_v33 = vand.u32 4294901760, %v6310_v31  ;;  %v2075_v46 = vand.u32 4294901760, %v2074_v16 }
 0x1ed   :  { %1889 = vmatmul.f32.gmra.mxu1 %v1647_v28  ;;  %v1648_v15 = vsub.f32 %v1646_v47, %v1647_v28  ;;  %2309 = vmatpush.msra.mxu3 %v5249_v9  ;;  %v2488_v47 = vld [vmem:[#allocation14 + $0x38] sm:$0xff] }
 0x1ee   :  { %2441 = vmatpush.msrb.mxu1 %v5207_v36  ;;  %2386 = vmatpush.msrb.mxu0 %v6309_v61  ;;  %v2081_v36 = vand.u32 4294901760, %v5414_v20  ;;  %v2596_v61 = vand.u32 4294901760, %v2595_v42 }
 0x1ef   :  { %v1649_v24 = vand.u32 4294901760, %v1648_v15  ;;  %2243 = vmatpush.msra.mxu2 %v5220_v0  ;;  %2311 = vmatpush.msra.mxu3 %v5263_v25  ;;  %v6312_v0 = vand.u32 4294901760, %v5278_v49  ;;  %v5561_v15 = vand.u32 4294901760, %v2488_v47 }
 0x1f0   :  { %2443 = vmatpush.msrb.mxu1 %v5217_v54  ;;  %2390 = vmatpush.msrb.mxu0 %v6311_v44  ;;  %v2088_v54 = vsub.f32 %v6310_v31, %v2087_v33  ;;  %v2082_v21 = vsub.f32 %v5414_v20, %v2081_v36  ;;  %v2486_v44 = vld [vmem:[#allocation14 + $0x28] sm:$0xff] }
 0x1f1   :  { %1650 = vmatmul.f32.gmra.mxu2 %v1649_v24  ;;  %2007 = vmatmul.f32.vlgmr.msrb.gmra.mxu3 %v5331_v11  ;;  %v2487_v24 = vld [vmem:[#allocation14 + $0x30] sm:$0xff] }
 0x1f2   :  { %2445 = vmatpush.msrb.mxu1 %v5232_v13  ;;  %2246 = vmatpush.msra.mxu2 %v5235_v22  ;;  %v6313_v13 = vld [vmem:[#allocation32_spill] sm:$0xff]  ;;  %v2089_v19 = vand.u32 4294901760, %v2088_v54 }
 0x1f3   :  { %2076 = vmatmul.f32.vlgmr.msra.gmra.mxu0 %v2075_v46  ;;  %2313 = vmatpush.msra.mxu3 %v5275_v17  ;;  %v2095_v22 = vand.u32 4294901760, %v6313_v13  ;;  %v5571_v46 = vsub.f32 %v2488_v47, %v5561_v15 }
 0x1f4   :  { %2394 = vmatpush.msrb.mxu0 %v6312_v0  ;;  %2249 = vmatpush.msra.mxu2 %v5252_v50  ;;  %v2083_v50 = vand.u32 4294901760, %v2082_v21 }
 0x1f5   :  { %2201 = vmatmul.f32.vlgmr.msra.gmra.mxu1 %v5374_v4  ;;  %2315 = vmatpush.msra.mxu3 %v5288_v56  ;;  %v6253_v21 = vand.u32 4294901760, %v5571_v46 }
 0x1f6   :  { %2447 = vmatpush.msrb.mxu1 %v5249_v9  ;;  %2398 = vmatpush.msrb.mxu0 %v2184_v34  ;;  %v2090_v9 = vsub.f32 %v2088_v54, %v2089_v19  ;;  %v2495_v34 = vld [vmem:[#allocation14 + $0x70] sm:$0xff] }
 0x1f7   :  { %2252 = vmatpush.msra.mxu2 %v5269_v59  ;;  %2317 = vmatpush.msra.mxu3 %v5304_v5 }
 0x1f8   :  { %2449 = vmatpush.msrb.mxu1 %v5263_v25  ;;  %2402 = vmatpush.msrb.mxu0 %v2190_v41  ;;  %v2096_v25 = vsub.f32 %v6313_v13, %v2095_v22  ;;  %v2091_v41 = vand.u32 4294901760, %v2090_v9  ;;  %v5581_v13 = vand.u32 4294901760, %v2486_v44  ;;  %v2613_v9 = vsub.f32 %v5571_v46, %v6253_v21  ;;  %v5772_v21 = vld [vmem:[%s6202_s9] ss:$0 sm:$0xff] }
 0x1f9   :  { %1958 = vmatmul.f32.vlgmr.msrb.gmra.mxu2 %v5331_v11  ;;  %2011 = vmatmul.f32.gmra.mxu3 %v5347_v63 }
 0x1fa   :  { %2451 = vmatpush.msrb.mxu1 %v5275_v17  ;;  %2255 = vmatpush.msra.mxu2 %v5278_v49  ;;  %v2097_v59 = vand.u32 4294901760, %v2096_v25 }
 0x1fb   :  { %2084 = vmatmul.f32.gmra.mxu0 %v2083_v50  ;;  %v2485_v50 = vld [vmem:[#allocation14 + $0x20] sm:$0xff] }
 0x1fc   :  { %2406 = vmatpush.msrb.mxu0 %v2196_v23  ;;  %2453 = vmatpush.msrb.mxu1 %v5288_v56  ;;  %v2098_v17 = vsub.f32 %v2096_v25, %v2097_v59  ;;  %v2496_v56 = vld [vmem:[#allocation14 + $0x78] sm:$0xff] }
 0x1fd   :  { %2205 = vmatmul.f32.gmra.mxu1 %v5401_v3  ;;  %2258 = vmatpush.msra.mxu2 %v5291_v32  ;;  %v5477_v32 = vand.u32 4294901760, %v2496_v56 }
 0x1fe   :  { %2455 = vmatpush.msrb.mxu1 %v5304_v5  ;;  %v2099_v49 = vand.u32 4294901760, %v2098_v17 }
 0x1ff   :  { %2261 = vmatpush.msra.mxu2 %v5307_v45  ;;  %v5480_v5 = vsub.f32 %v2496_v56, %v5477_v32  ;;  %v5482_v45 = vand.u32 4294901760, %v2495_v34 }
 0x200   :  { %2745 = vmatpush.msra.mxu1 %v5477_v32 }
 0x201   :  { %1962 = vmatmul.f32.gmra.mxu2 %v5347_v63  ;;  %2015 = vmatmul.f32.gmra.mxu3 %v5366_v10  ;;  %v2564_v23 = vand.u32 4294901760, %v5480_v5  ;;  %v5488_v11 = vsub.f32 %v2495_v34, %v5482_v45  ;;  %v2614_v34 = vand.u32 4294901760, %v2613_v9 }
 0x202   :  { %2264 = vmatpush.msra.mxu2 %v5319_v52  ;;  %v2494_v52 = vld [vmem:[#allocation14 + $0x68] sm:$0xff]  ;;  %2677 = vmatpush.msra.mxu0 %v5480_v5 }
 0x203   :  { %2092 = vmatmul.f32.gmra.mxu0 %v2091_v41  ;;  %v5491_v63 = vand.u32 4294901760, %v2494_v52  ;;  %2747 = vmatpush.msra.mxu1 %v5482_v45  ;;  %v2565_v26 = vsub.f32 %v5480_v5, %v2564_v23  ;;  %v2570_v30 = vand.u32 4294901760, %v5488_v11  ;;  %v5595_v41 = vsub.f32 %v2486_v44, %v5581_v13 }
 0x204   :  { %2498 = vmatpush.msrb.mxu2 %v5477_v32  ;;  %2680 = vmatpush.msra.mxu0 %v5488_v11 }
 0x205   :  { %2209 = vmatmul.f32.gmra.mxu1 %v2087_v33  ;;  %v5500_v57 = vsub.f32 %v2494_v52, %v5491_v63  ;;  %v2566_v38 = vand.u32 4294901760, %v2565_v26  ;;  %v2571_v2 = vsub.f32 %v5488_v11, %v2570_v30  ;;  %v6251_v52 = vand.u32 4294901760, %v5595_v41  ;;  %v2947_v11 = vld [vmem:[#allocation16 + $0x60] sm:$0xff] }
 0x206   :  { %2500 = vmatpush.msrb.mxu2 %v5482_v45  ;;  %2749 = vmatpush.msra.mxu1 %v5491_v63 }
 0x207   :  { %v2576_v1 = vand.u32 4294901760, %v5500_v57  ;;  %2683 = vmatpush.msra.mxu0 %v5500_v57  ;;  %2567 = vmatpush.msrb.mxu3 %v2566_v38  ;;  %v2572_v62 = vand.u32 4294901760, %v2571_v2  ;;  %v2483_v38 = vld [vmem:[#allocation14 + $0x10] sm:$0xff]  ;;  %v2625_v37 = vsub.f32 %v5595_v41, %v6251_v52 }
 0x208   :  { %2502 = vmatpush.msrb.mxu2 %v5491_v63  ;;  %2751 = vmatpush.msra.mxu1 %v5503_v18  ;;  %v2945_v52 = vld [vmem:[#allocation16 + $0x50] sm:$0xff] }
 0x209   :  { %1966 = vmatmul.f32.gmra.mxu2 %v5366_v10  ;;  %2019 = vmatmul.f32.gmra.mxu3 %v5392_v6  ;;  %v5512_v10 = vsub.f32 %v2493_v43, %v5503_v18  ;;  %v2577_v55 = vsub.f32 %v5500_v57, %v2576_v1 }
 0x20a   :  { %2504 = vmatpush.msrb.mxu2 %v5503_v18  ;;  %2753 = vmatpush.msra.mxu1 %v5516_v7 }
 0x20b   :  { %2100 = vmatmul.f32.gmra.mxu0 %v2099_v49  ;;  %2573 = vmatpush.msrb.mxu3 %v2572_v62  ;;  %v2578_v35 = vand.u32 4294901760, %v2577_v55  ;;  %v2484_v49 = vld [vmem:[#allocation14 + $0x18] sm:$0xff] }
 0x20c   :  { %2686 = vmatpush.msra.mxu0 %v5512_v10  ;;  %2506 = vmatpush.msrb.mxu2 %v5516_v7  ;;  %v5609_v26 = vand.u32 4294901760, %v2484_v49 }
 0x20d   :  { %2213 = vmatmul.f32.gmra.mxu1 %v2095_v22  ;;  %2579 = vmatpush.msrb.mxu3 %v2578_v35 }
 0x20e   :  { %2689 = vmatpush.msra.mxu0 %v5527_v12  ;;  %2755 = vmatpush.msra.mxu1 %v5524_v8  ;;  %v5624_v55 = vsub.f32 %v2484_v49, %v5609_v26 }
 0x20f   :  { %2508 = vmatpush.msrb.mxu2 %v5524_v8 }
 0x210   :  { %2692 = vmatpush.msra.mxu0 %v5535_v58 }
 0x211   :  { %1970 = vmatmul.f32.gmra.mxu2 %v5392_v6  ;;  %2321 = vmatmul.f32.vlgmr.msra.gmra.mxu3 %v2073_v39  ;;  %v5546_v39 = vand.u32 4294901760, %v2489_v60 }
 0x213   :  { %2408 = vmatmul.f32.vlgmr.msrb.gmra.mxu0 %v5374_v4 }
 0x215   :  { %2457 = vmatmul.f32.vlgmr.msrb.gmra.mxu1 %v5374_v4  ;;  %v2582_v4 = vand.u32 4294901760, %v5512_v10 }
 0x217   :  { %v2583_v48 = vsub.f32 %v5512_v10, %v2582_v4 }
 0x219   :  { %2267 = vmatmul.f32.vlgmr.msra.gmra.mxu2 %v5387_v14  ;;  %2327 = vmatmul.f32.gmra.mxu3 %v2081_v36  ;;  %v5537_v14 = vand.u32 4294901760, %v2490_v51  ;;  %v2584_v6 = vand.u32 4294901760, %v2583_v48  ;;  %v5575_v36 = vand.u32 4294901760, %v2487_v24  ;;  %v2482_v48 = vld [vmem:[#allocation14 + $0x8] sm:$0xff] }
 0x21a   :  { %v5641_v42 = vand.u32 4294901760, %v2482_v48 }
 0x21b   :  { %2412 = vmatmul.f32.gmra.mxu0 %v5401_v3  ;;  %v5544_v40 = vsub.f32 %v2490_v51, %v5537_v14  ;;  %2757 = vmatpush.msra.mxu1 %v5537_v14  ;;  %v5626_v51 = vand.u32 4294901760, %v2483_v38 }
 0x21c   :  { %2585 = vmatpush.msrb.mxu3 %v2584_v6  ;;  %2510 = vmatpush.msrb.mxu2 %v5537_v14 }
 0x21d   :  { %2461 = vmatmul.f32.gmra.mxu1 %v5401_v3  ;;  %v2589_v3 = vsub.f32 %v5527_v12, %v2588_v53  ;;  %v2600_v28 = vand.u32 4294901760, %v5544_v40  ;;  %2695 = vmatpush.msra.mxu0 %v5544_v40  ;;  %v5636_v47 = vsub.f32 %v2483_v38, %v5626_v51  ;;  %v2944_v12 = vld [vmem:[#allocation16 + $0x48] sm:$0xff] }
 0x21e   :  { %2759 = vmatpush.msra.mxu1 %v5546_v39  ;;  %2512 = vmatpush.msrb.mxu2 %v5546_v39 }
 0x21f   :  { %v2590_v16 = vand.u32 4294901760, %v2589_v3  ;;  %v2601_v31 = vsub.f32 %v5544_v40, %v2600_v28  ;;  %v6249_v3 = vand.u32 4294901760, %v5624_v55  ;;  %v6247_v44 = vand.u32 4294901760, %v5636_v47 }
 0x220   :  { %2761 = vmatpush.msra.mxu1 %v5561_v15  ;;  %2514 = vmatpush.msrb.mxu2 %v5561_v15 }
 0x221   :  { %2272 = vmatmul.f32.gmra.mxu2 %v5414_v20  ;;  %2333 = vmatmul.f32.gmra.mxu3 %v2089_v19  ;;  %v5559_v20 = vsub.f32 %v2489_v60, %v5546_v39  ;;  %v2602_v0 = vand.u32 4294901760, %v2601_v31  ;;  %v2626_v60 = vand.u32 4294901760, %v2625_v37  ;;  %v2637_v31 = vsub.f32 %v5624_v55, %v6249_v3 }
 0x222   :  { %2591 = vmatpush.msrb.mxu3 %v2590_v16  ;;  %2763 = vmatpush.msra.mxu1 %v5575_v36  ;;  %v2481_v16 = vld [vmem:[#allocation14] sm:$0xff]  ;;  %v2643_v9 = vsub.f32 %v5636_v47, %v6247_v44 }
 0x223   :  { %2416 = vmatmul.f32.gmra.mxu0 %v2087_v33  ;;  %2516 = vmatpush.msrb.mxu2 %v5575_v36 }
 0x224   :  { %2698 = vmatpush.msra.mxu0 %v5559_v20  ;;  %2597 = vmatpush.msrb.mxu3 %v2596_v61  ;;  %v2644_v37 = vand.u32 4294901760, %v2643_v9 }
 0x225   :  { %2465 = vmatmul.f32.gmra.mxu1 %v2087_v33  ;;  %v6254_v33 = vand.u32 4294901760, %v5559_v20  ;;  %2518 = vmatpush.msrb.mxu2 %v5581_v13 }
 0x226   :  { %2701 = vmatpush.msra.mxu0 %v5571_v46  ;;  %2603 = vmatpush.msrb.mxu3 %v2602_v0  ;;  %v5649_v0 = vand.u32 4294901760, %v2481_v16 }
 0x227   :  { %2765 = vmatpush.msra.mxu1 %v5581_v13 }
 0x228   :  { %v5663_v49 = vsub.f32 %v2481_v16, %v5649_v0 }
 0x229   :  { %2277 = vmatmul.f32.gmra.mxu2 %v2088_v54  ;;  %2339 = vmatmul.f32.gmra.mxu3 %v2097_v59  ;;  %v2607_v54 = vsub.f32 %v5559_v20, %v6254_v33  ;;  %v5597_v59 = vand.u32 4294901760, %v2485_v50 }
 0x22b   :  { %2420 = vmatmul.f32.gmra.mxu0 %v2095_v22  ;;  %v5607_v43 = vsub.f32 %v2485_v50, %v5597_v59  ;;  %2767 = vmatpush.msra.mxu1 %v5597_v59 }
 0x22c   :  { %2520 = vmatpush.msrb.mxu2 %v5597_v59 }
 0x22d   :  { %2469 = vmatmul.f32.gmra.mxu1 %v2095_v22  ;;  %v5586_v22 = vsub.f32 %v2487_v24, %v5575_v36  ;;  %v6250_v62 = vand.u32 4294901760, %v5607_v43 }
 0x22e   :  { %2769 = vmatpush.msra.mxu1 %v5609_v26  ;;  %2522 = vmatpush.msrb.mxu2 %v5609_v26 }
 0x22f   :  { %v6252_v17 = vand.u32 4294901760, %v5586_v22  ;;  %2704 = vmatpush.msra.mxu0 %v5586_v22  ;;  %v2631_v6 = vsub.f32 %v5607_v43, %v6250_v62 }
 0x230   :  { %2771 = vmatpush.msra.mxu1 %v5626_v51  ;;  %2524 = vmatpush.msrb.mxu2 %v5626_v51 }
 0x231   :  { %2282 = vmatmul.f32.gmra.mxu2 %v2096_v25  ;;  %v2608_v25 = vand.u32 4294901760, %v2607_v54  ;;  %v2619_v29 = vsub.f32 %v5586_v22, %v6252_v17  ;;  %2707 = vmatpush.msra.mxu0 %v5595_v41  ;;  %v2632_v61 = vand.u32 4294901760, %v2631_v6  ;;  %v5654_v54 = vsub.f32 %v2482_v48, %v5641_v42 }
 0x232   :  { %2773 = vmatpush.msra.mxu1 %v5641_v42  ;;  %2526 = vmatpush.msrb.mxu2 %v5641_v42 }
 0x233   :  { %2609 = vmatpush.msrb.mxu3 %v2608_v25  ;;  %v2620_v35 = vand.u32 4294901760, %v2619_v29  ;;  %2710 = vmatpush.msra.mxu0 %v5607_v43  ;;  %v2638_v25 = vand.u32 4294901760, %v2637_v31  ;;  %v2949_v31 = vld [vmem:[#allocation16 + $0x70] sm:$0xff] }
 0x234   :  { %2775 = vmatpush.msra.mxu1 %v5649_v0  ;;  %2528 = vmatpush.msrb.mxu2 %v5649_v0 }
 0x235   :  { %2615 = vmatpush.msrb.mxu3 %v2614_v34  ;;  %2713 = vmatpush.msra.mxu0 %v5624_v55  ;;  %v6246_v34 = vand.u32 4294901760, %v5654_v54 }
 0x236   :  { %2804 = vmatpush.msra.mxu2 %v2564_v23 }
 0x237   :  { %2621 = vmatpush.msrb.mxu3 %v2620_v35  ;;  %2716 = vmatpush.msra.mxu0 %v5636_v47  ;;  %v6248_v35 = vand.u32 4294901760, %v5663_v49  ;;  %v2649_v48 = vsub.f32 %v5654_v54, %v6246_v34  ;;  %v5690_v34 = vand.u32 4294901760, %v2949_v31 }
 0x238   :  { %2808 = vmatpush.msra.mxu2 %v2570_v30 }
 0x239   :  { %2627 = vmatpush.msrb.mxu3 %v2626_v60  ;;  %2719 = vmatpush.msra.mxu0 %v5654_v54  ;;  %v2950_v60 = vld [vmem:[#allocation16 + $0x78] sm:$0xff]  ;;  %v2655_v6 = vsub.f32 %v5663_v49, %v6248_v35  ;;  %v2948_v35 = vld [vmem:[#allocation16 + $0x68] sm:$0xff] }
 0x23a   :  { %v5683_v16 = vand.u32 4294901760, %v2950_v60  ;;  %2812 = vmatpush.msra.mxu2 %v2576_v1  ;;  %v2946_v1 = vld [vmem:[#allocation16 + $0x58] sm:$0xff] }
 0x23b   :  { %2633 = vmatpush.msrb.mxu3 %v2632_v61  ;;  %2722 = vmatpush.msra.mxu0 %v5663_v49  ;;  %v2650_v61 = vand.u32 4294901760, %v2649_v48  ;;  %v2656_v9 = vand.u32 4294901760, %v2655_v6  ;;  %v5706_v48 = vsub.f32 %v2949_v31, %v5690_v34  ;;  %v5721_v31 = vand.u32 4294901760, %v2947_v11 }
 0x23c   :  { %v5693_v44 = vsub.f32 %v2950_v60, %v5683_v16  ;;  %2816 = vmatpush.msra.mxu2 %v2582_v4  ;;  %v5735_v62 = vand.u32 4294901760, %v2946_v1 }
 0x23d   :  { %2639 = vmatpush.msrb.mxu3 %v2638_v25  ;;  %2952 = vmatpush.msrb.mxu0 %v5683_v16 }
 0x23e   :  { %v5701_v23 = vand.u32 4294901760, %v5693_v44  ;;  %2820 = vmatpush.msra.mxu2 %v2588_v53  ;;  %v5750_v17 = vsub.f32 %v2946_v1, %v5735_v62  ;;  %v5764_v1 = vand.u32 4294901760, %v2944_v12 }
 0x23f   :  { %2645 = vmatpush.msrb.mxu3 %v2644_v37  ;;  %2954 = vmatpush.msrb.mxu0 %v5690_v34  ;;  %v5703_v37 = vand.u32 4294901760, %v2948_v35 }
 0x240   :  { %v3019_v6 = vsub.f32 %v5693_v44, %v5701_v23  ;;  %6316 = vst [vmem:[#allocation33_spill] sm:$0xff] %v5750_v17  ;;  %2824 = vmatpush.msra.mxu2 %v2594_v27 }
 0x241   :  { %2651 = vmatpush.msrb.mxu3 %v2650_v61  ;;  %2956 = vmatpush.msrb.mxu0 %v5703_v37  ;;  %v5719_v61 = vand.u32 4294901760, %v5706_v48  ;;  %v5724_v57 = vsub.f32 %v2948_v35, %v5703_v37  ;;  %v5738_v35 = vsub.f32 %v2947_v11, %v5721_v31 }
 0x242   :  { %2828 = vmatpush.msra.mxu2 %v2600_v28  ;;  %v2942_v28 = vld [vmem:[#allocation16 + $0x38] sm:$0xff] }
 0x243   :  { %2657 = vmatpush.msrb.mxu3 %v2656_v9  ;;  %6314 = vst [vmem:[#allocation31_spill] sm:$0xff] %v5724_v57  ;;  %v3025_v9 = vsub.f32 %v5706_v48, %v5719_v61  ;;  %2958 = vmatpush.msrb.mxu0 %v5721_v31  ;;  %v5733_v3 = vand.u32 4294901760, %v5724_v57  ;;  %v5754_v11 = vand.u32 4294901760, %v5738_v35 }
 0x244   :  { %6315 = vst [vmem:[#allocation32_spill] sm:$0xff] %v5738_v35 }
 0x245   :  { %2883 = vmatpush.msra.mxu3 %v5477_v32  ;;  %v3020_v32 = vand.u32 4294901760, %v3019_v6  ;;  %v3031_v4 = vsub.f32 %v5724_v57, %v5733_v3  ;;  %v5747_v6 = vand.u32 4294901760, %v2945_v52  ;;  %2960 = vmatpush.msrb.mxu0 %v5735_v62  ;;  %v3037_v58 = vsub.f32 %v5738_v35, %v5754_v11 }
 0x246   :  { %v5792_v35 = vsub.f32 %v2944_v12, %v5764_v1  ;;  %v5803_v57 = vand.u32 4294901760, %v2942_v28 }
 0x247   :  { %2885 = vmatpush.msra.mxu3 %v5482_v45  ;;  %3021 = vmatpush.msrb.mxu1 %v3020_v32  ;;  %v3026_v45 = vand.u32 4294901760, %v3025_v9  ;;  %v3032_v53 = vand.u32 4294901760, %v3031_v4  ;;  %v5762_v32 = vand.u32 4294901760, %v5750_v17  ;;  %v5767_v9 = vsub.f32 %v2945_v52, %v5747_v6 }
 0x248   :  { %2962 = vmatpush.msrb.mxu0 %v5747_v6  ;;  %6319 = vst [vmem:[#allocation36_spill] sm:$0xff] %v5792_v35  ;;  %v3038_v40 = vand.u32 4294901760, %v3037_v58 }
 0x249   :  { %2887 = vmatpush.msra.mxu3 %v5491_v63  ;;  %3027 = vmatpush.msrb.mxu1 %v3026_v45  ;;  %6318 = vst [vmem:[#allocation35_spill] sm:$0xff] %v5767_v9  ;;  %v3043_v52 = vsub.f32 %v5750_v17, %v5762_v32  ;;  %v5787_v4 = vand.u32 4294901760, %v5767_v9  ;;  %v5801_v17 = vand.u32 4294901760, %v5792_v35 }
 0x24a   :  { %2964 = vmatpush.msrb.mxu0 %v5764_v1  ;;  %6322 = vst [vmem:[#allocation38_spill] sm:$0xff] %v5803_v57 }
 0x24b   :  { %2889 = vmatpush.msra.mxu3 %v5503_v18  ;;  %v2943_v18 = vld [vmem:[#allocation16 + $0x40] sm:$0xff]  ;;  %3033 = vmatpush.msrb.mxu1 %v3032_v53  ;;  %v3049_v53 = vsub.f32 %v5767_v9, %v5787_v4  ;;  %6321 = vst [vmem:[#allocation37_spill] sm:$0xff] %v5801_v17  ;;  %v3055_v58 = vsub.f32 %v5792_v35, %v5801_v17 }
 0x24c   :  { %v5789_v33 = vand.u32 4294901760, %v2943_v18  ;;  %v5817_v9 = vsub.f32 %v2942_v28, %v5803_v57 }
 0x24d   :  { %2891 = vmatpush.msra.mxu3 %v5516_v7  ;;  %v3044_v7 = vand.u32 4294901760, %v3043_v52  ;;  %3039 = vmatpush.msrb.mxu1 %v3038_v40 }
 0x24e   :  { %2966 = vmatpush.msrb.mxu0 %v5789_v33  ;;  %6324 = vst [vmem:[#allocation40_spill] sm:$0xff] %v5817_v9  ;;  %v5829_v35 = vand.u32 4294901760, %v5817_v9 }
 0x24f   :  { %2893 = vmatpush.msra.mxu3 %v5524_v8  ;;  %v3050_v8 = vand.u32 4294901760, %v3049_v53  ;;  %3045 = vmatpush.msrb.mxu1 %v3044_v7  ;;  %v3056_v53 = vand.u32 4294901760, %v3055_v58  ;;  %v2939_v58 = vld [vmem:[#allocation16 + $0x20] sm:$0xff] }
 0x250   :  { %v5589_v19 = vpop.f32.mrf.mxu0  ;;  %2968 = vmatpush.msrb.mxu0 %v5803_v57  ;;  %6327 = vst [vmem:[#allocation42_spill] sm:$0xff] %v5829_v35 }
 0x251   :  { %2895 = vmatpush.msra.mxu3 %v5537_v14  ;;  %v2940_v14 = vld [vmem:[#allocation16 + $0x28] sm:$0xff]  ;;  %3051 = vmatpush.msrb.mxu1 %v3050_v8  ;;  %v6332_v8 = vand.u32 4294901760, %v5595_v41 }
 0x252   :  { %v5603_v56 = vpop.f32.mrf.mxu1  ;;  %v5831_v28 = vand.u32 4294901760, %v2940_v14 }
 0x253   :  { %2897 = vmatpush.msra.mxu3 %v5546_v39  ;;  %3057 = vmatpush.msrb.mxu1 %v3056_v53 }
 0x254   :  { %v5617_v2 = vpop.f32.mrf.mxu3 }
 0x255   :  { %2899 = vmatpush.msra.mxu3 %v5561_v15 }
 0x257   :  { %2901 = vmatpush.msra.mxu3 %v5575_v36 }
 0x258   :  { %v5643_v24 = vpop.f32.mrf.mxu0 }
 0x259   :  { %2903 = vmatpush.msra.mxu3 %v5581_v13 }
 0x25a   :  { %v5657_v50 = vpop.f32.mrf.mxu1 }
 0x25b   :  { %2905 = vmatpush.msra.mxu3 %v5597_v59 }
 0x25c   :  { %v5669_v29 = vpop.f32.mrf.mxu2  ;;  %v5671_v38 = vpop.f32.mrf.mxu3 }
 0x25d   :  { %v1628_v12 = vadd.f32 %v5772_v21, %v5669_v29  ;;  %v6325_v29 = vand.u32 4294901760, %v5571_v46  ;;  %2907 = vmatpush.msra.mxu3 %v5609_v26 }
 0x25f   :  { %v1753_v7 = vadd.f32 %v5617_v2, %v1628_v12  ;;  %v5854_v12 = vand.u32 4294901760, %v2939_v58  ;;  %2909 = vmatpush.msra.mxu3 %v5626_v51 }
 0x260   :  { %v5687_v25 = vpop.f32.mrf.mxu0 }
 0x261   :  { %v1819_v53 = vadd.f32 %v5589_v19, %v1753_v7  ;;  %v5877_v36 = vsub.f32 %v2939_v58, %v5854_v12  ;;  %v6336_v19 = vand.u32 4294901760, %v5624_v55  ;;  %v2936_v7 = vld [vmem:[#allocation16 + $0x8] sm:$0xff]  ;;  %v6337_v55 = vand.u32 4294901760, %v5636_v47  ;;  %2911 = vmatpush.msra.mxu3 %v5641_v42 }
 0x262   :  { %v5697_v5 = vpop.f32.mrf.mxu1  ;;  %v5897_v58 = vand.u32 4294901760, %v2936_v7 }
 0x263   :  { %6334 = vst [vmem:[#allocation46_spill] sm:$0xff] %v5877_v36  ;;  %2913 = vmatpush.msra.mxu3 %v5649_v0 }
 0x264   :  { %v5710_v30 = vpop.f32.mrf.mxu2  ;;  %v5712_v60 = vpop.f32.mrf.mxu3 }
 0x265   :  { %v1636_v41 = vadd.f32 %v5772_v21, %v5710_v30  ;;  %v5891_v30 = vand.u32 4294901760, %v5877_v36 }
 0x267   :  { %v3085_v59 = vsub.f32 %v5877_v36, %v5891_v30 }
 0x268   :  { %v5742_v10 = vpop.f32.mrf.mxu0 }
 0x26a   :  { %v5758_v63 = vpop.f32.mrf.mxu1 }
 0x26b   :  { %6317 = vst [vmem:[#allocation34_spill] sm:$0xff] %v5758_v63  ;;  %v6320_v63 = vand.u32 4294901760, %v5559_v20  ;;  %v5809_v20 = vsub.f32 %v2943_v18, %v5789_v33 }
 0x26c   :  { %v5779_v27 = vpop.f32.mrf.mxu2  ;;  %v5781_v45 = vpop.f32.mrf.mxu3 }
 0x26d   :  { %2832 = vmatpush.msra.mxu2 %v6320_v63  ;;  %6323 = vst [vmem:[#allocation39_spill] sm:$0xff] %v5809_v20  ;;  %v2941_v63 = vld [vmem:[#allocation16 + $0x30] sm:$0xff]  ;;  %v5825_v18 = vand.u32 4294901760, %v5809_v20 }
 0x26e   :  { %v5814_v52 = vand.u32 4294901760, %v2941_v63 }
 0x26f   :  { %2836 = vmatpush.msra.mxu2 %v6325_v29  ;;  %v6329_v29 = vand.u32 4294901760, %v5586_v22  ;;  %v3061_v39 = vsub.f32 %v5809_v20, %v5825_v18  ;;  %v3067_v22 = vsub.f32 %v5817_v9, %v5829_v35  ;;  %v2938_v20 = vld [vmem:[#allocation16 + $0x18] sm:$0xff] }
 0x270   :  { %v5821_v40 = vpop.f32.mrf.mxu0  ;;  %v5834_v46 = vsub.f32 %v2941_v63, %v5814_v52  ;;  %2970 = vmatpush.msrb.mxu0 %v5814_v52  ;;  %v5857_v63 = vsub.f32 %v2940_v14, %v5831_v28  ;;  %v6333_v14 = vand.u32 4294901760, %v5607_v43 }
 0x271   :  { %6326 = vst [vmem:[#allocation41_spill] sm:$0xff] %v5821_v40  ;;  %2840 = vmatpush.msra.mxu2 %v6329_v29  ;;  %v3062_v29 = vand.u32 4294901760, %v3061_v39  ;;  %v3068_v15 = vand.u32 4294901760, %v3067_v22  ;;  %v2937_v39 = vld [vmem:[#allocation16 + $0x10] sm:$0xff] }
 0x272   :  { %6328 = vst [vmem:[#allocation43_spill] sm:$0xff] %v5834_v46  ;;  %v5839_v40 = vpop.f32.mrf.mxu1  ;;  %v5852_v2 = vand.u32 4294901760, %v5834_v46  ;;  %2972 = vmatpush.msrb.mxu0 %v5831_v28  ;;  %v5866_v35 = vand.u32 4294901760, %v5857_v63  ;;  %v5882_v43 = vand.u32 4294901760, %v2937_v39 }
 0x273   :  { %6330 = vst [vmem:[#allocation44_spill] sm:$0xff] %v5839_v40  ;;  %2844 = vmatpush.msra.mxu2 %v6332_v8  ;;  %v5868_v40 = vand.u32 4294901760, %v2938_v20  ;;  %3063 = vmatpush.msrb.mxu1 %v3062_v29  ;;  %v1757_v29 = vadd.f32 %v5671_v38, %v1636_v41 }
 0x274   :  { %v5844_v57 = vpop.f32.mrf.mxu2  ;;  %v5846_v17 = vpop.f32.mrf.mxu3  ;;  %6331 = vst [vmem:[#allocation45_spill] sm:$0xff] %v5857_v63  ;;  %v3073_v9 = vsub.f32 %v5834_v46, %v5852_v2  ;;  %2974 = vmatpush.msrb.mxu0 %v5854_v12  ;;  %v3079_v8 = vsub.f32 %v5857_v63, %v5866_v35 }
 0x275   :  { %2848 = vmatpush.msra.mxu2 %v6333_v14  ;;  %v5885_v14 = vsub.f32 %v2938_v20, %v5868_v40  ;;  %3069 = vmatpush.msrb.mxu1 %v3068_v15  ;;  %v5900_v20 = vsub.f32 %v2937_v39, %v5882_v43  ;;  %v1824_v51 = vadd.f32 %v5643_v24, %v1757_v29 }
 0x276   :  { %v3074_v22 = vand.u32 4294901760, %v3073_v9  ;;  %2976 = vmatpush.msrb.mxu0 %v5868_v40  ;;  %v3080_v13 = vand.u32 4294901760, %v3079_v8  ;;  %v2935_v8 = vld [vmem:[#allocation16] sm:$0xff] }
 0x277   :  { %6335 = vst [vmem:[#allocation47_spill] sm:$0xff] %v5885_v14  ;;  %2852 = vmatpush.msra.mxu2 %v6336_v19  ;;  %v5895_v9 = vand.u32 4294901760, %v5885_v14  ;;  %v1873_v19 = vadd.f32 %v5603_v56, %v1819_v53  ;;  %v5915_v38 = vand.u32 4294901760, %v5900_v20  ;;  %v5917_v41 = vand.u32 4294901760, %v2935_v8 }
 0x278   :  { %v5905_v15 = vpop.f32.mrf.mxu0  ;;  %3075 = vmatpush.msrb.mxu1 %v3074_v22  ;;  %2978 = vmatpush.msrb.mxu0 %v5882_v43  ;;  %v5920_v56 = vsub.f32 %v2936_v7, %v5897_v58  ;;  %v6338_v53 = vand.u32 4294901760, %v5654_v54  ;;  %v3086_v22 = vand.u32 4294901760, %v3085_v59  ;;  %v6339_v54 = vand.u32 4294901760, %v5663_v49 }
 0x279   :  { %2856 = vmatpush.msra.mxu2 %v6337_v55  ;;  %v3091_v47 = vsub.f32 %v5885_v14, %v5895_v9  ;;  %v3097_v14 = vsub.f32 %v5900_v20, %v5915_v38  ;;  %v5934_v7 = vsub.f32 %v2935_v8, %v5917_v41 }
 0x27a   :  { %3081 = vmatpush.msrb.mxu1 %v3080_v13  ;;  %2980 = vmatpush.msrb.mxu0 %v5897_v58  ;;  %v5925_v26 = vpop.f32.mrf.mxu1  ;;  %v5931_v36 = vand.u32 4294901760, %v5920_v56 }
 0x27b   :  { %2860 = vmatpush.msra.mxu2 %v6338_v53  ;;  %v3092_v55 = vand.u32 4294901760, %v3091_v47  ;;  %v5947_v8 = vand.u32 4294901760, %v5934_v7 }
 0x27c   :  { %v1959_v63 = vpop.f32.mrf.mxu2  ;;  %v2012_v46 = vpop.f32.mrf.mxu3  ;;  %3087 = vmatpush.msrb.mxu1 %v3086_v22  ;;  %2982 = vmatpush.msrb.mxu0 %v5917_v41  ;;  %v3103_v59 = vsub.f32 %v5920_v56, %v5931_v36 }
 0x27d   :  { %v1960_v39 = vadd.f32 %v1959_v63, %v1873_v19  ;;  %2864 = vmatpush.msra.mxu2 %v6339_v54  ;;  %v1644_v63 = vadd.f32 %v5772_v21, %v5779_v27  ;;  %v3098_v19 = vand.u32 4294901760, %v3097_v14  ;;  %v3109_v24 = vsub.f32 %v5934_v7, %v5947_v8 }
 0x27e   :  { %3093 = vmatpush.msrb.mxu1 %v3092_v55  ;;  %v1879_v14 = vadd.f32 %v5657_v50, %v1824_v51  ;;  %v1652_v50 = vadd.f32 %v5772_v21, %v5844_v57 }
 0x27f   :  { %v2009_v13 = vadd.f32 %v5846_v17, %v1960_v39  ;;  %v3104_v17 = vand.u32 4294901760, %v3103_v59  ;;  %v1761_v27 = vadd.f32 %v5712_v60, %v1644_v63  ;;  %v3110_v53 = vand.u32 4294901760, %v3109_v24 }
 0x280   :  { %3099 = vmatpush.msrb.mxu1 %v3098_v19  ;;  %v5965_v60 = vpop.f32.mrf.mxu0  ;;  %v1765_v21 = vadd.f32 %v5781_v45, %v1652_v50 }
 0x281   :  { %v5949_v49 = vand.u32 4294901760, %v2009_v13  ;;  %v1829_v54 = vadd.f32 %v5687_v25, %v1761_v27 }
 0x282   :  { %3105 = vmatpush.msrb.mxu1 %v3104_v17  ;;  %v5975_v63 = vpop.f32.mrf.mxu1  ;;  %v1834_v24 = vadd.f32 %v5742_v10, %v1765_v21  ;;  %v6343_v10 = vld [vmem:[#allocation34_spill] sm:$0xff] }
 0x283   :  { %v5956_v42 = vsub.f32 %v2009_v13, %v5949_v49  ;;  %2659 = vmatmul.f32.vlgmr.msrb.gmra.mxu3 %v5949_v49  ;;  %v1885_v25 = vadd.f32 %v5697_v5, %v1829_v54  ;;  %v6346_v54 = vld [vmem:[#allocation37_spill] sm:$0xff] }
 0x284   :  { %v1963_v29 = vpop.f32.mrf.mxu2  ;;  %v2016_v47 = vpop.f32.mrf.mxu3  ;;  %3199 = vmatpush.msrb.mxu3 %v5683_v16  ;;  %3111 = vmatpush.msrb.mxu1 %v3110_v53  ;;  %v1891_v53 = vadd.f32 %v6343_v10, %v1834_v24  ;;  %v6350_v10 = vld [vmem:[#allocation41_spill] sm:$0xff] }
 0x285   :  { %v1964_v0 = vadd.f32 %v1963_v29, %v1879_v14  ;;  %2725 = vmatmul.f32.vlgmr.msra.gmra.mxu0 %v5956_v42  ;;  %v5963_v39 = vand.u32 4294901760, %v5956_v42  ;;  %v6341_v29 = vld [vmem:[#allocation31_spill] sm:$0xff] }
 0x286   :  { %3201 = vmatpush.msrb.mxu3 %v5690_v34  ;;  %3258 = vmatpush.msra.mxu0 %v5701_v23 }
 0x287   :  { %v2013_v22 = vadd.f32 %v2012_v46, %v1964_v0  ;;  %2779 = vmatmul.f32.vlgmr.msra.gmra.mxu1 %v5963_v39  ;;  %v2532_v55 = vsub.f32 %v5956_v42, %v5963_v39 }
 0x288   :  { %3203 = vmatpush.msrb.mxu3 %v5703_v37  ;;  %3262 = vmatpush.msra.mxu0 %v5719_v61  ;;  %v6006_v27 = vpop.f32.mrf.mxu0 }
 0x289   :  { %v5978_v13 = vand.u32 4294901760, %v2013_v22  ;;  %v5980_v51 = vand.u32 4294901760, %v2532_v55  ;;  %3337 = vmatpush.msra.mxu1 %v5683_v16  ;;  %v6345_v55 = vld [vmem:[#allocation32_spill] sm:$0xff] }
 0x28a   :  { %3205 = vmatpush.msrb.mxu3 %v5721_v31  ;;  %3266 = vmatpush.msra.mxu0 %v5733_v3 }
 0x28b   :  { %v5987_v57 = vsub.f32 %v2013_v22, %v5978_v13  ;;  %2534 = vmatmul.f32.vlgmr.msrb.gmra.mxu2 %v5980_v51  ;;  %2663 = vmatmul.f32.gmra.mxu3 %v5978_v13 }
 0x28c   :  { %v1967_v46 = vpop.f32.mrf.mxu2  ;;  %3339 = vmatpush.msra.mxu1 %v5690_v34  ;;  %3131 = vmatpush.msrb.mxu2 %v5693_v44  ;;  %v2020_v45 = vpop.f32.mrf.mxu3 }
 0x28d   :  { %6340 = vst [vmem:[#allocation48_spill] sm:$0xff] %v5987_v57  ;;  %v1968_v19 = vadd.f32 %v1967_v46, %v1885_v25  ;;  %2730 = vmatmul.f32.gmra.mxu0 %v5987_v57  ;;  %v5996_v59 = vand.u32 4294901760, %v5987_v57  ;;  %3207 = vmatpush.msrb.mxu3 %v5735_v62  ;;  %v6347_v46 = vld [vmem:[#allocation33_spill] sm:$0xff] }
 0x28e   :  { %3270 = vmatpush.msra.mxu0 %v5754_v11  ;;  %3134 = vmatpush.msrb.mxu2 %v5706_v48 }
 0x28f   :  { %v2017_v17 = vadd.f32 %v2016_v47, %v1968_v19  ;;  %2785 = vmatmul.f32.gmra.mxu1 %v5996_v59  ;;  %v2540_v5 = vsub.f32 %v5987_v57, %v5996_v59  ;;  %3209 = vmatpush.msrb.mxu3 %v5747_v6  ;;  %v6016_v47 = vpop.f32.mrf.mxu1 }
 0x290   :  { %3341 = vmatpush.msra.mxu1 %v5703_v37  ;;  %3274 = vmatpush.msra.mxu0 %v5762_v32 }
 0x291   :  { %v6010_v44 = vand.u32 4294901760, %v2017_v17  ;;  %v6012_v14 = vand.u32 4294901760, %v2540_v5  ;;  %3137 = vmatpush.msrb.mxu2 %v6341_v29  ;;  %3211 = vmatpush.msrb.mxu3 %v5764_v1  ;;  %v6349_v29 = vld [vmem:[#allocation35_spill] sm:$0xff] }
 0x292   :  { %3343 = vmatpush.msra.mxu1 %v5721_v31  ;;  %3278 = vmatpush.msra.mxu0 %v5787_v4 }
 0x293   :  { %v6021_v48 = vsub.f32 %v2017_v17, %v6010_v44  ;;  %2542 = vmatmul.f32.gmra.mxu2 %v6012_v14  ;;  %2667 = vmatmul.f32.gmra.mxu3 %v6010_v44  ;;  %v6348_v17 = vld [vmem:[#allocation38_spill] sm:$0xff] }
 0x294   :  { %v1971_v0 = vpop.f32.mrf.mxu2  ;;  %3345 = vmatpush.msra.mxu1 %v5735_v62  ;;  %3140 = vmatpush.msrb.mxu2 %v6345_v55  ;;  %v2322_v19 = vpop.f32.mrf.mxu3 }
 0x295   :  { %6342 = vst [vmem:[#allocation31_spill] sm:$0xff] %v6021_v48  ;;  %v1972_v50 = vadd.f32 %v1971_v0, %v1891_v53  ;;  %2735 = vmatmul.f32.gmra.mxu0 %v6021_v48  ;;  %v6030_v22 = vand.u32 4294901760, %v6021_v48  ;;  %3213 = vmatpush.msrb.mxu3 %v5789_v33  ;;  %v6351_v53 = vld [vmem:[#allocation44_spill] sm:$0xff] }
 0x296   :  { %3282 = vmatpush.msra.mxu0 %v6346_v54  ;;  %3143 = vmatpush.msrb.mxu2 %v6347_v46  ;;  %v2203_v0 = vadd.f32 %v6351_v53, %v6350_v10  ;;  %v6353_v46 = vld [vmem:[#allocation42_spill] sm:$0xff]  ;;  %v6354_v10 = vld [vmem:[#allocation36_spill] sm:$0xff] }
 0x297   :  { %6344 = vst [vmem:[#allocation34_spill] sm:$0xff] %v6030_v22  ;;  %v2021_v21 = vadd.f32 %v2020_v45, %v1972_v50  ;;  %2791 = vmatmul.f32.gmra.mxu1 %v6030_v22  ;;  %v2548_v25 = vsub.f32 %v6021_v48, %v6030_v22  ;;  %3215 = vmatpush.msrb.mxu3 %v6348_v17  ;;  %v2409_v45 = vpop.f32.mrf.mxu0  ;;  %v2458_v55 = vpop.f32.mrf.mxu1  ;;  %v6355_v22 = vld [vmem:[#allocation39_spill] sm:$0xff] }
 0x298   :  { %3347 = vmatpush.msra.mxu1 %v5747_v6  ;;  %3286 = vmatpush.msra.mxu0 %v5825_v18 }
 0x299   :  { %v6041_v5 = vand.u32 4294901760, %v2021_v21  ;;  %v6043_v24 = vand.u32 4294901760, %v2548_v25  ;;  %3146 = vmatpush.msrb.mxu2 %v6349_v29  ;;  %3217 = vmatpush.msrb.mxu3 %v5814_v52 }
 0x29a   :  { %3349 = vmatpush.msra.mxu1 %v5764_v1  ;;  %3290 = vmatpush.msra.mxu0 %v6353_v46 }
 0x29b   :  { %v6052_v50 = vsub.f32 %v2021_v21, %v6041_v5  ;;  %2550 = vmatmul.f32.gmra.mxu2 %v6043_v24  ;;  %2671 = vmatmul.f32.gmra.mxu3 %v6041_v5 }
 0x29c   :  { %v2268_v25 = vpop.f32.mrf.mxu2  ;;  %3351 = vmatpush.msra.mxu1 %v5789_v33  ;;  %3149 = vmatpush.msrb.mxu2 %v6354_v10  ;;  %v6356_v10 = vld [vmem:[#allocation40_spill] sm:$0xff]  ;;  %v2328_v57 = vpop.f32.mrf.mxu3 }
 0x29d   :  { %6352 = vst [vmem:[#allocation32_spill] sm:$0xff] %v6052_v50  ;;  %v2269_v29 = vadd.f32 %v2268_v25, %v2203_v0  ;;  %2740 = vmatmul.f32.gmra.mxu0 %v6052_v50  ;;  %v6060_v48 = vand.u32 4294901760, %v6052_v50  ;;  %3219 = vmatpush.msrb.mxu3 %v5831_v28 }
 0x29e   :  { %3294 = vmatpush.msra.mxu0 %v5852_v2  ;;  %3152 = vmatpush.msrb.mxu2 %v6355_v22 }
 0x29f   :  { %v2323_v21 = vadd.f32 %v2322_v19, %v2269_v29  ;;  %2797 = vmatmul.f32.gmra.mxu1 %v6060_v48  ;;  %v2556_v53 = vsub.f32 %v6052_v50, %v6060_v48  ;;  %3221 = vmatpush.msrb.mxu3 %v5854_v12  ;;  %v2207_v19 = vadd.f32 %v5925_v26, %v5905_v15  ;;  %v2462_v50 = vpop.f32.mrf.mxu1  ;;  %v6358_v26 = vld [vmem:[#allocation45_spill] sm:$0xff] }
 0x2a0   :  { %3353 = vmatpush.msra.mxu1 %v6348_v17  ;;  %3298 = vmatpush.msra.mxu0 %v5866_v35 }
 0x2a1   :  { %v2410_v0 = vadd.f32 %v2409_v45, %v2323_v21  ;;  %v6071_v25 = vand.u32 4294901760, %v2556_v53  ;;  %3155 = vmatpush.msrb.mxu2 %v6356_v10  ;;  %3223 = vmatpush.msrb.mxu3 %v5868_v40  ;;  %v2413_v45 = vpop.f32.mrf.mxu0  ;;  %v6357_v10 = vld [vmem:[#allocation43_spill] sm:$0xff] }
 0x2a2   :  { %3355 = vmatpush.msra.mxu1 %v5814_v52  ;;  %3302 = vmatpush.msra.mxu0 %v5891_v30 }
 0x2a3   :  { %v2459_v22 = vadd.f32 %v2458_v55, %v2410_v0  ;;  %2558 = vmatmul.f32.gmra.mxu2 %v6071_v25  ;;  %2915 = vmatmul.f32.vlgmr.msra.gmra.mxu3 %v5949_v49 }
 0x2a4   :  { %v2273_v29 = vpop.f32.mrf.mxu2  ;;  %3357 = vmatpush.msra.mxu1 %v5831_v28  ;;  %3158 = vmatpush.msrb.mxu2 %v6357_v10 }
 0x2a5   :  { %v2473_v21 = vmul.f32 0.17677669, %v2459_v22  ;;  %v2274_v53 = vadd.f32 %v2273_v29, %v2207_v19  ;;  %2988 = vmatmul.f32.vlgmr.msrb.gmra.mxu0 %v5980_v51  ;;  %3225 = vmatpush.msrb.mxu3 %v5882_v43  ;;  %v6359_v51 = vld [vmem:[#allocation46_spill] sm:$0xff]  ;;  %v2334_v19 = vpop.f32.mrf.mxu3 }
 0x2a6   :  { %3306 = vmatpush.msra.mxu0 %v5895_v9  ;;  %3161 = vmatpush.msrb.mxu2 %v6358_v26 }
 0x2a7   :  { %2477 = vst [vmem:[#allocation17] sm:$0xff] %v2473_v21  ;;  %v2329_v15 = vadd.f32 %v2328_v57, %v2274_v53  ;;  %3113 = vmatmul.f32.vlgmr.msrb.gmra.mxu1 %v5949_v49  ;;  %3227 = vmatpush.msrb.mxu3 %v5897_v58  ;;  %v2211_v57 = vadd.f32 %v5975_v63, %v5965_v60  ;;  %v6360_v21 = vld [vmem:[#allocation47_spill] sm:$0xff]  ;;  %v2466_v63 = vpop.f32.mrf.mxu1 }
 0x2a8   :  { %3359 = vmatpush.msra.mxu1 %v5854_v12  ;;  %3310 = vmatpush.msra.mxu0 %v5915_v38 }
 0x2a9   :  { %v2414_v55 = vadd.f32 %v2413_v45, %v2329_v15  ;;  %3164 = vmatpush.msrb.mxu2 %v6359_v51  ;;  %3229 = vmatpush.msrb.mxu3 %v5917_v41  ;;  %v2417_v53 = vpop.f32.mrf.mxu0 }
 0x2aa   :  { %3361 = vmatpush.msra.mxu1 %v5868_v40  ;;  %3314 = vmatpush.msra.mxu0 %v5931_v36 }
 0x2ab   :  { %v2463_v0 = vadd.f32 %v2462_v50, %v2414_v55  ;;  %2866 = vmatmul.f32.vlgmr.msra.gmra.mxu2 %v5949_v49  ;;  %2919 = vmatmul.f32.gmra.mxu3 %v5978_v13 }
 0x2ac   :  { %v2278_v22 = vpop.f32.mrf.mxu2  ;;  %3363 = vmatpush.msra.mxu1 %v5882_v43  ;;  %3167 = vmatpush.msrb.mxu2 %v6360_v21 }
 0x2ad   :  { %v2474_v45 = vmul.f32 0.17677669, %v2463_v0  ;;  %v2279_v29 = vadd.f32 %v2278_v22, %v2211_v57  ;;  %2996 = vmatmul.f32.gmra.mxu0 %v6012_v14  ;;  %3485 = vmatpush.msra.mxu3 %v5683_v16  ;;  %v2215_v16 = vadd.f32 %v6016_v47, %v6006_v27 }
 0x2ae   :  { %3318 = vmatpush.msra.mxu0 %v5947_v8  ;;  %3170 = vmatpush.msrb.mxu2 %v5900_v20 }
 0x2af   :  { %2478 = vst [vmem:[#allocation17 + $0x8] sm:$0xff] %v2474_v45  ;;  %v2335_v60 = vadd.f32 %v2334_v19, %v2279_v29  ;;  %3117 = vmatmul.f32.gmra.mxu1 %v5978_v13  ;;  %3486 = vmatpush.msra.mxu3 %v5690_v34 }
 0x2b0   :  { %3365 = vmatpush.msra.mxu1 %v5897_v58  ;;  %3173 = vmatpush.msrb.mxu2 %v5920_v56 }
 0x2b1   :  { %v2418_v50 = vadd.f32 %v2417_v53, %v2335_v60  ;;  %3487 = vmatpush.msra.mxu3 %v5703_v37  ;;  %v2340_v37 = vpop.f32.mrf.mxu3  ;;  %v2421_v27 = vpop.f32.mrf.mxu0 }
 0x2b2   :  { %3367 = vmatpush.msra.mxu1 %v5917_v41  ;;  %3176 = vmatpush.msrb.mxu2 %v5934_v7 }
 0x2b3   :  { %v2467_v14 = vadd.f32 %v2466_v63, %v2418_v50  ;;  %2870 = vmatmul.f32.gmra.mxu2 %v5978_v13  ;;  %2923 = vmatmul.f32.gmra.mxu3 %v6010_v44 }
 0x2b4   :  { %v2283_v20 = vpop.f32.mrf.mxu2  ;;  %3488 = vmatpush.msra.mxu3 %v5721_v31  ;;  %3469 = vmatpush.msra.mxu2 %v5701_v23  ;;  %v2470_v31 = vpop.f32.mrf.mxu1  ;;  %v6363_v23 = vld [vmem:[#allocation31_spill] sm:$0xff] }
 0x2b5   :  { %v2475_v34 = vmul.f32 0.17677669, %v2467_v14  ;;  %v2284_v10 = vadd.f32 %v2283_v20, %v2215_v16  ;;  %3004 = vmatmul.f32.gmra.mxu0 %v6043_v24 }
 0x2b6   :  { %3489 = vmatpush.msra.mxu3 %v5735_v62  ;;  %3470 = vmatpush.msra.mxu2 %v5719_v61  ;;  %v6364_v61 = vld [vmem:[#allocation32_spill] sm:$0xff] }
 0x2b7   :  { %2479 = vst [vmem:[#allocation17 + $0x10] sm:$0xff] %v2475_v34  ;;  %v2341_v56 = vadd.f32 %v2340_v37, %v2284_v10  ;;  %3121 = vmatmul.f32.gmra.mxu1 %v6010_v44 }
 0x2b8   :  { %3490 = vmatpush.msra.mxu3 %v5747_v6  ;;  %3471 = vmatpush.msra.mxu2 %v5733_v3  ;;  %v6362_v3 = vld [vmem:[#allocation34_spill] sm:$0xff] }
 0x2b9   :  { %v2422_v7 = vadd.f32 %v2421_v27, %v2341_v56 }
 0x2ba   :  { %3491 = vmatpush.msra.mxu3 %v5764_v1  ;;  %3472 = vmatpush.msra.mxu2 %v5754_v11 }
 0x2bb   :  { %v2471_v47 = vadd.f32 %v2470_v31, %v2422_v7  ;;  %2874 = vmatmul.f32.gmra.mxu2 %v6010_v44  ;;  %2927 = vmatmul.f32.gmra.mxu3 %v6041_v5 }
 0x2bc   :  { %3492 = vmatpush.msra.mxu3 %v5789_v33  ;;  %3473 = vmatpush.msra.mxu2 %v5762_v32  ;;  %v6361_v33 = vld [vmem:[#allocation48_spill] sm:$0xff] }
 0x2bd   :  { %v2476_v62 = vmul.f32 0.17677669, %v2471_v47  ;;  %3012 = vmatmul.f32.gmra.mxu0 %v6071_v25 }
 0x2be   :  { %3493 = vmatpush.msra.mxu3 %v6348_v17  ;;  %3474 = vmatpush.msra.mxu2 %v5787_v4 }
 0x2bf   :  { %2480 = vst [vmem:[#allocation17 + $0x18] sm:$0xff] %v2476_v62  ;;  %3125 = vmatmul.f32.gmra.mxu1 %v6041_v5 }
 0x2c0   :  { %3494 = vmatpush.msra.mxu3 %v5814_v52  ;;  %3475 = vmatpush.msra.mxu2 %v6346_v54  ;;  %3405 = dma.vmem_to_hbm [thread:$0]  %s3398_s24, 512, %s3400_s20, [#allocation4], %s3849_s29, %s3849_s29, %s3850_s30  }
 0x2c2   :  { %3495 = vmatpush.msra.mxu3 %v5831_v28  ;;  %3476 = vmatpush.msra.mxu2 %v5825_v18 }
 0x2c3   :  { %2878 = vmatmul.f32.gmra.mxu2 %v6041_v5  ;;  %3233 = vmatmul.f32.vlgmr.msrb.gmra.mxu3 %v5963_v39 }
 0x2c4   :  { %3496 = vmatpush.msra.mxu3 %v5854_v12  ;;  %3477 = vmatpush.msra.mxu2 %v6353_v46 }
 0x2c5   :  { %3320 = vmatmul.f32.vlgmr.msra.gmra.mxu0 %v5949_v49 }
 0x2c6   :  { %3497 = vmatpush.msra.mxu3 %v5868_v40  ;;  %3478 = vmatpush.msra.mxu2 %v5852_v2 }
 0x2c7   :  { %3369 = vmatmul.f32.vlgmr.msra.gmra.mxu1 %v5949_v49 }
 0x2c8   :  { %3498 = vmatpush.msra.mxu3 %v5882_v43  ;;  %3479 = vmatpush.msra.mxu2 %v5866_v35 }
 0x2ca   :  { %3499 = vmatpush.msra.mxu3 %v5897_v58  ;;  %3480 = vmatpush.msra.mxu2 %v5891_v30 }
 0x2cb   :  { %3179 = vmatmul.f32.vlgmr.msrb.gmra.mxu2 %v5956_v42  ;;  %3239 = vmatmul.f32.gmra.mxu3 %v5996_v59 }
 0x2cc   :  { %3500 = vmatpush.msra.mxu3 %v5917_v41  ;;  %3481 = vmatpush.msra.mxu2 %v5895_v9 }
 0x2cd   :  { %3324 = vmatmul.f32.gmra.mxu0 %v5978_v13 }
 0x2ce   :  { %3482 = vmatpush.msra.mxu2 %v5915_v38 }
 0x2cf   :  { %3373 = vmatmul.f32.gmra.mxu1 %v5978_v13 }
 0x2d0   :  { %3483 = vmatpush.msra.mxu2 %v5931_v36 }
 0x2d2   :  { %3484 = vmatpush.msra.mxu2 %v5947_v8 }
 0x2d3   :  { %3184 = vmatmul.f32.gmra.mxu2 %v6361_v33  ;;  %3245 = vmatmul.f32.gmra.mxu3 %v6362_v3 }
 0x2db   :  { %3189 = vmatmul.f32.gmra.mxu2 %v6363_v23  ;;  %3251 = vmatmul.f32.gmra.mxu3 %v6060_v48 }
 0x2e3   :  { %3194 = vmatmul.f32.gmra.mxu2 %v6364_v61  ;;  %3377 = vmatmul.f32.vlgmr.msra.gmra.mxu3 %v6010_v44 }
 0x2eb   :  { %3328 = vmatmul.f32.vlgmr.msra.gmra.mxu2 %v6010_v44  ;;  %3381 = vmatmul.f32.gmra.mxu3 %v6041_v5 }
 0x2f3   :  { %3332 = vmatmul.f32.gmra.mxu2 %v6041_v5 }
 0x302   :  { %v2726_v35 = vpop.f32.mrf.mxu0 }
 0x304   :  { %v2780_v6 = vpop.f32.mrf.mxu1 }
 0x306   :  { %v2660_v11 = vpop.f32.mrf.mxu3 }
 0x30a   :  { %v2731_v32 = vpop.f32.mrf.mxu0 }
 0x30c   :  { %v2786_v1 = vpop.f32.mrf.mxu1 }
 0x30e   :  { %v2535_v4 = vpop.f32.mrf.mxu2  ;;  %v2664_v52 = vpop.f32.mrf.mxu3 }
 0x30f   :  { %v2661_v9 = vadd.f32 %v2660_v11, %v2535_v4 }
 0x311   :  { %v2727_v8 = vadd.f32 %v2726_v35, %v2661_v9 }
 0x312   :  { %v2736_v40 = vpop.f32.mrf.mxu0 }
 0x313   :  { %v2781_v39 = vadd.f32 %v2780_v6, %v2727_v8 }
 0x314   :  { %v2792_v18 = vpop.f32.mrf.mxu1 }
 0x316   :  { %v2543_v28 = vpop.f32.mrf.mxu2  ;;  %v2668_v2 = vpop.f32.mrf.mxu3 }
 0x317   :  { %v2665_v42 = vadd.f32 %v2664_v52, %v2543_v28 }
 0x319   :  { %v2732_v48 = vadd.f32 %v2731_v32, %v2665_v42 }
 0x31a   :  { %v2741_v12 = vpop.f32.mrf.mxu0 }
 0x31b   :  { %v2787_v46 = vadd.f32 %v2786_v1, %v2732_v48 }
 0x31c   :  { %v2798_v30 = vpop.f32.mrf.mxu1 }
 0x31e   :  { %v2551_v36 = vpop.f32.mrf.mxu2  ;;  %v2672_v43 = vpop.f32.mrf.mxu3 }
 0x31f   :  { %v2669_v24 = vadd.f32 %v2668_v2, %v2551_v36 }
 0x321   :  { %v2737_v55 = vadd.f32 %v2736_v40, %v2669_v24 }
 0x322   :  { %v2989_v41 = vpop.f32.mrf.mxu0 }
 0x323   :  { %v2793_v22 = vadd.f32 %v2792_v18, %v2737_v55 }
 0x324   :  { %v3114_v49 = vpop.f32.mrf.mxu1 }
 0x325   :  { %v3115_v37 = vadd.f32 %v3114_v49, %v2989_v41 }
 0x326   :  { %v2559_v58 = vpop.f32.mrf.mxu2  ;;  %v2916_v38 = vpop.f32.mrf.mxu3 }
 0x327   :  { %v2673_v0 = vadd.f32 %v2672_v43, %v2559_v58 }
 0x329   :  { %v2742_v53 = vadd.f32 %v2741_v12, %v2673_v0 }
 0x32a   :  { %v2997_v54 = vpop.f32.mrf.mxu0 }
 0x32b   :  { %v2799_v50 = vadd.f32 %v2798_v30, %v2742_v53 }
 0x32c   :  { %v3118_v5 = vpop.f32.mrf.mxu1 }
 0x32d   :  { %v3119_v3 = vadd.f32 %v3118_v5, %v2997_v54 }
 0x32e   :  { %v2867_v13 = vpop.f32.mrf.mxu2  ;;  %v2920_v59 = vpop.f32.mrf.mxu3 }
 0x32f   :  { %v2868_v44 = vadd.f32 %v2867_v13, %v2781_v39 }
 0x331   :  { %v2917_v17 = vadd.f32 %v2916_v38, %v2868_v44 }
 0x332   :  { %v3005_v57 = vpop.f32.mrf.mxu0 }
 0x333   :  { %2931 = vst [vmem:[#allocation18] sm:$0xff] %v2917_v17 }
 0x334   :  { %v3122_v19 = vpop.f32.mrf.mxu1 }
 0x335   :  { %v3123_v2 = vadd.f32 %v3122_v19, %v3005_v57 }
 0x336   :  { %v2871_v25 = vpop.f32.mrf.mxu2  ;;  %v2924_v15 = vpop.f32.mrf.mxu3 }
 0x337   :  { %v2872_v26 = vadd.f32 %v2871_v25, %v2787_v46 }
 0x339   :  { %v2921_v51 = vadd.f32 %v2920_v59, %v2872_v26 }
 0x33a   :  { %v3013_v63 = vpop.f32.mrf.mxu0 }
 0x33b   :  { %2932 = vst [vmem:[#allocation18 + $0x8] sm:$0xff] %v2921_v51 }
 0x33c   :  { %v3126_v34 = vpop.f32.mrf.mxu1 }
 0x33d   :  { %v3127_v9 = vadd.f32 %v3126_v34, %v3013_v63 }
 0x33e   :  { %v2875_v45 = vpop.f32.mrf.mxu2  ;;  %v2928_v29 = vpop.f32.mrf.mxu3 }
 0x33f   :  { %v2876_v21 = vadd.f32 %v2875_v45, %v2793_v22 }
 0x341   :  { %v2925_v60 = vadd.f32 %v2924_v15, %v2876_v21 }
 0x342   :  { %v3321_v7 = vpop.f32.mrf.mxu0 }
 0x343   :  { %2933 = vst [vmem:[#allocation18 + $0x10] sm:$0xff] %v2925_v60 }
 0x344   :  { %v3370_v62 = vpop.f32.mrf.mxu1 }
 0x346   :  { %v2879_v16 = vpop.f32.mrf.mxu2  ;;  %v3234_v14 = vpop.f32.mrf.mxu3 }
 0x347   :  { %v2880_v20 = vadd.f32 %v2879_v16, %v2799_v50 }
 0x349   :  { %v2929_v10 = vadd.f32 %v2928_v29, %v2880_v20 }
 0x34a   :  { %v3325_v11 = vpop.f32.mrf.mxu0 }
 0x34b   :  { %2934 = vst [vmem:[#allocation18 + $0x18] sm:$0xff] %v2929_v10 }
 0x34c   :  { %3418 = dma.vmem_to_hbm [thread:$0]  %s3411_s16, 512, %s3413_s27, [#allocation19], %s3849_s29, %s3849_s29, %s3850_s30   ;;  %v3374_v4 = vpop.f32.mrf.mxu1 }
 0x34e   :  { %v3180_v56 = vpop.f32.mrf.mxu2  ;;  %v3240_v31 = vpop.f32.mrf.mxu3 }
 0x34f   :  { %v3181_v27 = vadd.f32 %v3180_v56, %v3115_v37 }
 0x351   :  { %v3235_v47 = vadd.f32 %v3234_v14, %v3181_v27 }
 0x353   :  { %v3322_v33 = vadd.f32 %v3321_v7, %v3235_v47 }
 0x355   :  { %v3371_v23 = vadd.f32 %v3370_v62, %v3322_v33 }
 0x356   :  { %v3185_v61 = vpop.f32.mrf.mxu2  ;;  %v3246_v32 = vpop.f32.mrf.mxu3 }
 0x357   :  { %3385 = vst [vmem:[#allocation20] sm:$0xff] %v3371_v23  ;;  %v3186_v35 = vadd.f32 %v3185_v61, %v3119_v3 }
 0x359   :  { %v3241_v6 = vadd.f32 %v3240_v31, %v3186_v35 }
 0x35b   :  { %v3326_v1 = vadd.f32 %v3325_v11, %v3241_v6 }
 0x35d   :  { %v3375_v52 = vadd.f32 %v3374_v4, %v3326_v1 }
 0x35e   :  { %v3190_v40 = vpop.f32.mrf.mxu2  ;;  %v3252_v18 = vpop.f32.mrf.mxu3 }
 0x35f   :  { %3386 = vst [vmem:[#allocation20 + $0x8] sm:$0xff] %v3375_v52  ;;  %v3191_v12 = vadd.f32 %v3190_v40, %v3123_v2 }
 0x361   :  { %v3247_v36 = vadd.f32 %v3246_v32, %v3191_v12 }
 0x366   :  { %v3195_v28 = vpop.f32.mrf.mxu2  ;;  %v3378_v43 = vpop.f32.mrf.mxu3 }
 0x367   :  { %v3196_v38 = vadd.f32 %v3195_v28, %v3127_v9 }
 0x369   :  { %v3253_v8 = vadd.f32 %v3252_v18, %v3196_v38 }
 0x36e   :  { %v3329_v30 = vpop.f32.mrf.mxu2  ;;  %v3382_v39 = vpop.f32.mrf.mxu3 }
 0x36f   :  { %v3330_v58 = vadd.f32 %v3329_v30, %v3247_v36 }
 0x371   :  { %v3379_v41 = vadd.f32 %v3378_v43, %v3330_v58 }
 0x373   :  { %3387 = vst [vmem:[#allocation20 + $0x10] sm:$0xff] %v3379_v41 }
 0x376   :  { %v3333_v49 = vpop.f32.mrf.mxu2 }
 0x377   :  { %v3334_v42 = vadd.f32 %v3333_v49, %v3253_v8 }
 0x379   :  { %v3383_v13 = vadd.f32 %v3382_v39, %v3334_v42 }
 0x37b   :  { %3388 = vst [vmem:[#allocation20 + $0x18] sm:$0xff] %v3383_v13 }
 0x37c   :  { %3431 = dma.vmem_to_hbm [thread:$0]  %s3424_s0, 512, %s3426_s28, [#allocation19], %s3849_s29, %s3849_s29, %s3850_s30  }
 0x37d   :  { %3842 = dma.done.wait [#allocation4], 512  }
 0x37e   :  { %3843 = vsyncadd [#allocation4], 4294966784 }
 0x37f   :  { %3844 = dma.done.wait [#allocation19], 1024  }
 0x380   :  { %3845 = vsyncadd [#allocation19], 4294966272 }
 0x381   :  { %3846 = dma.done.wait [#allocation22], 512  }
 0x382   :  { %3847 = vsyncadd [#allocation22], 4294966784 }
 0x383   :  { %3461 = vsyncpa [#allocation3], 1 }
 0x384   :  { %3462 = vsyncpa [#allocation6], 1 }
 0x385   :  { %3463 = vsyncpa [#allocation9], 1 }
 0x386   :  { %3464 = vsyncpa [#allocation12], 1 }
 0x387   :  { %3465 = vsyncpa [#allocation15], 1 }
 0x388   :  { %3466 = vsyncpa [#allocation4], 1 }
 0x389   :  { %3467 = vsyncpa [#allocation19], 1 }
 0x38a   :  { %3468 = vsyncpa [#allocation22], 1 }

</bundles_post_ra>
